<compile_context>
chip_gen: v7x
topology: tpu7x:2x2x1
jax: 0.10.0
libtpu: 0.0.40
codegen_flags: <defaults>
</compile_context>

<pallas_src>
import numpy as np
import jax
import jax.numpy as jnp
from jax.experimental import pallas as pl
from jax.experimental.pallas import tpu as pltpu

D_MODEL = 32
D_FF = 64
N_LAYERS = 3
LN_EPS = 1e-5                                    # torch.nn.LayerNorm default
_INV_SQRT2 = np.float32(1.0 / np.sqrt(2.0))


def fnet_kernel(x_ref, dftc_ref, c_ref, avg_ref, w1_ref, b1_ref, w2_ref, b2_ref,
                g1_ref, be1_ref, g2_ref, be2_ref, o_ref):
    """One packed row-tile of the full N_LAYERS FNet forward (lane-dense)."""
    h = x_ref[...].astype(jnp.float32)
    dftc = dftc_ref[...]   # bf16 block-diag (cosDFT + I) @ (I - J/D): mix + res + centering
    cmat = c_ref[...]      # bf16 block-diag (I - J/D): LN2 mean-centering
    avg = avg_ref[...]     # bf16 block-diag (J/D): per-group mean operator
    n_layers = w1_ref.shape[0]

    def norm_tail(d, g, b):
        # d is already mean-centered per d_model-lane group; finish the LayerNorm.
        var = jnp.dot((d * d).astype(jnp.bfloat16), avg,
                      preferred_element_type=jnp.float32)
        return d * jax.lax.rsqrt(var + LN_EPS) * g + b

    # Static unroll over the encoder layers (static VMEM weight views).
    for l in range(n_layers):
        # Re{FFT} + residual + LN1 centering in a single bf16 MXU matmul.
        d1 = jnp.dot(h.astype(jnp.bfloat16), dftc,
                     preferred_element_type=jnp.float32)
        h1 = norm_tail(d1, g1_ref[pl.ds(l, 1), :], be1_ref[pl.ds(l, 1), :])

        # MLP: Linear(d_model, d_ff) -> GELU (exact erf) -> Linear(d_ff, d_model)
        z = jnp.dot(h1.astype(jnp.bfloat16), w1_ref[l],
                    preferred_element_type=jnp.float32) + b1_ref[pl.ds(l, 1), :]
        z = 0.5 * z * (1.0 + jax.lax.erf(z * _INV_SQRT2))
        m = jnp.dot(z.astype(jnp.bfloat16), w2_ref[l],
                    preferred_element_type=jnp.float32) + b2_ref[pl.ds(l, 1), :]
        # TODO(synk): nn.Dropout omitted (eval-mode identity; kernel is deterministic)

        d2 = jnp.dot((m + h1).astype(jnp.bfloat16), cmat,
                     preferred_element_type=jnp.float32)
        h = norm_tail(d2, g2_ref[pl.ds(l, 1), :], be2_ref[pl.ds(l, 1), :])

    o_ref[...] = h.astype(o_ref.dtype)


def _round_up(a, b):
    return ((a + b - 1) // b) * b


def _pack_factor(d_model):
    """Tokens packed per lane-row, chosen per TPU generation (MXU width)."""
    try:
        kind = jax.devices()[0].device_kind.lower()
    except Exception:
        kind = ""
    # v6e / v7x MXUs contract over 256; older chips use 128-wide tiles.
    target = 128 if any(v in kind for v in ("v2", "v3", "v4", "v5")) else 256
    for t in (target, 128):
        if d_model <= t and t % d_model == 0:
            return t // d_model
    return 1


def pack_params(params, P):
    """Host-side (once-per-model) weight packing: kron(I_P, W), cast to bf16."""
    w1, b1, w2, b2, g1, be1, g2, be2 = params
    L, D, _ = w1.shape
    eyeP = jnp.eye(P, dtype=jnp.float32)

    def blockdiag(w):  # (a, b) -> kron(I_P, w) with shape (P*a, P*b)
        a, b = w.shape
        return jnp.einsum('pq,ab->paqb', eyeP, w).reshape(P * a, P * b)

    n = jnp.arange(D, dtype=jnp.float32)
    dft = jnp.cos(2.0 * jnp.pi * jnp.outer(n, n) / D)   # Re{DFT} for real input
    eye = jnp.eye(D, dtype=jnp.float32)
    ctr = eye - jnp.full((D, D), 1.0 / D, jnp.float32)  # I - J/D (mean-centering)

    dftc_blk = blockdiag((dft + eye) @ ctr).astype(jnp.bfloat16)
    c_blk = blockdiag(ctr).astype(jnp.bfloat16)
    avg_blk = blockdiag(jnp.full((D, D), 1.0 / D, jnp.float32)).astype(jnp.bfloat16)

    w1_blk = jnp.stack([blockdiag(w1[l]) for l in range(L)]).astype(jnp.bfloat16)
    w2_blk = jnp.stack([blockdiag(w2[l]) for l in range(L)]).astype(jnp.bfloat16)
    b1_t = jnp.tile(b1, (1, P))      # biases / LN affine stay f32 (VPU side)
    b2_t = jnp.tile(b2, (1, P))
    g1_t = jnp.tile(g1, (1, P))
    be1_t = jnp.tile(be1, (1, P))
    g2_t = jnp.tile(g2, (1, P))
    be2_t = jnp.tile(be2, (1, P))
    return (dftc_blk, c_blk, avg_blk, w1_blk, b1_t, w2_blk, b2_t,
            g1_t, be1_t, g2_t, be2_t)


def fnet_forward(x, packed, *, P, tile_rows=512):
    """x: (B, S, D) float32.  packed: output of pack_params(params, P)."""
    dftc_blk = packed[0]
    lanes = dftc_blk.shape[-1]
    B, S, D = x.shape
    assert lanes == P * D

    # Pack rows (N, D) -> (R, P*D); pad the packed row count to the row tile.
    N = B * S
    R = -(-N // P)
    R_full = _round_up(max(R, 1), 8)
    tile_cap = max(8, min(_round_up(tile_rows, 8), R_full))
    n_steps = -(-R_full // tile_cap)
    if R_full > 8 and n_steps < 2:
        n_steps = 2                    # keep both v7x TensorCores busy
    tile_r = max(8, _round_up(-(-R_full // n_steps), 8))
    R_pad = _round_up(R_full, tile_r)
    N_pad = R_pad * P

    x2 = x.reshape(N, D)
    if N_pad > N:
        x2 = jnp.pad(x2, ((0, N_pad - N), (0, 0)))
    x_packed = x2.reshape(R_pad, lanes)

    def full_spec(arr):
        nd = arr.ndim
        return pl.BlockSpec(arr.shape, lambda i, _nd=nd: (0,) * _nd)

    out = pl.pallas_call(
        fnet_kernel,
        out_shape=jax.ShapeDtypeStruct((R_pad, lanes), x.dtype),
        grid_spec=pltpu.PrefetchScalarGridSpec(
            num_scalar_prefetch=0,
            grid=(R_pad // tile_r,),
            in_specs=[pl.BlockSpec((tile_r, lanes), lambda i: (i, 0))]
                     + [full_spec(w) for w in packed],
            out_specs=pl.BlockSpec((tile_r, lanes), lambda i: (i, 0)),
        ),
        compiler_params=pltpu.CompilerParams(
            dimension_semantics=("parallel",),
            vmem_limit_bytes=48 * 1024 * 1024),
    )(x_packed, *packed)

    return out.reshape(N_pad, D)[:N].reshape(B, S, D)


def init_params(key, d_model, d_ff, n_layers):
    """Deterministic synthetic parameters (shapes match the torch module)."""
    k0, k1, k2, k3 = jax.random.split(key, 4)
    s1 = 1.0 / np.sqrt(d_model)
    s2 = 1.0 / np.sqrt(d_ff)
    w1 = jax.random.uniform(k0, (n_layers, d_model, d_ff), jnp.float32, -s1, s1)
    b1 = jax.random.uniform(k1, (n_layers, d_ff), jnp.float32, -s1, s1)
    w2 = jax.random.uniform(k2, (n_layers, d_ff, d_model), jnp.float32, -s2, s2)
    b2 = jax.random.uniform(k3, (n_layers, d_model), jnp.float32, -s2, s2)
    g1 = jnp.ones((n_layers, d_model), jnp.float32)    # LayerNorm init weight=1
    be1 = jnp.zeros((n_layers, d_model), jnp.float32)  # LayerNorm init bias=0
    g2 = jnp.ones((n_layers, d_model), jnp.float32)
    be2 = jnp.zeros((n_layers, d_model), jnp.float32)
    return (w1, b1, w2, b2, g1, be1, g2, be2)


def fnet_reference(x, params):
    """Pure-JAX reference mirroring the PyTorch forward (eval mode)."""
    w1, b1, w2, b2, g1, be1, g2, be2 = params

    def ln(v, g, b):
        mu = v.mean(-1, keepdims=True)
        var = ((v - mu) ** 2).mean(-1, keepdims=True)
        return (v - mu) / jnp.sqrt(var + LN_EPS) * g + b

    h = x
    for l in range(w1.shape[0]):
        y = jnp.real(jnp.fft.fft(h, axis=-1)).astype(jnp.float32)
        h1 = ln(y + h, g1[l], be1[l])
        z = h1 @ w1[l] + b1[l]
        z = 0.5 * z * (1.0 + jax.lax.erf(z / jnp.sqrt(2.0)))
        m = z @ w2[l] + b2[l]
        h = ln(m + h1, g2[l], be2[l])
    return h


if __name__ == "__main__":
    key = jax.random.PRNGKey(0)
    kx, kp = jax.random.split(key)

    B, S = 2, 8
    x = jax.random.normal(kx, (B, S, D_MODEL), jnp.float32)
    params = init_params(kp, D_MODEL, D_FF, N_LAYERS)

    P = _pack_factor(D_MODEL)            # 8 on v6e/v7x (256 lanes), 4 on v5e
    packed = pack_params(params, P)      # built once, reused across calls

    out = fnet_forward(x, packed, P=P, tile_rows=512)
    out = jax.block_until_ready(out)

    ref = fnet_reference(x, params)
    np.testing.assert_allclose(np.asarray(out), np.asarray(ref),
                               rtol=5e-2, atol=5e-2)
    print("KERNEL_OK")
</pallas_src>

<mosaic_0001>
module attributes {stable_mosaic.version = 11 : i64} {
  func.func @fnet_kernel(%arg0: i32, %arg1: memref<8x256xf32, #tpu.memory_space<vmem>>, %arg2: memref<256x256xbf16, #tpu.memory_space<vmem>>, %arg3: memref<256x256xbf16, #tpu.memory_space<vmem>>, %arg4: memref<256x256xbf16, #tpu.memory_space<vmem>>, %arg5: memref<3x256x512xbf16, #tpu.memory_space<vmem>>, %arg6: memref<3x512xf32, #tpu.memory_space<vmem>>, %arg7: memref<3x512x256xbf16, #tpu.memory_space<vmem>>, %arg8: memref<3x256xf32, #tpu.memory_space<vmem>>, %arg9: memref<3x256xf32, #tpu.memory_space<vmem>>, %arg10: memref<3x256xf32, #tpu.memory_space<vmem>>, %arg11: memref<3x256xf32, #tpu.memory_space<vmem>>, %arg12: memref<3x256xf32, #tpu.memory_space<vmem>>, %arg13: memref<8x256xf32, #tpu.memory_space<vmem>>) attributes {dimension_semantics = [#tpu.dimension_semantics<parallel>], iteration_bounds = array<i64: 1>, scalar_prefetch = 0 : i64, scratch_operands = 0 : i64, tpu.core_type = #tpu.core_type<tc>, window_params = [{transform_indices = @transform_0, window_bounds = array<i64: 8, 256>}, {pipeline_mode = #tpu.pipeline_mode<synchronous>, transform_indices = @transform_1, window_bounds = array<i64: 256, 256>}, {pipeline_mode = #tpu.pipeline_mode<synchronous>, transform_indices = @transform_2, window_bounds = array<i64: 256, 256>}, {pipeline_mode = #tpu.pipeline_mode<synchronous>, transform_indices = @transform_3, window_bounds = array<i64: 256, 256>}, {pipeline_mode = #tpu.pipeline_mode<synchronous>, transform_indices = @transform_4, window_bounds = array<i64: 3, 256, 512>}, {pipeline_mode = #tpu.pipeline_mode<synchronous>, transform_indices = @transform_5, window_bounds = array<i64: 3, 512>}, {pipeline_mode = #tpu.pipeline_mode<synchronous>, transform_indices = @transform_6, window_bounds = array<i64: 3, 512, 256>}, {pipeline_mode = #tpu.pipeline_mode<synchronous>, transform_indices = @transform_7, window_bounds = array<i64: 3, 256>}, {pipeline_mode = #tpu.pipeline_mode<synchronous>, transform_indices = @transform_8, window_bounds = array<i64: 3, 256>}, {pipeline_mode = #tpu.pipeline_mode<synchronous>, transform_indices = @transform_9, window_bounds = array<i64: 3, 256>}, {pipeline_mode = #tpu.pipeline_mode<synchronous>, transform_indices = @transform_10, window_bounds = array<i64: 3, 256>}, {pipeline_mode = #tpu.pipeline_mode<synchronous>, transform_indices = @transform_11, window_bounds = array<i64: 3, 256>}, {transform_indices = @transform_12, window_bounds = array<i64: 8, 256>}]} {
    %c0 = arith.constant 0 : index
    %c0_0 = arith.constant 0 : index
    %0 = vector.load %arg1[%c0, %c0_0] : memref<8x256xf32, #tpu.memory_space<vmem>>, vector<8x256xf32>
    %c0_1 = arith.constant 0 : index
    %c0_2 = arith.constant 0 : index
    %1 = vector.load %arg2[%c0_1, %c0_2] : memref<256x256xbf16, #tpu.memory_space<vmem>>, vector<256x256xbf16>
    %c0_3 = arith.constant 0 : index
    %c0_4 = arith.constant 0 : index
    %2 = vector.load %arg3[%c0_3, %c0_4] : memref<256x256xbf16, #tpu.memory_space<vmem>>, vector<256x256xbf16>
    %c0_5 = arith.constant 0 : index
    %c0_6 = arith.constant 0 : index
    %3 = vector.load %arg4[%c0_5, %c0_6] : memref<256x256xbf16, #tpu.memory_space<vmem>>, vector<256x256xbf16>
    %4 = arith.truncf %0 : vector<8x256xf32> to vector<8x256xbf16>
    %cst = arith.constant dense<0.000000e+00> : vector<8x256xf32>
    %5 = tpu.matmul %4, %1, %cst {dimension_numbers = #tpu.dot_dimension_numbers<[1], [0], [0], [1], [0, 0, 1, 1], [], []>} : vector<8x256xbf16>, vector<256x256xbf16>, vector<8x256xf32> -> vector<8x256xf32>
    %c0_7 = arith.constant 0 : index
    %c0_8 = arith.constant 0 : index
    %6 = vector.load %arg9[%c0_7, %c0_8] : memref<3x256xf32, #tpu.memory_space<vmem>>, vector<1x256xf32>
    %c0_9 = arith.constant 0 : index
    %c0_10 = arith.constant 0 : index
    %7 = vector.load %arg10[%c0_9, %c0_10] : memref<3x256xf32, #tpu.memory_space<vmem>>, vector<1x256xf32>
    %8 = arith.mulf %5, %5 : vector<8x256xf32>
    %9 = arith.truncf %8 : vector<8x256xf32> to vector<8x256xbf16>
    %cst_11 = arith.constant dense<0.000000e+00> : vector<8x256xf32>
    %10 = tpu.matmul %9, %3, %cst_11 {dimension_numbers = #tpu.dot_dimension_numbers<[1], [0], [0], [1], [0, 0, 1, 1], [], []>} : vector<8x256xbf16>, vector<256x256xbf16>, vector<8x256xf32> -> vector<8x256xf32>
    %cst_12 = arith.constant 9.99999974E-6 : f32
    %11 = vector.broadcast %cst_12 : f32 to vector<8x256xf32>
    %12 = arith.addf %10, %11 : vector<8x256xf32>
    %13 = math.rsqrt %12 : vector<8x256xf32>
    %14 = arith.mulf %5, %13 : vector<8x256xf32>
    %15 = vector.broadcast %6 : vector<1x256xf32> to vector<8x256xf32>
    %16 = arith.mulf %14, %15 : vector<8x256xf32>
    %17 = vector.broadcast %7 : vector<1x256xf32> to vector<8x256xf32>
    %18 = arith.addf %16, %17 : vector<8x256xf32>
    %19 = arith.truncf %18 : vector<8x256xf32> to vector<8x256xbf16>
    %c0_13 = arith.constant 0 : index
    %c0_14 = arith.constant 0 : index
    %c0_15 = arith.constant 0 : index
    %20 = vector.load %arg5[%c0_13, %c0_14, %c0_15] : memref<3x256x512xbf16, #tpu.memory_space<vmem>>, vector<1x256x512xbf16>
    %21 = vector.shape_cast %20 : vector<1x256x512xbf16> to vector<256x512xbf16>
    %cst_16 = arith.constant dense<0.000000e+00> : vector<8x512xf32>
    %22 = tpu.matmul %19, %21, %cst_16 {dimension_numbers = #tpu.dot_dimension_numbers<[1], [0], [0], [1], [0, 0, 1, 1], [], []>} : vector<8x256xbf16>, vector<256x512xbf16>, vector<8x512xf32> -> vector<8x512xf32>
    %c0_17 = arith.constant 0 : index
    %c0_18 = arith.constant 0 : index
    %23 = vector.load %arg6[%c0_17, %c0_18] : memref<3x512xf32, #tpu.memory_space<vmem>>, vector<1x512xf32>
    %24 = vector.broadcast %23 : vector<1x512xf32> to vector<8x512xf32>
    %25 = arith.addf %22, %24 : vector<8x512xf32>
    %cst_19 = arith.constant 5.000000e-01 : f32
    %26 = vector.broadcast %cst_19 : f32 to vector<8x512xf32>
    %27 = arith.mulf %26, %25 : vector<8x512xf32>
    %cst_20 = arith.constant 0.707106769 : f32
    %28 = vector.broadcast %cst_20 : f32 to vector<8x512xf32>
    %29 = arith.mulf %25, %28 : vector<8x512xf32>
    %30 = math.erf %29 : vector<8x512xf32>
    %cst_21 = arith.constant 1.000000e+00 : f32
    %31 = vector.broadcast %cst_21 : f32 to vector<8x512xf32>
    %32 = arith.addf %31, %30 : vector<8x512xf32>
    %33 = arith.mulf %27, %32 : vector<8x512xf32>
    %34 = arith.truncf %33 : vector<8x512xf32> to vector<8x512xbf16>
    %c0_22 = arith.constant 0 : index
    %c0_23 = arith.constant 0 : index
    %c0_24 = arith.constant 0 : index
    %35 = vector.load %arg7[%c0_22, %c0_23, %c0_24] : memref<3x512x256xbf16, #tpu.memory_space<vmem>>, vector<1x512x256xbf16>
    %36 = vector.shape_cast %35 : vector<1x512x256xbf16> to vector<512x256xbf16>
    %cst_25 = arith.constant dense<0.000000e+00> : vector<8x256xf32>
    %37 = tpu.matmul %34, %36, %cst_25 {dimension_numbers = #tpu.dot_dimension_numbers<[1], [0], [0], [1], [0, 0, 1, 1], [], []>} : vector<8x512xbf16>, vector<512x256xbf16>, vector<8x256xf32> -> vector<8x256xf32>
    %c0_26 = arith.constant 0 : index
    %c0_27 = arith.constant 0 : index
    %38 = vector.load %arg8[%c0_26, %c0_27] : memref<3x256xf32, #tpu.memory_space<vmem>>, vector<1x256xf32>
    %39 = vector.broadcast %38 : vector<1x256xf32> to vector<8x256xf32>
    %40 = arith.addf %37, %39 : vector<8x256xf32>
    %41 = arith.addf %40, %18 : vector<8x256xf32>
    %42 = arith.truncf %41 : vector<8x256xf32> to vector<8x256xbf16>
    %cst_28 = arith.constant dense<0.000000e+00> : vector<8x256xf32>
    %43 = tpu.matmul %42, %2, %cst_28 {dimension_numbers = #tpu.dot_dimension_numbers<[1], [0], [0], [1], [0, 0, 1, 1], [], []>} : vector<8x256xbf16>, vector<256x256xbf16>, vector<8x256xf32> -> vector<8x256xf32>
    %c0_29 = arith.constant 0 : index
    %c0_30 = arith.constant 0 : index
    %44 = vector.load %arg11[%c0_29, %c0_30] : memref<3x256xf32, #tpu.memory_space<vmem>>, vector<1x256xf32>
    %c0_31 = arith.constant 0 : index
    %c0_32 = arith.constant 0 : index
    %45 = vector.load %arg12[%c0_31, %c0_32] : memref<3x256xf32, #tpu.memory_space<vmem>>, vector<1x256xf32>
    %46 = arith.mulf %43, %43 : vector<8x256xf32>
    %47 = arith.truncf %46 : vector<8x256xf32> to vector<8x256xbf16>
    %cst_33 = arith.constant dense<0.000000e+00> : vector<8x256xf32>
    %48 = tpu.matmul %47, %3, %cst_33 {dimension_numbers = #tpu.dot_dimension_numbers<[1], [0], [0], [1], [0, 0, 1, 1], [], []>} : vector<8x256xbf16>, vector<256x256xbf16>, vector<8x256xf32> -> vector<8x256xf32>
    %cst_34 = arith.constant 9.99999974E-6 : f32
    %49 = vector.broadcast %cst_34 : f32 to vector<8x256xf32>
    %50 = arith.addf %48, %49 : vector<8x256xf32>
    %51 = math.rsqrt %50 : vector<8x256xf32>
    %52 = arith.mulf %43, %51 : vector<8x256xf32>
    %53 = vector.broadcast %44 : vector<1x256xf32> to vector<8x256xf32>
    %54 = arith.mulf %52, %53 : vector<8x256xf32>
    %55 = vector.broadcast %45 : vector<1x256xf32> to vector<8x256xf32>
    %56 = arith.addf %54, %55 : vector<8x256xf32>
    %57 = arith.truncf %56 : vector<8x256xf32> to vector<8x256xbf16>
    %cst_35 = arith.constant dense<0.000000e+00> : vector<8x256xf32>
    %58 = tpu.matmul %57, %1, %cst_35 {dimension_numbers = #tpu.dot_dimension_numbers<[1], [0], [0], [1], [0, 0, 1, 1], [], []>} : vector<8x256xbf16>, vector<256x256xbf16>, vector<8x256xf32> -> vector<8x256xf32>
    %c1 = arith.constant 1 : index
    %c0_36 = arith.constant 0 : index
    %59 = vector.load %arg9[%c1, %c0_36] : memref<3x256xf32, #tpu.memory_space<vmem>>, vector<1x256xf32>
    %c1_37 = arith.constant 1 : index
    %c0_38 = arith.constant 0 : index
    %60 = vector.load %arg10[%c1_37, %c0_38] : memref<3x256xf32, #tpu.memory_space<vmem>>, vector<1x256xf32>
    %61 = arith.mulf %58, %58 : vector<8x256xf32>
    %62 = arith.truncf %61 : vector<8x256xf32> to vector<8x256xbf16>
    %cst_39 = arith.constant dense<0.000000e+00> : vector<8x256xf32>
    %63 = tpu.matmul %62, %3, %cst_39 {dimension_numbers = #tpu.dot_dimension_numbers<[1], [0], [0], [1], [0, 0, 1, 1], [], []>} : vector<8x256xbf16>, vector<256x256xbf16>, vector<8x256xf32> -> vector<8x256xf32>
    %cst_40 = arith.constant 9.99999974E-6 : f32
    %64 = vector.broadcast %cst_40 : f32 to vector<8x256xf32>
    %65 = arith.addf %63, %64 : vector<8x256xf32>
    %66 = math.rsqrt %65 : vector<8x256xf32>
    %67 = arith.mulf %58, %66 : vector<8x256xf32>
    %68 = vector.broadcast %59 : vector<1x256xf32> to vector<8x256xf32>
    %69 = arith.mulf %67, %68 : vector<8x256xf32>
    %70 = vector.broadcast %60 : vector<1x256xf32> to vector<8x256xf32>
    %71 = arith.addf %69, %70 : vector<8x256xf32>
    %72 = arith.truncf %71 : vector<8x256xf32> to vector<8x256xbf16>
    %c1_41 = arith.constant 1 : index
    %c0_42 = arith.constant 0 : index
    %c0_43 = arith.constant 0 : index
    %73 = vector.load %arg5[%c1_41, %c0_42, %c0_43] : memref<3x256x512xbf16, #tpu.memory_space<vmem>>, vector<1x256x512xbf16>
    %74 = vector.shape_cast %73 : vector<1x256x512xbf16> to vector<256x512xbf16>
    %cst_44 = arith.constant dense<0.000000e+00> : vector<8x512xf32>
    %75 = tpu.matmul %72, %74, %cst_44 {dimension_numbers = #tpu.dot_dimension_numbers<[1], [0], [0], [1], [0, 0, 1, 1], [], []>} : vector<8x256xbf16>, vector<256x512xbf16>, vector<8x512xf32> -> vector<8x512xf32>
    %c1_45 = arith.constant 1 : index
    %c0_46 = arith.constant 0 : index
    %76 = vector.load %arg6[%c1_45, %c0_46] : memref<3x512xf32, #tpu.memory_space<vmem>>, vector<1x512xf32>
    %77 = vector.broadcast %76 : vector<1x512xf32> to vector<8x512xf32>
    %78 = arith.addf %75, %77 : vector<8x512xf32>
    %cst_47 = arith.constant 5.000000e-01 : f32
    %79 = vector.broadcast %cst_47 : f32 to vector<8x512xf32>
    %80 = arith.mulf %79, %78 : vector<8x512xf32>
    %cst_48 = arith.constant 0.707106769 : f32
    %81 = vector.broadcast %cst_48 : f32 to vector<8x512xf32>
    %82 = arith.mulf %78, %81 : vector<8x512xf32>
    %83 = math.erf %82 : vector<8x512xf32>
    %cst_49 = arith.constant 1.000000e+00 : f32
    %84 = vector.broadcast %cst_49 : f32 to vector<8x512xf32>
    %85 = arith.addf %84, %83 : vector<8x512xf32>
    %86 = arith.mulf %80, %85 : vector<8x512xf32>
    %87 = arith.truncf %86 : vector<8x512xf32> to vector<8x512xbf16>
    %c1_50 = arith.constant 1 : index
    %c0_51 = arith.constant 0 : index
    %c0_52 = arith.constant 0 : index
    %88 = vector.load %arg7[%c1_50, %c0_51, %c0_52] : memref<3x512x256xbf16, #tpu.memory_space<vmem>>, vector<1x512x256xbf16>
    %89 = vector.shape_cast %88 : vector<1x512x256xbf16> to vector<512x256xbf16>
    %cst_53 = arith.constant dense<0.000000e+00> : vector<8x256xf32>
    %90 = tpu.matmul %87, %89, %cst_53 {dimension_numbers = #tpu.dot_dimension_numbers<[1], [0], [0], [1], [0, 0, 1, 1], [], []>} : vector<8x512xbf16>, vector<512x256xbf16>, vector<8x256xf32> -> vector<8x256xf32>
    %c1_54 = arith.constant 1 : index
    %c0_55 = arith.constant 0 : index
    %91 = vector.load %arg8[%c1_54, %c0_55] : memref<3x256xf32, #tpu.memory_space<vmem>>, vector<1x256xf32>
    %92 = vector.broadcast %91 : vector<1x256xf32> to vector<8x256xf32>
    %93 = arith.addf %90, %92 : vector<8x256xf32>
    %94 = arith.addf %93, %71 : vector<8x256xf32>
    %95 = arith.truncf %94 : vector<8x256xf32> to vector<8x256xbf16>
    %cst_56 = arith.constant dense<0.000000e+00> : vector<8x256xf32>
    %96 = tpu.matmul %95, %2, %cst_56 {dimension_numbers = #tpu.dot_dimension_numbers<[1], [0], [0], [1], [0, 0, 1, 1], [], []>} : vector<8x256xbf16>, vector<256x256xbf16>, vector<8x256xf32> -> vector<8x256xf32>
    %c1_57 = arith.constant 1 : index
    %c0_58 = arith.constant 0 : index
    %97 = vector.load %arg11[%c1_57, %c0_58] : memref<3x256xf32, #tpu.memory_space<vmem>>, vector<1x256xf32>
    %c1_59 = arith.constant 1 : index
    %c0_60 = arith.constant 0 : index
    %98 = vector.load %arg12[%c1_59, %c0_60] : memref<3x256xf32, #tpu.memory_space<vmem>>, vector<1x256xf32>
    %99 = arith.mulf %96, %96 : vector<8x256xf32>
    %100 = arith.truncf %99 : vector<8x256xf32> to vector<8x256xbf16>
    %cst_61 = arith.constant dense<0.000000e+00> : vector<8x256xf32>
    %101 = tpu.matmul %100, %3, %cst_61 {dimension_numbers = #tpu.dot_dimension_numbers<[1], [0], [0], [1], [0, 0, 1, 1], [], []>} : vector<8x256xbf16>, vector<256x256xbf16>, vector<8x256xf32> -> vector<8x256xf32>
    %cst_62 = arith.constant 9.99999974E-6 : f32
    %102 = vector.broadcast %cst_62 : f32 to vector<8x256xf32>
    %103 = arith.addf %101, %102 : vector<8x256xf32>
    %104 = math.rsqrt %103 : vector<8x256xf32>
    %105 = arith.mulf %96, %104 : vector<8x256xf32>
    %106 = vector.broadcast %97 : vector<1x256xf32> to vector<8x256xf32>
    %107 = arith.mulf %105, %106 : vector<8x256xf32>
    %108 = vector.broadcast %98 : vector<1x256xf32> to vector<8x256xf32>
    %109 = arith.addf %107, %108 : vector<8x256xf32>
    %110 = arith.truncf %109 : vector<8x256xf32> to vector<8x256xbf16>
    %cst_63 = arith.constant dense<0.000000e+00> : vector<8x256xf32>
    %111 = tpu.matmul %110, %1, %cst_63 {dimension_numbers = #tpu.dot_dimension_numbers<[1], [0], [0], [1], [0, 0, 1, 1], [], []>} : vector<8x256xbf16>, vector<256x256xbf16>, vector<8x256xf32> -> vector<8x256xf32>
    %c2 = arith.constant 2 : index
    %c0_64 = arith.constant 0 : index
    %112 = vector.load %arg9[%c2, %c0_64] : memref<3x256xf32, #tpu.memory_space<vmem>>, vector<1x256xf32>
    %c2_65 = arith.constant 2 : index
    %c0_66 = arith.constant 0 : index
    %113 = vector.load %arg10[%c2_65, %c0_66] : memref<3x256xf32, #tpu.memory_space<vmem>>, vector<1x256xf32>
    %114 = arith.mulf %111, %111 : vector<8x256xf32>
    %115 = arith.truncf %114 : vector<8x256xf32> to vector<8x256xbf16>
    %cst_67 = arith.constant dense<0.000000e+00> : vector<8x256xf32>
    %116 = tpu.matmul %115, %3, %cst_67 {dimension_numbers = #tpu.dot_dimension_numbers<[1], [0], [0], [1], [0, 0, 1, 1], [], []>} : vector<8x256xbf16>, vector<256x256xbf16>, vector<8x256xf32> -> vector<8x256xf32>
    %cst_68 = arith.constant 9.99999974E-6 : f32
    %117 = vector.broadcast %cst_68 : f32 to vector<8x256xf32>
    %118 = arith.addf %116, %117 : vector<8x256xf32>
    %119 = math.rsqrt %118 : vector<8x256xf32>
    %120 = arith.mulf %111, %119 : vector<8x256xf32>
    %121 = vector.broadcast %112 : vector<1x256xf32> to vector<8x256xf32>
    %122 = arith.mulf %120, %121 : vector<8x256xf32>
    %123 = vector.broadcast %113 : vector<1x256xf32> to vector<8x256xf32>
    %124 = arith.addf %122, %123 : vector<8x256xf32>
    %125 = arith.truncf %124 : vector<8x256xf32> to vector<8x256xbf16>
    %c2_69 = arith.constant 2 : index
    %c0_70 = arith.constant 0 : index
    %c0_71 = arith.constant 0 : index
    %126 = vector.load %arg5[%c2_69, %c0_70, %c0_71] : memref<3x256x512xbf16, #tpu.memory_space<vmem>>, vector<1x256x512xbf16>
    %127 = vector.shape_cast %126 : vector<1x256x512xbf16> to vector<256x512xbf16>
    %cst_72 = arith.constant dense<0.000000e+00> : vector<8x512xf32>
    %128 = tpu.matmul %125, %127, %cst_72 {dimension_numbers = #tpu.dot_dimension_numbers<[1], [0], [0], [1], [0, 0, 1, 1], [], []>} : vector<8x256xbf16>, vector<256x512xbf16>, vector<8x512xf32> -> vector<8x512xf32>
    %c2_73 = arith.constant 2 : index
    %c0_74 = arith.constant 0 : index
    %129 = vector.load %arg6[%c2_73, %c0_74] : memref<3x512xf32, #tpu.memory_space<vmem>>, vector<1x512xf32>
    %130 = vector.broadcast %129 : vector<1x512xf32> to vector<8x512xf32>
    %131 = arith.addf %128, %130 : vector<8x512xf32>
    %cst_75 = arith.constant 5.000000e-01 : f32
    %132 = vector.broadcast %cst_75 : f32 to vector<8x512xf32>
    %133 = arith.mulf %132, %131 : vector<8x512xf32>
    %cst_76 = arith.constant 0.707106769 : f32
    %134 = vector.broadcast %cst_76 : f32 to vector<8x512xf32>
    %135 = arith.mulf %131, %134 : vector<8x512xf32>
    %136 = math.erf %135 : vector<8x512xf32>
    %cst_77 = arith.constant 1.000000e+00 : f32
    %137 = vector.broadcast %cst_77 : f32 to vector<8x512xf32>
    %138 = arith.addf %137, %136 : vector<8x512xf32>
    %139 = arith.mulf %133, %138 : vector<8x512xf32>
    %140 = arith.truncf %139 : vector<8x512xf32> to vector<8x512xbf16>
    %c2_78 = arith.constant 2 : index
    %c0_79 = arith.constant 0 : index
    %c0_80 = arith.constant 0 : index
    %141 = vector.load %arg7[%c2_78, %c0_79, %c0_80] : memref<3x512x256xbf16, #tpu.memory_space<vmem>>, vector<1x512x256xbf16>
    %142 = vector.shape_cast %141 : vector<1x512x256xbf16> to vector<512x256xbf16>
    %cst_81 = arith.constant dense<0.000000e+00> : vector<8x256xf32>
    %143 = tpu.matmul %140, %142, %cst_81 {dimension_numbers = #tpu.dot_dimension_numbers<[1], [0], [0], [1], [0, 0, 1, 1], [], []>} : vector<8x512xbf16>, vector<512x256xbf16>, vector<8x256xf32> -> vector<8x256xf32>
    %c2_82 = arith.constant 2 : index
    %c0_83 = arith.constant 0 : index
    %144 = vector.load %arg8[%c2_82, %c0_83] : memref<3x256xf32, #tpu.memory_space<vmem>>, vector<1x256xf32>
    %145 = vector.broadcast %144 : vector<1x256xf32> to vector<8x256xf32>
    %146 = arith.addf %143, %145 : vector<8x256xf32>
    %147 = arith.addf %146, %124 : vector<8x256xf32>
    %148 = arith.truncf %147 : vector<8x256xf32> to vector<8x256xbf16>
    %cst_84 = arith.constant dense<0.000000e+00> : vector<8x256xf32>
    %149 = tpu.matmul %148, %2, %cst_84 {dimension_numbers = #tpu.dot_dimension_numbers<[1], [0], [0], [1], [0, 0, 1, 1], [], []>} : vector<8x256xbf16>, vector<256x256xbf16>, vector<8x256xf32> -> vector<8x256xf32>
    %c2_85 = arith.constant 2 : index
    %c0_86 = arith.constant 0 : index
    %150 = vector.load %arg11[%c2_85, %c0_86] : memref<3x256xf32, #tpu.memory_space<vmem>>, vector<1x256xf32>
    %c2_87 = arith.constant 2 : index
    %c0_88 = arith.constant 0 : index
    %151 = vector.load %arg12[%c2_87, %c0_88] : memref<3x256xf32, #tpu.memory_space<vmem>>, vector<1x256xf32>
    %152 = arith.mulf %149, %149 : vector<8x256xf32>
    %153 = arith.truncf %152 : vector<8x256xf32> to vector<8x256xbf16>
    %cst_89 = arith.constant dense<0.000000e+00> : vector<8x256xf32>
    %154 = tpu.matmul %153, %3, %cst_89 {dimension_numbers = #tpu.dot_dimension_numbers<[1], [0], [0], [1], [0, 0, 1, 1], [], []>} : vector<8x256xbf16>, vector<256x256xbf16>, vector<8x256xf32> -> vector<8x256xf32>
    %cst_90 = arith.constant 9.99999974E-6 : f32
    %155 = vector.broadcast %cst_90 : f32 to vector<8x256xf32>
    %156 = arith.addf %154, %155 : vector<8x256xf32>
    %157 = math.rsqrt %156 : vector<8x256xf32>
    %158 = arith.mulf %149, %157 : vector<8x256xf32>
    %159 = vector.broadcast %150 : vector<1x256xf32> to vector<8x256xf32>
    %160 = arith.mulf %158, %159 : vector<8x256xf32>
    %161 = vector.broadcast %151 : vector<1x256xf32> to vector<8x256xf32>
    %162 = arith.addf %160, %161 : vector<8x256xf32>
    %c0_91 = arith.constant 0 : index
    %c0_92 = arith.constant 0 : index
    %163 = vector.load %arg13[%c0_91, %c0_92] : memref<8x256xf32, #tpu.memory_space<vmem>>, vector<8x256xf32>
    tpu.vector_store %arg13[%c0_91, %c0_92], %162 {strides = array<i32>} : memref<8x256xf32, #tpu.memory_space<vmem>>, vector<8x256xf32>,
    return
  }
  func.func @transform_0(%arg0: i32) -> (i32, i32) {
    %c0_i32 = arith.constant 0 : i32
    %c0_i32_0 = arith.constant 0 : i32
    return %arg0, %c0_i32 : i32, i32
  }
  func.func @transform_1(%arg0: i32) -> (i32, i32) {
    %c0_i32 = arith.constant 0 : i32
    %c0_i32_0 = arith.constant 0 : i32
    %c0_i32_1 = arith.constant 0 : i32
    return %c0_i32, %c0_i32_0 : i32, i32
  }
  func.func @transform_2(%arg0: i32) -> (i32, i32) {
    %c0_i32 = arith.constant 0 : i32
    %c0_i32_0 = arith.constant 0 : i32
    %c0_i32_1 = arith.constant 0 : i32
    return %c0_i32, %c0_i32_0 : i32, i32
  }
  func.func @transform_3(%arg0: i32) -> (i32, i32) {
    %c0_i32 = arith.constant 0 : i32
    %c0_i32_0 = arith.constant 0 : i32
    %c0_i32_1 = arith.constant 0 : i32
    return %c0_i32, %c0_i32_0 : i32, i32
  }
  func.func @transform_4(%arg0: i32) -> (i32, i32, i32) {
    %c0_i32 = arith.constant 0 : i32
    %c0_i32_0 = arith.constant 0 : i32
    %c0_i32_1 = arith.constant 0 : i32
    %c0_i32_2 = arith.constant 0 : i32
    return %c0_i32, %c0_i32_0, %c0_i32_1 : i32, i32, i32
  }
  func.func @transform_5(%arg0: i32) -> (i32, i32) {
    %c0_i32 = arith.constant 0 : i32
    %c0_i32_0 = arith.constant 0 : i32
    %c0_i32_1 = arith.constant 0 : i32
    return %c0_i32, %c0_i32_0 : i32, i32
  }
  func.func @transform_6(%arg0: i32) -> (i32, i32, i32) {
    %c0_i32 = arith.constant 0 : i32
    %c0_i32_0 = arith.constant 0 : i32
    %c0_i32_1 = arith.constant 0 : i32
    %c0_i32_2 = arith.constant 0 : i32
    return %c0_i32, %c0_i32_0, %c0_i32_1 : i32, i32, i32
  }
  func.func @transform_7(%arg0: i32) -> (i32, i32) {
    %c0_i32 = arith.constant 0 : i32
    %c0_i32_0 = arith.constant 0 : i32
    %c0_i32_1 = arith.constant 0 : i32
    return %c0_i32, %c0_i32_0 : i32, i32
  }
  func.func @transform_8(%arg0: i32) -> (i32, i32) {
    %c0_i32 = arith.constant 0 : i32
    %c0_i32_0 = arith.constant 0 : i32
    %c0_i32_1 = arith.constant 0 : i32
    return %c0_i32, %c0_i32_0 : i32, i32
  }
  func.func @transform_9(%arg0: i32) -> (i32, i32) {
    %c0_i32 = arith.constant 0 : i32
    %c0_i32_0 = arith.constant 0 : i32
    %c0_i32_1 = arith.constant 0 : i32
    return %c0_i32, %c0_i32_0 : i32, i32
  }
  func.func @transform_10(%arg0: i32) -> (i32, i32) {
    %c0_i32 = arith.constant 0 : i32
    %c0_i32_0 = arith.constant 0 : i32
    %c0_i32_1 = arith.constant 0 : i32
    return %c0_i32, %c0_i32_0 : i32, i32
  }
  func.func @transform_11(%arg0: i32) -> (i32, i32) {
    %c0_i32 = arith.constant 0 : i32
    %c0_i32_0 = arith.constant 0 : i32
    %c0_i32_1 = arith.constant 0 : i32
    return %c0_i32, %c0_i32_0 : i32, i32
  }
  func.func @transform_12(%arg0: i32) -> (i32, i32) {
    %c0_i32 = arith.constant 0 : i32
    %c0_i32_0 = arith.constant 0 : i32
    return %arg0, %c0_i32 : i32, i32
  }
}

</mosaic_0001>

<bundles_post_ra>
// kernel: tpu_custom_call.1
= control target key start
LH: loop header
LB: loop body
LE: loop exit
PB: predicated region body
PF: predicated region fallthrough
CT: control target
= control target key end

     0   :  { %17 = vsyncpa [#allocation3], 0  ;;  %s6771_s0 = inlined_call_operand.hbm [shape: f32[8,256], index: 0, kind: input, shape index: {}]   ;;  %s6772_s1 = inlined_call_operand.hbm [shape: bf16[256,256], index: 1, kind: input, shape index: {}]   ;;  %s6773_s2 = inlined_call_operand.hbm [shape: bf16[256,256], index: 2, kind: input, shape index: {}]   ;;  %s6774_s3 = inlined_call_operand.hbm [shape: bf16[256,256], index: 3, kind: input, shape index: {}]   ;;  %s6775_s4 = inlined_call_operand.hbm [shape: bf16[3,256,512], index: 4, kind: input, shape index: {}]   ;;  %s6776_s5 = inlined_call_operand.vmem [shape: f32[3,512], index: 5, kind: input, shape index: {}]   ;;  %s6777_s6 = inlined_call_operand.hbm [shape: bf16[3,512,256], index: 6, kind: input, shape index: {}]   ;;  %s6778_s7 = inlined_call_operand.vmem [shape: f32[3,256], index: 7, kind: input, shape index: {}]   ;;  %s6779_s8 = inlined_call_operand.hbm [shape: f32[3,256], index: 8, kind: input, shape index: {}]   ;;  %s6780_s9 = inlined_call_operand.vmem [shape: f32[3,256], index: 9, kind: input, shape index: {}]   ;;  %s6781_s10 = inlined_call_operand.hbm [shape: f32[3,256], index: 10, kind: input, shape index: {}]   ;;  %s6782_s11 = inlined_call_operand.vmem [shape: f32[3,256], index: 11, kind: input, shape index: {}]   ;;  %s6783_s12 = inlined_call_operand.hbm [shape: f32[8,256], index: 12, kind: output, shape index: {}]  }
   0x1   :  { %18 = vsyncpa [#allocation6], 0 }
   0x2   :  { %19 = vsyncpa [#allocation9], 0 }
   0x3   :  { %20 = vsyncpa [#allocation12], 0 }
   0x4   :  { %21 = vsyncpa [#allocation15], 0 }
   0x5   :  { %22 = vsyncpa [#allocation4], 0  ;;  %s6165_s21 = smov [#allocation5]   ;;  %s5955_s25 = scalar_lea.hbm %s6772_s1, 4096 }
   0x6   :  { %s38_s22 = sshll.u32 %s6165_s21, 4  ;;  %p5956_p0 = scmp.ne.s32.totalorder %s6772_s1, %s5955_s25  ;;  %s39_s22 = int_to_ptr.vmem [resolvable:$true] %s38_s22 }
   0x7   :  { %p5959_p1 = scmp.lt.u32.totalorder %s5955_s25, %s6772_s1 }
   0x9   :  { %p5961_p2 = pnand %p5959_p1, %p5956_p0 }
   0xb   :  { %5964 = shalt.err (!%p5961_p2)
}
   0xc   :  { %s5965_s30 = scalar_lea.vmem %s39_s22, 4096  ;;  %p5970_p4 = scmp.lt.s32.totalorder %s39_s22, %s39_s22 }
   0xd   :  { %p5966_p3 = scmp.ne.s32.totalorder %s39_s22, %s5965_s30  ;;  %p5971_p5 = scmp.lt.s32.totalorder %s5965_s30, %s5965_s30 }
   0xf   :  { %p5972_p6 = por %p5971_p5, %p5970_p4 }
  0x11   :  { %p5973_p7 = pnand %p5972_p6, %p5966_p3 }
  0x13   :  { %5976 = shalt.err (!%p5973_p7)
}
  0x14   :  { %s6166_s13 = smov 128   ;;  %s6167_s14 = smov 8  }
  0x15   :  { %44 = dma.hbm_to_vmem [thread:$0]  %s6772_s1, 4096, %s39_s22, [#allocation6], %s6166_s13, %s6166_s13, %s6167_s14  }
  0x16   :  { %s6168_s17 = smov [#allocation8]   ;;  %s6169_s19 = smov [#allocation11]  }
  0x17   :  { %s62_s18 = sshll.u32 %s6168_s17, 4  ;;  %s88_s20 = sshll.u32 %s6169_s19, 4  ;;  %s63_s18 = int_to_ptr.vmem [resolvable:$true] %s62_s18  ;;  %s89_s20 = int_to_ptr.vmem [resolvable:$true] %s88_s20 }
  0x18   :  { %s5977_s24 = scalar_lea.hbm %s6774_s3, 4096 }
  0x19   :  { %p5978_p8 = scmp.ne.s32.totalorder %s6774_s3, %s5977_s24  ;;  %p5981_p9 = scmp.lt.u32.totalorder %s5977_s24, %s6774_s3 }
  0x1b   :  { %p5983_p10 = pnand %p5981_p9, %p5978_p8 }
  0x1d   :  { %5986 = shalt.err (!%p5983_p10)
}
  0x1e   :  { %s5987_s1 = scalar_lea.vmem %s63_s18, 4096  ;;  %p5992_p12 = scmp.lt.s32.totalorder %s63_s18, %s63_s18 }
  0x1f   :  { %p5988_p11 = scmp.ne.s32.totalorder %s63_s18, %s5987_s1  ;;  %p5993_p13 = scmp.lt.s32.totalorder %s5987_s1, %s5987_s1 }
  0x21   :  { %p5994_p0 = por %p5993_p13, %p5992_p12 }
  0x23   :  { %p5995_p1 = pnand %p5994_p0, %p5988_p11 }
  0x25   :  { %5998 = shalt.err (!%p5995_p1)
}
  0x26   :  { %68 = dma.hbm_to_vmem [thread:$0]  %s6774_s3, 4096, %s63_s18, [#allocation9], %s6166_s13, %s6166_s13, %s6167_s14  }
  0x27   :  { %s5999_s16 = scalar_lea.hbm %s6777_s6, 24576 }
  0x28   :  { %p6000_p2 = scmp.ne.s32.totalorder %s6777_s6, %s5999_s16  ;;  %p6003_p3 = scmp.lt.u32.totalorder %s5999_s16, %s6777_s6 }
  0x2a   :  { %p6005_p4 = pnand %p6003_p3, %p6000_p2 }
  0x2c   :  { %6008 = shalt.err (!%p6005_p4)
}
  0x2d   :  { %s6009_s24 = scalar_lea.vmem %s89_s20, 24576  ;;  %p6014_p6 = scmp.lt.s32.totalorder %s89_s20, %s89_s20 }
  0x2e   :  { %p6010_p5 = scmp.ne.s32.totalorder %s89_s20, %s6009_s24  ;;  %p6015_p7 = scmp.lt.s32.totalorder %s6009_s24, %s6009_s24 }
  0x30   :  { %p6016_p8 = por %p6015_p7, %p6014_p6 }
  0x32   :  { %p6017_p9 = pnand %p6016_p8, %p6010_p5 }
  0x34   :  { %6020 = shalt.err (!%p6017_p9)
}
  0x35   :  { %94 = dma.hbm_to_vmem [thread:$0]  %s6777_s6, 24576, %s89_s20, [#allocation12], %s6166_s13, %s6166_s13, %s6167_s14  }
  0x36   :  { %s6170_s25 = smov [#allocation2]   ;;  %s6171_s27 = smov [#allocation7]  }
  0x37   :  { %s29_s26 = sshll.u32 %s6170_s25, 4  ;;  %s50_s28 = sshll.u32 %s6171_s27, 4  ;;  %s30_s26 = int_to_ptr.vmem [resolvable:$true] %s29_s26  ;;  %s51_s28 = int_to_ptr.vmem [resolvable:$true] %s50_s28 }
  0x38   :  { %s6021_s29 = scalar_lea.hbm %s6771_s0, 256 }
  0x39   :  { %p6022_p10 = scmp.ne.s32.totalorder %s6771_s0, %s6021_s29  ;;  %p6025_p11 = scmp.lt.u32.totalorder %s6021_s29, %s6771_s0 }
  0x3b   :  { %p6027_p12 = pnand %p6025_p11, %p6022_p10 }
  0x3d   :  { %6030 = shalt.err (!%p6027_p12)
}
  0x3e   :  { %s6031_s6 = scalar_lea.vmem %s30_s26, 256  ;;  %p6036_p0 = scmp.lt.s32.totalorder %s30_s26, %s30_s26 }
  0x3f   :  { %p6032_p13 = scmp.ne.s32.totalorder %s30_s26, %s6031_s6  ;;  %p6037_p1 = scmp.lt.s32.totalorder %s6031_s6, %s6031_s6 }
  0x41   :  { %p6038_p2 = por %p6037_p1, %p6036_p0 }
  0x43   :  { %p6039_p3 = pnand %p6038_p2, %p6032_p13 }
  0x45   :  { %6042 = shalt.err (!%p6039_p3)
}
  0x46   :  { %32 = dma.hbm_to_vmem [thread:$0]  %s6771_s0, 256, %s30_s26, [#allocation3]  }
  0x47   :  { %s6043_s24 = scalar_lea.hbm %s6773_s2, 4096 }
  0x48   :  { %p6044_p4 = scmp.ne.s32.totalorder %s6773_s2, %s6043_s24  ;;  %p6047_p5 = scmp.lt.u32.totalorder %s6043_s24, %s6773_s2 }
  0x4a   :  { %p6049_p6 = pnand %p6047_p5, %p6044_p4 }
  0x4c   :  { %6052 = shalt.err (!%p6049_p6)
}
  0x4d   :  { %s6053_s1 = scalar_lea.vmem %s51_s28, 4096  ;;  %p6058_p8 = scmp.lt.s32.totalorder %s51_s28, %s51_s28 }
  0x4e   :  { %p6054_p7 = scmp.ne.s32.totalorder %s51_s28, %s6053_s1  ;;  %p6059_p9 = scmp.lt.s32.totalorder %s6053_s1, %s6053_s1 }
  0x50   :  { %p6060_p10 = por %p6059_p9, %p6058_p8 }
  0x52   :  { %p6061_p11 = pnand %p6060_p10, %p6054_p7 }
  0x54   :  { %6064 = shalt.err (!%p6061_p11)
}
  0x55   :  { %56 = dma.hbm_to_vmem [thread:$0]  %s6773_s2, 4096, %s51_s28, [#allocation6], %s6166_s13, %s6166_s13, %s6167_s14  }
  0x56   :  { %s6172_s22 = smov [#allocation10]   ;;  %s6065_s16 = scalar_lea.hbm %s6775_s4, 24576 }
  0x57   :  { %s74_s29 = sshll.u32 %s6172_s22, 4  ;;  %p6066_p12 = scmp.ne.s32.totalorder %s6775_s4, %s6065_s16  ;;  %s75_s29 = int_to_ptr.vmem [resolvable:$true] %s74_s29 }
  0x58   :  { %p6069_p13 = scmp.lt.u32.totalorder %s6065_s16, %s6775_s4 }
  0x5a   :  { %p6071_p0 = pnand %p6069_p13, %p6066_p12 }
  0x5c   :  { %6074 = shalt.err (!%p6071_p0)
}
  0x5d   :  { %s6075_s21 = scalar_lea.vmem %s75_s29, 24576  ;;  %p6080_p2 = scmp.lt.s32.totalorder %s75_s29, %s75_s29 }
  0x5e   :  { %p6076_p1 = scmp.ne.s32.totalorder %s75_s29, %s6075_s21  ;;  %p6081_p3 = scmp.lt.s32.totalorder %s6075_s21, %s6075_s21 }
  0x60   :  { %p6082_p4 = por %p6081_p3, %p6080_p2 }
  0x62   :  { %p6083_p5 = pnand %p6082_p4, %p6076_p1 }
  0x64   :  { %6086 = shalt.err (!%p6083_p5)
}
  0x65   :  { %s6173_s2 = smov 256   ;;  %s6174_s13 = smov 16  }
  0x66   :  { %80 = dma.hbm_to_vmem [thread:$0]  %s6775_s4, 24576, %s75_s29, [#allocation9], %s6173_s2, %s6173_s2, %s6174_s13  }
  0x67   :  { %s6175_s23 = smov [#allocation13]   ;;  %s6176_s3 = smov [#allocation14]  }
  0x68   :  { %s103_s24 = sshll.u32 %s6175_s23, 4  ;;  %s115_s18 = sshll.u32 %s6176_s3, 4  ;;  %s104_s24 = int_to_ptr.vmem [resolvable:$true] %s103_s24  ;;  %s116_s18 = int_to_ptr.vmem [resolvable:$true] %s115_s18 }
  0x69   :  { %s6087_s1 = scalar_lea.hbm %s6779_s8, 128 }
  0x6a   :  { %p6088_p6 = scmp.ne.s32.totalorder %s6779_s8, %s6087_s1  ;;  %p6091_p7 = scmp.lt.u32.totalorder %s6087_s1, %s6779_s8 }
  0x6c   :  { %p6093_p8 = pnand %p6091_p7, %p6088_p6 }
  0x6e   :  { %6096 = shalt.err (!%p6093_p8)
}
  0x6f   :  { %s6097_s4 = scalar_lea.vmem %s104_s24, 128  ;;  %p6102_p10 = scmp.lt.s32.totalorder %s104_s24, %s104_s24 }
  0x70   :  { %p6098_p9 = scmp.ne.s32.totalorder %s104_s24, %s6097_s4  ;;  %p6103_p11 = scmp.lt.s32.totalorder %s6097_s4, %s6097_s4 }
  0x72   :  { %p6104_p12 = por %p6103_p11, %p6102_p10 }
  0x74   :  { %p6105_p13 = pnand %p6104_p12, %p6098_p9 }
  0x76   :  { %6108 = shalt.err (!%p6105_p13)
}
  0x77   :  { %106 = dma.hbm_to_vmem [thread:$0]  %s6779_s8, 128, %s104_s24, [#allocation12]  }
  0x78   :  { %s6109_s6 = scalar_lea.hbm %s6781_s10, 128 }
  0x79   :  { %p6110_p0 = scmp.ne.s32.totalorder %s6781_s10, %s6109_s6  ;;  %p6113_p1 = scmp.lt.u32.totalorder %s6109_s6, %s6781_s10 }
  0x7b   :  { %p6115_p2 = pnand %p6113_p1, %p6110_p0 }
  0x7d   :  { %6118 = shalt.err (!%p6115_p2)
}
  0x7e   :  { %s6119_s13 = scalar_lea.vmem %s116_s18, 128  ;;  %p6124_p4 = scmp.lt.s32.totalorder %s116_s18, %s116_s18 }
  0x7f   :  { %p6120_p3 = scmp.ne.s32.totalorder %s116_s18, %s6119_s13  ;;  %p6125_p5 = scmp.lt.s32.totalorder %s6119_s13, %s6119_s13 }
  0x81   :  { %p6126_p6 = por %p6125_p5, %p6124_p4 }
  0x83   :  { %p6127_p7 = pnand %p6126_p6, %p6120_p3 }
  0x85   :  { %6130 = shalt.err (!%p6127_p7)
}
  0x86   :  { %118 = dma.hbm_to_vmem [thread:$0]  %s6781_s10, 128, %s116_s18, [#allocation15]  }
  0x87   :  { %6153 = dma.done.wait [#allocation3], 256  }
  0x88   :  { %6154 = vsyncadd [#allocation3], 4294967040 }
  0x89   :  { %6155 = dma.done.wait [#allocation6], 8192  }
  0x8a   :  { %6156 = vsyncadd [#allocation6], 4294959104 }
  0x8b   :  { %6157 = dma.done.wait [#allocation9], 28672  }
  0x8c   :  { %6158 = vsyncadd [#allocation9], 4294938624 }
  0x8d   :  { %6159 = dma.done.wait [#allocation12], 24704  }
  0x8e   :  { %6160 = vsyncadd [#allocation12], 4294942592 }
  0x8f   :  { %6161 = dma.done.wait [#allocation15], 128  }
  0x90   :  { %6162 = vsyncadd [#allocation15], 4294967168  ;;  %v4963_v0 = vld [vmem:[#allocation5 + $0x4] ss:$8 sps:$4 sm:$0xff]   ;;  %v4965_v1 = vld [vmem:[#allocation5] ss:$8 sps:$4 sm:$0xff]  }
  0x91   :  { %405 = vmatprep.subr.bf16.mxu0 %v4963_v0  ;;  %v4966_v2 = vld [vmem:[#allocation5 + $0x14] ss:$8 sps:$4 sm:$0xff]   ;;  %v4968_v3 = vld [vmem:[#allocation5 + $0x10] ss:$8 sps:$4 sm:$0xff]   ;;  %v4969_v4 = vld [vmem:[#allocation5 + $0x24] ss:$8 sps:$4 sm:$0xff]  }
  0x92   :  { %406 = vmatpush1.bf16.msra.mxu0 %v4965_v1  ;;  %v4971_v5 = vld [vmem:[#allocation5 + $0x20] ss:$8 sps:$4 sm:$0xff]   ;;  %v4972_v6 = vld [vmem:[#allocation5 + $0x34] ss:$8 sps:$4 sm:$0xff]   ;;  %v4974_v7 = vld [vmem:[#allocation5 + $0x30] ss:$8 sps:$4 sm:$0xff]  }
  0x93   :  { %407 = vmatprep.subr.bf16.mxu0 %v4966_v2  ;;  %v4975_v8 = vld [vmem:[#allocation5 + $0x44] ss:$8 sps:$4 sm:$0xff]   ;;  %v4977_v9 = vld [vmem:[#allocation5 + $0x40] ss:$8 sps:$4 sm:$0xff]   ;;  %v4978_v10 = vld [vmem:[#allocation5 + $0x54] ss:$8 sps:$4 sm:$0xff]  }
  0x94   :  { %v4980_v11 = vld [vmem:[#allocation5 + $0x50] ss:$8 sps:$4 sm:$0xff]   ;;  %v4981_v12 = vld [vmem:[#allocation5 + $0x64] ss:$8 sps:$4 sm:$0xff]   ;;  %v4983_v13 = vld [vmem:[#allocation5 + $0x60] ss:$8 sps:$4 sm:$0xff]  }
  0x95   :  { %v146_v14 = vld [vmem:[#allocation2 + $0x8] sm:$0xff]  ;;  %v5011_v16 = vld [vmem:[#allocation8 + $0x4] ss:$8 sps:$4 sm:$0xff]   ;;  %v5013_v17 = vld [vmem:[#allocation8] ss:$8 sps:$4 sm:$0xff]   ;;  %s6177_s21 = smov [#allocation16]  }
  0x96   :  { %408 = vmatpush1.bf16.msra.mxu0 %v4968_v3  ;;  %v244_v15 = vpack.c.bf16 %v146_v14, %v146_v14  ;;  %v4984_v18 = vld [vmem:[#allocation5 + $0x74] ss:$8 sps:$4 sm:$0xff]   ;;  %v4986_v20 = vld [vmem:[#allocation5 + $0x70] ss:$8 sps:$4 sm:$0xff]   ;;  %612 = vmatprep.subr.bf16.mxu1 %v5011_v16  ;;  %v5017_v22 = vld [vmem:[#allocation8 + $0x24] ss:$8 sps:$4 sm:$0xff]  }
  0x97   :  { %409 = vmatprep.subr.bf16.mxu0 %v4969_v4  ;;  %v5014_v19 = vld [vmem:[#allocation8 + $0x14] ss:$8 sps:$4 sm:$0xff]   ;;  %613 = vmatpush1.bf16.msra.mxu1 %v5013_v17  ;;  %v5016_v21 = vld [vmem:[#allocation8 + $0x10] ss:$8 sps:$4 sm:$0xff]   ;;  %v4987_v23 = vld [vmem:[#allocation5 + $0x84] ss:$8 sps:$4 sm:$0xff]  }
  0x98   :  { %437 = vmatprep.mubr.bf16.mxu0 %v244_v15  ;;  %614 = vmatprep.subr.bf16.mxu1 %v5014_v19  ;;  %v4989_v24 = vld [vmem:[#allocation5 + $0x80] ss:$8 sps:$4 sm:$0xff]   ;;  %v5020_v26 = vld [vmem:[#allocation8 + $0x34] ss:$8 sps:$4 sm:$0xff]   ;;  %v4992_v28 = vld [vmem:[#allocation5 + $0x90] ss:$8 sps:$4 sm:$0xff]  }
  0x99   :  { %v5019_v25 = vld [vmem:[#allocation8 + $0x20] ss:$8 sps:$4 sm:$0xff]   ;;  %v4990_v27 = vld [vmem:[#allocation5 + $0x94] ss:$8 sps:$4 sm:$0xff]   ;;  %v5022_v29 = vld [vmem:[#allocation8 + $0x30] ss:$8 sps:$4 sm:$0xff]  }
  0x9a   :  { %410 = vmatpush1.bf16.msra.mxu0 %v4971_v5  ;;  %v5023_v30 = vld [vmem:[#allocation8 + $0x44] ss:$8 sps:$4 sm:$0xff]   ;;  %v4995_v32 = vld [vmem:[#allocation5 + $0xa0] ss:$8 sps:$4 sm:$0xff]   ;;  %v5026_v34 = vld [vmem:[#allocation8 + $0x54] ss:$8 sps:$4 sm:$0xff]  }
  0x9b   :  { %411 = vmatprep.subr.bf16.mxu0 %v4972_v6  ;;  %615 = vmatpush1.bf16.msra.mxu1 %v5016_v21  ;;  %v4993_v31 = vld [vmem:[#allocation5 + $0xa4] ss:$8 sps:$4 sm:$0xff]   ;;  %v5025_v33 = vld [vmem:[#allocation8 + $0x40] ss:$8 sps:$4 sm:$0xff]   ;;  %v4996_v35 = vld [vmem:[#allocation5 + $0xb4] ss:$8 sps:$4 sm:$0xff]  }
  0x9c   :  { %616 = vmatprep.subr.bf16.mxu1 %v5017_v22  ;;  %v5028_v36 = vld [vmem:[#allocation8 + $0x50] ss:$8 sps:$4 sm:$0xff]   ;;  %v5029_v38 = vld [vmem:[#allocation8 + $0x64] ss:$8 sps:$4 sm:$0xff]   ;;  %v5031_v40 = vld [vmem:[#allocation8 + $0x60] ss:$8 sps:$4 sm:$0xff]  }
  0x9d   :  { %v4998_v37 = vld [vmem:[#allocation5 + $0xb0] ss:$8 sps:$4 sm:$0xff]   ;;  %v4999_v39 = vld [vmem:[#allocation5 + $0xc4] ss:$8 sps:$4 sm:$0xff]   ;;  %v5001_v41 = vld [vmem:[#allocation5 + $0xc0] ss:$8 sps:$4 sm:$0xff]  }
  0x9e   :  { %412 = vmatpush1.bf16.msra.mxu0 %v4974_v7  ;;  %v5032_v42 = vld [vmem:[#allocation8 + $0x74] ss:$8 sps:$4 sm:$0xff]   ;;  %v5034_v44 = vld [vmem:[#allocation8 + $0x70] ss:$8 sps:$4 sm:$0xff]   ;;  %v5035_v46 = vld [vmem:[#allocation8 + $0x84] ss:$8 sps:$4 sm:$0xff]  }
  0x9f   :  { %413 = vmatprep.subr.bf16.mxu0 %v4975_v8  ;;  %617 = vmatpush1.bf16.msra.mxu1 %v5019_v25  ;;  %v5002_v43 = vld [vmem:[#allocation5 + $0xd4] ss:$8 sps:$4 sm:$0xff]   ;;  %v5004_v45 = vld [vmem:[#allocation5 + $0xd0] ss:$8 sps:$4 sm:$0xff]   ;;  %v5005_v47 = vld [vmem:[#allocation5 + $0xe4] ss:$8 sps:$4 sm:$0xff]  }
  0xa0   :  { %618 = vmatprep.subr.bf16.mxu1 %v5020_v26  ;;  %v5037_v48 = vld [vmem:[#allocation8 + $0x80] ss:$8 sps:$4 sm:$0xff]   ;;  %v5038_v50 = vld [vmem:[#allocation8 + $0x94] ss:$8 sps:$4 sm:$0xff]   ;;  %v5040_v52 = vld [vmem:[#allocation8 + $0x90] ss:$8 sps:$4 sm:$0xff]  }
  0xa1   :  { %v5007_v49 = vld [vmem:[#allocation5 + $0xe0] ss:$8 sps:$4 sm:$0xff]   ;;  %v5008_v51 = vld [vmem:[#allocation5 + $0xf4] ss:$8 sps:$4 sm:$0xff]   ;;  %v5010_v53 = vld [vmem:[#allocation5 + $0xf0] ss:$8 sps:$4 sm:$0xff]  }
  0xa2   :  { %414 = vmatpush1.bf16.msra.mxu0 %v4977_v9  ;;  %v145_v54 = vld [vmem:[#allocation2] sm:$0xff]  ;;  %v5041_v55 = vld [vmem:[#allocation8 + $0xa4] ss:$8 sps:$4 sm:$0xff]   ;;  %v5043_v56 = vld [vmem:[#allocation8 + $0xa0] ss:$8 sps:$4 sm:$0xff]   ;;  %s4449_s2 = sshll.u32 %s6177_s21, 4  ;;  %s4450_s2 = int_to_ptr.vmem [resolvable:$true] %s4449_s2 }
  0xa3   :  { %415 = vmatprep.subr.bf16.mxu0 %v4978_v10  ;;  %619 = vmatpush1.bf16.msra.mxu1 %v5022_v29  ;;  %v5044_v57 = vld [vmem:[#allocation8 + $0xb4] ss:$8 sps:$4 sm:$0xff]   ;;  %v243_v58 = vpack.c.bf16 %v145_v54, %v145_v54  ;;  %v5046_v59 = vld [vmem:[#allocation8 + $0xb0] ss:$8 sps:$4 sm:$0xff]   ;;  %v5047_v60 = vld [vmem:[#allocation8 + $0xc4] ss:$8 sps:$4 sm:$0xff]   ;;  %p6136_p9 = scmp.lt.s32.totalorder %s4450_s2, %s4450_s2 }
  0xa4   :  { %620 = vmatprep.subr.bf16.mxu1 %v5023_v30  ;;  %v5049_v61 = vld [vmem:[#allocation8 + $0xc0] ss:$8 sps:$4 sm:$0xff]   ;;  %v5050_v62 = vld [vmem:[#allocation8 + $0xd4] ss:$8 sps:$4 sm:$0xff]   ;;  %v5052_v63 = vld [vmem:[#allocation8 + $0xd0] ss:$8 sps:$4 sm:$0xff]  }
  0xa5   :  { %v5053_v0 = vld [vmem:[#allocation8 + $0xe4] ss:$8 sps:$4 sm:$0xff]   ;;  %v5055_v1 = vld [vmem:[#allocation8 + $0xe0] ss:$8 sps:$4 sm:$0xff]   ;;  %v5056_v2 = vld [vmem:[#allocation8 + $0xf4] ss:$8 sps:$4 sm:$0xff]  }
  0xa6   :  { %416 = vmatpush1.bf16.msra.mxu0 %v4980_v11  ;;  %v5058_v3 = vld [vmem:[#allocation8 + $0xf0] ss:$8 sps:$4 sm:$0xff]   ;;  %v5061_v5 = vld [vmem:[#allocation10 + $0x4] ss:$16 sps:$4 sm:$0xff]   ;;  %v5064_v6 = vld [vmem:[#allocation10 + $0xc] ss:$16 sps:$4 sm:$0xff]  }
  0xa7   :  { %417 = vmatprep.subr.bf16.mxu0 %v4981_v12  ;;  %621 = vmatpush1.bf16.msra.mxu1 %v5025_v33  ;;  %v5059_v4 = vld [vmem:[#allocation10] ss:$16 sps:$4 sm:$0xff]   ;;  %v5067_v7 = vld [vmem:[#allocation10 + $0x24] ss:$16 sps:$4 sm:$0xff]  }
  0xa8   :  { %622 = vmatprep.subr.bf16.mxu1 %v5026_v34  ;;  %v5065_v8 = vld [vmem:[#allocation10 + $0x20] ss:$16 sps:$4 sm:$0xff]   ;;  %v5073_v9 = vld [vmem:[#allocation10 + $0x44] ss:$16 sps:$4 sm:$0xff]   ;;  %v5070_v34 = vld [vmem:[#allocation10 + $0x2c] ss:$16 sps:$4 sm:$0xff]  }
  0xa9   :  { %v5071_v10 = vld [vmem:[#allocation10 + $0x40] ss:$16 sps:$4 sm:$0xff]   ;;  %v5079_v11 = vld [vmem:[#allocation10 + $0x64] ss:$16 sps:$4 sm:$0xff]  }
  0xaa   :  { %418 = vmatpush1.bf16.msra.mxu0 %v4983_v13  ;;  %v5077_v12 = vld [vmem:[#allocation10 + $0x60] ss:$16 sps:$4 sm:$0xff]   ;;  %v5085_v13 = vld [vmem:[#allocation10 + $0x84] ss:$16 sps:$4 sm:$0xff]  }
  0xab   :  { %419 = vmatprep.subr.bf16.mxu0 %v4984_v18  ;;  %623 = vmatpush1.bf16.msra.mxu1 %v5028_v36  ;;  %v5083_v14 = vld [vmem:[#allocation10 + $0x80] ss:$16 sps:$4 sm:$0xff]   ;;  %v5091_v15 = vld [vmem:[#allocation10 + $0xa4] ss:$16 sps:$4 sm:$0xff]   ;;  %v5076_v36 = vld [vmem:[#allocation10 + $0x4c] ss:$16 sps:$4 sm:$0xff]  }
  0xac   :  { %624 = vmatprep.subr.bf16.mxu1 %v5029_v38  ;;  %v5089_v16 = vld [vmem:[#allocation10 + $0xa0] ss:$16 sps:$4 sm:$0xff]   ;;  %v5097_v17 = vld [vmem:[#allocation10 + $0xc4] ss:$16 sps:$4 sm:$0xff]   ;;  %v5082_v38 = vld [vmem:[#allocation10 + $0x6c] ss:$16 sps:$4 sm:$0xff]  }
  0xad   :  { %v5095_v18 = vld [vmem:[#allocation10 + $0xc0] ss:$16 sps:$4 sm:$0xff]   ;;  %v5103_v19 = vld [vmem:[#allocation10 + $0xe4] ss:$16 sps:$4 sm:$0xff]  }
  0xae   :  { %420 = vmatpush1.bf16.msra.mxu0 %v4986_v20  ;;  %v5101_v20 = vld [vmem:[#allocation10 + $0xe0] ss:$16 sps:$4 sm:$0xff]   ;;  %v5109_v21 = vld [vmem:[#allocation10 + $0x104] ss:$16 sps:$4 sm:$0xff]  }
  0xaf   :  { %421 = vmatprep.subr.bf16.mxu0 %v4987_v23  ;;  %625 = vmatpush1.bf16.msra.mxu1 %v5031_v40  ;;  %v5107_v22 = vld [vmem:[#allocation10 + $0x100] ss:$16 sps:$4 sm:$0xff]   ;;  %v5115_v23 = vld [vmem:[#allocation10 + $0x124] ss:$16 sps:$4 sm:$0xff]   ;;  %v5088_v40 = vld [vmem:[#allocation10 + $0x8c] ss:$16 sps:$4 sm:$0xff]  }
  0xb0   :  { %626 = vmatprep.subr.bf16.mxu1 %v5032_v42  ;;  %v5094_v42 = vld [vmem:[#allocation10 + $0xac] ss:$16 sps:$4 sm:$0xff]   ;;  %v5119_v54 = vld [vmem:[#allocation10 + $0x140] ss:$16 sps:$4 sm:$0xff]  }
  0xb2   :  { %422 = vmatpush1.bf16.msra.mxu0 %v4989_v24  ;;  %v5113_v24 = vld [vmem:[#allocation10 + $0x120] ss:$16 sps:$4 sm:$0xff]  }
  0xb3   :  { %423 = vmatprep.subr.bf16.mxu0 %v4990_v27  ;;  %627 = vmatpush1.bf16.msra.mxu1 %v5034_v44  ;;  %v5100_v44 = vld [vmem:[#allocation10 + $0xcc] ss:$16 sps:$4 sm:$0xff]  }
  0xb4   :  { %628 = vmatprep.subr.bf16.mxu1 %v5035_v46  ;;  %v5106_v46 = vld [vmem:[#allocation10 + $0xec] ss:$16 sps:$4 sm:$0xff]  }
  0xb6   :  { %424 = vmatpush1.bf16.msra.mxu0 %v4992_v28 }
  0xb7   :  { %425 = vmatprep.subr.bf16.mxu0 %v4993_v31  ;;  %629 = vmatpush1.bf16.msra.mxu1 %v5037_v48  ;;  %v5112_v48 = vld [vmem:[#allocation10 + $0x10c] ss:$16 sps:$4 sm:$0xff]  }
  0xb8   :  { %630 = vmatprep.subr.bf16.mxu1 %v5038_v50  ;;  %v5118_v50 = vld [vmem:[#allocation10 + $0x12c] ss:$16 sps:$4 sm:$0xff]  }
  0xba   :  { %426 = vmatpush1.bf16.msra.mxu0 %v4995_v32  ;;  %v5062_v32 = vld [vmem:[#allocation10 + $0x8] ss:$16 sps:$4 sm:$0xff]  }
  0xbb   :  { %427 = vmatprep.subr.bf16.mxu0 %v4996_v35  ;;  %631 = vmatpush1.bf16.msra.mxu1 %v5040_v52  ;;  %v5068_v35 = vld [vmem:[#allocation10 + $0x28] ss:$16 sps:$4 sm:$0xff]   ;;  %v5121_v52 = vld [vmem:[#allocation10 + $0x144] ss:$16 sps:$4 sm:$0xff]  }
  0xbc   :  { %632 = vmatprep.subr.bf16.mxu1 %v5041_v55  ;;  %v5122_v55 = vld [vmem:[#allocation10 + $0x148] ss:$16 sps:$4 sm:$0xff]  }
  0xbe   :  { %428 = vmatpush1.bf16.msra.mxu0 %v4998_v37  ;;  %v5074_v37 = vld [vmem:[#allocation10 + $0x48] ss:$16 sps:$4 sm:$0xff]  }
  0xbf   :  { %429 = vmatprep.subr.bf16.mxu0 %v4999_v39  ;;  %633 = vmatpush1.bf16.msra.mxu1 %v5043_v56  ;;  %v5080_v39 = vld [vmem:[#allocation10 + $0x68] ss:$16 sps:$4 sm:$0xff]   ;;  %v5127_v56 = vld [vmem:[#allocation10 + $0x164] ss:$16 sps:$4 sm:$0xff]  }
  0xc0   :  { %634 = vmatprep.subr.bf16.mxu1 %v5044_v57  ;;  %v5130_v57 = vld [vmem:[#allocation10 + $0x16c] ss:$16 sps:$4 sm:$0xff]  }
  0xc2   :  { %430 = vmatpush1.bf16.msra.mxu0 %v5001_v41  ;;  %v5086_v41 = vld [vmem:[#allocation10 + $0x88] ss:$16 sps:$4 sm:$0xff]  }
  0xc3   :  { %431 = vmatprep.subr.bf16.mxu0 %v5002_v43  ;;  %635 = vmatpush1.bf16.msra.mxu1 %v5046_v59  ;;  %v5092_v43 = vld [vmem:[#allocation10 + $0xa8] ss:$16 sps:$4 sm:$0xff]  }
  0xc4   :  { %636 = vmatprep.subr.bf16.mxu1 %v5047_v60  ;;  %v5128_v59 = vld [vmem:[#allocation10 + $0x168] ss:$16 sps:$4 sm:$0xff]   ;;  %v5133_v60 = vld [vmem:[#allocation10 + $0x184] ss:$16 sps:$4 sm:$0xff]  }
  0xc6   :  { %432 = vmatpush1.bf16.msra.mxu0 %v5004_v45  ;;  %v5098_v45 = vld [vmem:[#allocation10 + $0xc8] ss:$16 sps:$4 sm:$0xff]  }
  0xc7   :  { %433 = vmatprep.subr.bf16.mxu0 %v5005_v47  ;;  %637 = vmatpush1.bf16.msra.mxu1 %v5049_v61  ;;  %v5104_v47 = vld [vmem:[#allocation10 + $0xe8] ss:$16 sps:$4 sm:$0xff]   ;;  %v5136_v61 = vld [vmem:[#allocation10 + $0x18c] ss:$16 sps:$4 sm:$0xff]  }
  0xc8   :  { %638 = vmatprep.subr.bf16.mxu1 %v5050_v62  ;;  %v5131_v62 = vld [vmem:[#allocation10 + $0x180] ss:$16 sps:$4 sm:$0xff]  }
  0xca   :  { %434 = vmatpush1.bf16.msra.mxu0 %v5007_v49  ;;  %v5110_v49 = vld [vmem:[#allocation10 + $0x108] ss:$16 sps:$4 sm:$0xff]  }
  0xcb   :  { %435 = vmatprep.subr.bf16.mxu0 %v5008_v51  ;;  %639 = vmatpush1.bf16.msra.mxu1 %v5052_v63  ;;  %v5116_v51 = vld [vmem:[#allocation10 + $0x128] ss:$16 sps:$4 sm:$0xff]  }
  0xcc   :  { %640 = vmatprep.subr.bf16.mxu1 %v5053_v0  ;;  %v5134_v63 = vld [vmem:[#allocation10 + $0x188] ss:$16 sps:$4 sm:$0xff]   ;;  %v5139_v0 = vld [vmem:[#allocation10 + $0x1a4] ss:$16 sps:$4 sm:$0xff]  }
  0xce   :  { %436 = vmatpush1.bf16.msra.mxu0 %v5010_v53  ;;  %v5124_v53 = vld [vmem:[#allocation10 + $0x14c] ss:$16 sps:$4 sm:$0xff]  }
  0xcf   :  { %641 = vmatpush1.bf16.msra.mxu1 %v5055_v1  ;;  %1091 = vmatprep.subr.bf16.mxu0 %v5061_v5  ;;  %v5142_v1 = vld [vmem:[#allocation10 + $0x1ac] ss:$16 sps:$4 sm:$0xff]   ;;  %v5145_v5 = vld [vmem:[#allocation10 + $0x1c4] ss:$16 sps:$4 sm:$0xff]  }
  0xd0   :  { %642 = vmatprep.subr.bf16.mxu1 %v5056_v2  ;;  %v5137_v2 = vld [vmem:[#allocation10 + $0x1a0] ss:$16 sps:$4 sm:$0xff]  }
  0xd1   :  { %438 = vmatmul.mubr.bf16.vlgmr.msra.gmra.mrb[0].mxu0 %v243_v58  ;;  %v5125_v58 = vld [vmem:[#allocation10 + $0x160] ss:$16 sps:$4 sm:$0xff]  }
  0xd2   :  { %1092 = vmatpush1.bf16.msra.mxu0 %v5059_v4  ;;  %v5143_v4 = vld [vmem:[#allocation10 + $0x1c0] ss:$16 sps:$4 sm:$0xff]  }
  0xd3   :  { %643 = vmatpush1.bf16.msra.mxu1 %v5058_v3  ;;  %1093 = vmatprep.subr.bf16.mxu0 %v5067_v7  ;;  %v5140_v3 = vld [vmem:[#allocation10 + $0x1a8] ss:$16 sps:$4 sm:$0xff]   ;;  %v5148_v7 = vld [vmem:[#allocation10 + $0x1cc] ss:$16 sps:$4 sm:$0xff]  }
  0xd4   :  { %1132 = vmatprep.subr.bf16.mxu1 %v5064_v6  ;;  %v5146_v6 = vld [vmem:[#allocation10 + $0x1c8] ss:$16 sps:$4 sm:$0xff]  }
  0xd6   :  { %1094 = vmatpush1.bf16.msra.mxu0 %v5065_v8  ;;  %v5151_v8 = vld [vmem:[#allocation10 + $0x1e4] ss:$16 sps:$4 sm:$0xff]  }
  0xd7   :  { %1095 = vmatprep.subr.bf16.mxu0 %v5073_v9  ;;  %v5154_v9 = vld [vmem:[#allocation10 + $0x1ec] ss:$16 sps:$4 sm:$0xff]  }
  0xda   :  { %1096 = vmatpush1.bf16.msra.mxu0 %v5071_v10  ;;  %v5149_v10 = vld [vmem:[#allocation10 + $0x1e0] ss:$16 sps:$4 sm:$0xff]  }
  0xdb   :  { %1097 = vmatprep.subr.bf16.mxu0 %v5079_v11  ;;  %v5152_v11 = vld [vmem:[#allocation10 + $0x1e8] ss:$16 sps:$4 sm:$0xff]  }
  0xde   :  { %1098 = vmatpush1.bf16.msra.mxu0 %v5077_v12  ;;  %v5157_v12 = vld [vmem:[#allocation11 + $0x4] ss:$8 sps:$4 sm:$0xff]  }
  0xdf   :  { %1099 = vmatprep.subr.bf16.mxu0 %v5085_v13  ;;  %v5160_v13 = vld [vmem:[#allocation11 + $0x104] ss:$8 sps:$4 sm:$0xff]  }
  0xe2   :  { %1100 = vmatpush1.bf16.msra.mxu0 %v5083_v14 }
  0xe3   :  { %1101 = vmatprep.subr.bf16.mxu0 %v5091_v15  ;;  %v658_v15 = vlaneseq }
  0xe6   :  { %1102 = vmatpush1.bf16.msra.mxu0 %v5089_v16 }
  0xe7   :  { %1103 = vmatprep.subr.bf16.mxu0 %v5097_v17 }
  0xea   :  { %1104 = vmatpush1.bf16.msra.mxu0 %v5095_v18 }
  0xeb   :  { %1105 = vmatprep.subr.bf16.mxu0 %v5103_v19 }
  0xee   :  { %1106 = vmatpush1.bf16.msra.mxu0 %v5101_v20 }
  0xef   :  { %1107 = vmatprep.subr.bf16.mxu0 %v5109_v21  ;;  %v6359_v21 = vshrl.u32 %v658_v15, 7  ;;  %v5220_v15 = vld [vmem:[#allocation11 + $0x1a4] ss:$8 sps:$4 sm:$0xff]  }
  0xf2   :  { %1108 = vmatpush1.bf16.msra.mxu0 %v5107_v22  ;;  %v6362_v22 = vsub.s32 0, %v6359_v21 }
  0xf3   :  { %1109 = vmatprep.subr.bf16.mxu0 %v5115_v23  ;;  %v446_v23 = vld [vmem:[#allocation13] ss:$4 sm:$0x3] }
  0xf6   :  { %1110 = vmatpush1.bf16.msra.mxu0 %v5113_v24  ;;  %v6365_v24 = vsub.s32 1, %v6359_v21 }
  0xf7   :  { %1111 = vmatprep.subr.bf16.mxu0 %v5121_v52  ;;  %v5173_v52 = vld [vmem:[#allocation11 + $0x30] ss:$8 sps:$4 sm:$0xff]  }
  0xfa   :  { %1112 = vmatpush1.bf16.msra.mxu0 %v5119_v54  ;;  %v5181_v54 = vld [vmem:[#allocation11 + $0x44] ss:$8 sps:$4 sm:$0xff]  }
  0xfb   :  { %1113 = vmatprep.subr.bf16.mxu0 %v5127_v56  ;;  %v5179_v56 = vld [vmem:[#allocation11 + $0x40] ss:$8 sps:$4 sm:$0xff]  }
  0xfe   :  { %1114 = vmatpush1.bf16.msra.mxu0 %v5125_v58  ;;  %v5187_v58 = vld [vmem:[#allocation11 + $0x54] ss:$8 sps:$4 sm:$0xff]  }
  0xff   :  { %1115 = vmatprep.subr.bf16.mxu0 %v5133_v60  ;;  %v5185_v60 = vld [vmem:[#allocation11 + $0x50] ss:$8 sps:$4 sm:$0xff]  }
 0x102   :  { %1116 = vmatpush1.bf16.msra.mxu0 %v5131_v62  ;;  %v5193_v62 = vld [vmem:[#allocation11 + $0x64] ss:$8 sps:$4 sm:$0xff]  }
 0x103   :  { %1117 = vmatprep.subr.bf16.mxu0 %v5139_v0  ;;  %v5191_v0 = vld [vmem:[#allocation11 + $0x60] ss:$8 sps:$4 sm:$0xff]  }
 0x106   :  { %1118 = vmatpush1.bf16.msra.mxu0 %v5137_v2  ;;  %v5199_v2 = vld [vmem:[#allocation11 + $0x74] ss:$8 sps:$4 sm:$0xff]  }
 0x107   :  { %1119 = vmatprep.subr.bf16.mxu0 %v5145_v5  ;;  %v5200_v5 = vld [vmem:[#allocation11 + $0x170] ss:$8 sps:$4 sm:$0xff]  }
 0x10a   :  { %1120 = vmatpush1.bf16.msra.mxu0 %v5143_v4  ;;  %v5197_v4 = vld [vmem:[#allocation11 + $0x70] ss:$8 sps:$4 sm:$0xff]  }
 0x10b   :  { %1121 = vmatprep.subr.bf16.mxu0 %v5151_v8  ;;  %v5203_v8 = vld [vmem:[#allocation11 + $0x80] ss:$8 sps:$4 sm:$0xff]  }
 0x10e   :  { %1122 = vmatpush1.bf16.msra.mxu0 %v5149_v10  ;;  %v5211_v10 = vld [vmem:[#allocation11 + $0x94] ss:$8 sps:$4 sm:$0xff]  }
 0x10f   :  { %1593 = vmatprep.subr.bf16.mxu0 %v5157_v12  ;;  %v5209_v12 = vld [vmem:[#allocation11 + $0x90] ss:$8 sps:$4 sm:$0xff]  }
 0x1a4   :  { %v6351_v25 = vpop.f32.mrb[0].mxu0 }
 0x1a5   :  { %v448_v26 = vmul.f32 %v6351_v25, %v6351_v25  ;;  %v6355_v27 = vpop.f32.mrb[1].mxu0 }
 0x1a6   :  { %v443_v28 = vpop.f32.mrb[2].mxu0  ;;  %v449_v29 = vmul.f32 %v6355_v27, %v6355_v27 }
 0x1a7   :  { %v444_v30 = vpop.f32.mrb[3].mxu0  ;;  %v450_v33 = vpack.c.bf16 %v448_v26, %v448_v26  ;;  %v447_v26 = vld [vmem:[%s6780_s9] ss:$4 sm:$0x3]  ;;  %v661_v28 = vrot.slane %v446_v23, %v6362_v22 }
 0x1a8   :  { %v451_v31 = vpack.c.bf16 %v449_v29, %v449_v29  ;;  %v665_v30 = vrot.slane %v446_v23, %v6365_v24  ;;  %v5224_v23 = vld [vmem:[#allocation11 + $0x1b0] ss:$8 sps:$4 sm:$0xff]  }
 0x1aa   :  { %644 = vmatprep.mubr.bf16.mxu1 %v451_v31 }
 0x1ab   :  { %645 = vmatmul.mubr.bf16.vlgmr.msra.gmra.mrb[0].mxu1 %v450_v33  ;;  %v674_v33 = vrot.slane %v447_v26, %v6362_v22 }
 0x1ac   :  { %1133 = vmatpush1.bf16.msra.mxu1 %v5062_v32 }
 0x1ad   :  { %1134 = vmatprep.subr.bf16.mxu1 %v5070_v34 }
 0x1b0   :  { %1135 = vmatpush1.bf16.msra.mxu1 %v5068_v35  ;;  %v678_v35 = vrot.slane %v447_v26, %v6365_v24  ;;  %v5229_v26 = vld [vmem:[#allocation11 + $0xc4] ss:$8 sps:$4 sm:$0xff]  }
 0x1b1   :  { %1136 = vmatprep.subr.bf16.mxu1 %v5076_v36 }
 0x1b4   :  { %1137 = vmatpush1.bf16.msra.mxu1 %v5074_v37 }
 0x1b5   :  { %1138 = vmatprep.subr.bf16.mxu1 %v5082_v38 }
 0x1b8   :  { %1139 = vmatpush1.bf16.msra.mxu1 %v5080_v39 }
 0x1b9   :  { %1140 = vmatprep.subr.bf16.mxu1 %v5088_v40 }
 0x1bc   :  { %1141 = vmatpush1.bf16.msra.mxu1 %v5086_v41  ;;  %v5155_v41 = vld [vmem:[#allocation11] ss:$8 sps:$4 sm:$0xff]  }
 0x1bd   :  { %1142 = vmatprep.subr.bf16.mxu1 %v5094_v42  ;;  %v5158_v42 = vld [vmem:[#allocation11 + $0x100] ss:$8 sps:$4 sm:$0xff]  }
 0x1c0   :  { %1143 = vmatpush1.bf16.msra.mxu1 %v5092_v43  ;;  %v5163_v43 = vld [vmem:[#allocation11 + $0x14] ss:$8 sps:$4 sm:$0xff]  }
 0x1c1   :  { %1144 = vmatprep.subr.bf16.mxu1 %v5100_v44  ;;  %v5166_v44 = vld [vmem:[#allocation11 + $0x114] ss:$8 sps:$4 sm:$0xff]  }
 0x1c4   :  { %1145 = vmatpush1.bf16.msra.mxu1 %v5098_v45  ;;  %v5164_v45 = vld [vmem:[#allocation11 + $0x110] ss:$8 sps:$4 sm:$0xff]  }
 0x1c5   :  { %1146 = vmatprep.subr.bf16.mxu1 %v5106_v46  ;;  %v5169_v46 = vld [vmem:[#allocation11 + $0x24] ss:$8 sps:$4 sm:$0xff]  }
 0x1c8   :  { %1147 = vmatpush1.bf16.msra.mxu1 %v5104_v47  ;;  %v5172_v47 = vld [vmem:[#allocation11 + $0x124] ss:$8 sps:$4 sm:$0xff]  }
 0x1c9   :  { %1148 = vmatprep.subr.bf16.mxu1 %v5112_v48  ;;  %v5167_v48 = vld [vmem:[#allocation11 + $0x20] ss:$8 sps:$4 sm:$0xff]  }
 0x1cc   :  { %1149 = vmatpush1.bf16.msra.mxu1 %v5110_v49  ;;  %v5170_v49 = vld [vmem:[#allocation11 + $0x120] ss:$8 sps:$4 sm:$0xff]  }
 0x1cd   :  { %1150 = vmatprep.subr.bf16.mxu1 %v5118_v50  ;;  %v5175_v50 = vld [vmem:[#allocation11 + $0x34] ss:$8 sps:$4 sm:$0xff]  }
 0x1d0   :  { %1151 = vmatpush1.bf16.msra.mxu1 %v5116_v51  ;;  %v5178_v51 = vld [vmem:[#allocation11 + $0x134] ss:$8 sps:$4 sm:$0xff]  }
 0x1d1   :  { %1152 = vmatprep.subr.bf16.mxu1 %v5124_v53  ;;  %v5176_v53 = vld [vmem:[#allocation11 + $0x130] ss:$8 sps:$4 sm:$0xff]  }
 0x1d4   :  { %1153 = vmatpush1.bf16.msra.mxu1 %v5122_v55  ;;  %v5184_v55 = vld [vmem:[#allocation11 + $0x144] ss:$8 sps:$4 sm:$0xff]  }
 0x1d5   :  { %1154 = vmatprep.subr.bf16.mxu1 %v5130_v57  ;;  %v5182_v57 = vld [vmem:[#allocation11 + $0x140] ss:$8 sps:$4 sm:$0xff]  }
 0x1d8   :  { %1155 = vmatpush1.bf16.msra.mxu1 %v5128_v59  ;;  %v5190_v59 = vld [vmem:[#allocation11 + $0x154] ss:$8 sps:$4 sm:$0xff]  }
 0x1d9   :  { %1156 = vmatprep.subr.bf16.mxu1 %v5136_v61  ;;  %v5188_v61 = vld [vmem:[#allocation11 + $0x150] ss:$8 sps:$4 sm:$0xff]  }
 0x1dc   :  { %1157 = vmatpush1.bf16.msra.mxu1 %v5134_v63  ;;  %v5196_v63 = vld [vmem:[#allocation11 + $0x164] ss:$8 sps:$4 sm:$0xff]  }
 0x1dd   :  { %1158 = vmatprep.subr.bf16.mxu1 %v5142_v1  ;;  %v5194_v1 = vld [vmem:[#allocation11 + $0x160] ss:$8 sps:$4 sm:$0xff]  }
 0x1e0   :  { %1159 = vmatpush1.bf16.msra.mxu1 %v5140_v3  ;;  %v5202_v3 = vld [vmem:[#allocation11 + $0x174] ss:$8 sps:$4 sm:$0xff]  }
 0x1e1   :  { %1160 = vmatprep.subr.bf16.mxu1 %v5148_v7  ;;  %v5208_v7 = vld [vmem:[#allocation11 + $0x184] ss:$8 sps:$4 sm:$0xff]  }
 0x1e4   :  { %1161 = vmatpush1.bf16.msra.mxu1 %v5146_v6  ;;  %v5205_v6 = vld [vmem:[#allocation11 + $0x84] ss:$8 sps:$4 sm:$0xff]  }
 0x1e5   :  { %1162 = vmatprep.subr.bf16.mxu1 %v5154_v9  ;;  %v5206_v9 = vld [vmem:[#allocation11 + $0x180] ss:$8 sps:$4 sm:$0xff]  }
 0x1e8   :  { %1163 = vmatpush1.bf16.msra.mxu1 %v5152_v11  ;;  %v5214_v11 = vld [vmem:[#allocation11 + $0x194] ss:$8 sps:$4 sm:$0xff]  }
 0x1e9   :  { %1634 = vmatprep.subr.bf16.mxu1 %v5160_v13  ;;  %v5212_v13 = vld [vmem:[#allocation11 + $0x190] ss:$8 sps:$4 sm:$0xff]  }
 0x27e   :  { %v646_v14 = vpop.f32.mrb[0].mxu1 }
 0x27f   :  { %v647_v16 = vadd.f32 1e-05, %v646_v14  ;;  %v648_v17 = vpop.f32.mrb[1].mxu1  ;;  %v5217_v14 = vld [vmem:[#allocation11 + $0xa4] ss:$8 sps:$4 sm:$0xff]  }
 0x280   :  { %v649_v18 = vadd.f32 1e-05, %v648_v17  ;;  %v650_v19 = vpop.f32.mrb[2].mxu1  ;;  %v5218_v17 = vld [vmem:[#allocation11 + $0x1a0] ss:$8 sps:$4 sm:$0xff]  }
 0x281   :  { %5683 = vrsqrt.f32 %v647_v16  ;;  %v651_v20 = vpop.f32.mrb[3].mxu1  ;;  %v5215_v16 = vld [vmem:[#allocation11 + $0xa0] ss:$8 sps:$4 sm:$0xff]   ;;  %v5226_v19 = vld [vmem:[#allocation11 + $0x1b4] ss:$8 sps:$4 sm:$0xff]  }
 0x282   :  { %5685 = vrsqrt.f32 %v649_v18  ;;  %v5223_v18 = vld [vmem:[#allocation11 + $0xb4] ss:$8 sps:$4 sm:$0xff]   ;;  %v5221_v20 = vld [vmem:[#allocation11 + $0xb0] ss:$8 sps:$4 sm:$0xff]  }
 0x28b   :  { %v5684_v29 = vpop.eup %5683 }
 0x28c   :  { %v5686_v31 = vpop.eup %5685  ;;  %v655_v32 = vmul.f32 %v5684_v29, %v6351_v25  ;;  %v5227_v29 = vld [vmem:[#allocation11 + $0xc0] ss:$8 sps:$4 sm:$0xff]  }
 0x28d   :  { %v656_v34 = vmul.f32 %v5686_v31, %v6355_v27  ;;  %v5161_v27 = vld [vmem:[#allocation11 + $0x10] ss:$8 sps:$4 sm:$0xff]   ;;  %v5235_v31 = vld [vmem:[#allocation11 + $0xd4] ss:$8 sps:$4 sm:$0xff]  }
 0x28e   :  { %v668_v36 = vmul.f32 %v661_v28, %v655_v32  ;;  %v5232_v28 = vld [vmem:[#allocation11 + $0x1c4] ss:$8 sps:$4 sm:$0xff]   ;;  %v5238_v32 = vld [vmem:[#allocation11 + $0x1d4] ss:$8 sps:$4 sm:$0xff]  }
 0x28f   :  { %v669_v37 = vmul.f32 %v665_v30, %v656_v34  ;;  %v5230_v30 = vld [vmem:[#allocation11 + $0x1c0] ss:$8 sps:$4 sm:$0xff]   ;;  %v5236_v34 = vld [vmem:[#allocation11 + $0x1d0] ss:$8 sps:$4 sm:$0xff]  }
 0x290   :  { %v6376_v38 = vadd.f32 %v674_v33, %v668_v36  ;;  %v5233_v33 = vld [vmem:[#allocation11 + $0xd0] ss:$8 sps:$4 sm:$0xff]   ;;  %v5244_v36 = vld [vmem:[#allocation11 + $0x1e4] ss:$8 sps:$4 sm:$0xff]  }
 0x291   :  { %v6378_v39 = vadd.f32 %v678_v35, %v669_v37  ;;  %v5241_v35 = vld [vmem:[#allocation11 + $0xe4] ss:$8 sps:$4 sm:$0xff]   ;;  %v5239_v37 = vld [vmem:[#allocation11 + $0xe0] ss:$8 sps:$4 sm:$0xff]  }
 0x292   :  { %v683_v25 = vpack.c.bf16 %v6376_v38, %v6376_v38 }
 0x293   :  { %v684_v40 = vpack.c.bf16 %v6378_v39, %v6378_v39 }
 0x295   :  { %1123 = vmatprep.mubr.bf16.mxu0 %v684_v40  ;;  %1164 = vmatprep.mubr.bf16.mxu1 %v684_v40  ;;  %v5242_v40 = vld [vmem:[#allocation11 + $0x1e0] ss:$8 sps:$4 sm:$0xff]  }
 0x296   :  { %1124 = vmatmul.mubr.bf16.vlgmr.msra.gmra.mrb[4].mxu0 %v683_v25  ;;  %1165 = vmatmul.mubr.bf16.vlgmr.msra.gmra.mrb[4].mxu1 %v683_v25  ;;  %v5245_v25 = vld [vmem:[#allocation11 + $0xf0] ss:$8 sps:$4 sm:$0xff]  }
 0x297   :  { %1594 = vmatpush1.bf16.msra.mxu0 %v5155_v41  ;;  %1635 = vmatpush1.bf16.msra.mxu1 %v5158_v42  ;;  %v5247_v41 = vld [vmem:[#allocation11 + $0xf4] ss:$8 sps:$4 sm:$0xff]  }
 0x298   :  { %1595 = vmatprep.subr.bf16.mxu0 %v5163_v43  ;;  %1636 = vmatprep.subr.bf16.mxu1 %v5166_v44  ;;  %v5250_v42 = vld [vmem:[#allocation11 + $0x1f4] ss:$8 sps:$4 sm:$0xff]   ;;  %v5248_v43 = vld [vmem:[#allocation11 + $0x1f0] ss:$8 sps:$4 sm:$0xff]   ;;  %v6384_v44 = vld [vmem:[#allocation8 + $0x4] ss:$8 sps:$4 sm:$0xff]  }
 0x29b   :  { %1596 = vmatpush1.bf16.msra.mxu0 %v5161_v27  ;;  %1637 = vmatpush1.bf16.msra.mxu1 %v5164_v45  ;;  %v5253_v27 = vld [vmem:[#allocation7 + $0x4] ss:$8 sps:$4 sm:$0xff]   ;;  %v6388_v45 = vsub.s32 2, %v6359_v21 }
 0x29c   :  { %1597 = vmatprep.subr.bf16.mxu0 %v5169_v46  ;;  %1638 = vmatprep.subr.bf16.mxu1 %v5172_v47  ;;  %v749_v46 = vld [vmem:[%s6776_s5] ss:$4 sm:$0xf]  ;;  %v6394_v47 = vsub.s32 3, %v6359_v21 }
 0x29f   :  { %1598 = vmatpush1.bf16.msra.mxu0 %v5167_v48  ;;  %1639 = vmatpush1.bf16.msra.mxu1 %v5170_v49  ;;  %v754_v48 = vrot.slane %v749_v46, %v6362_v22  ;;  %v762_v49 = vrot.slane %v749_v46, %v6388_v45 }
 0x2a0   :  { %1599 = vmatprep.subr.bf16.mxu0 %v5175_v50  ;;  %1640 = vmatprep.subr.bf16.mxu1 %v5178_v51  ;;  %v758_v50 = vrot.slane %v749_v46, %v6365_v24  ;;  %v766_v51 = vrot.slane %v749_v46, %v6394_v47  ;;  %v6418_v46 = vld [vmem:[#allocation8 + $0x30] ss:$8 sps:$4 sm:$0xff]  }
 0x2a3   :  { %1600 = vmatpush1.bf16.msra.mxu0 %v5173_v52  ;;  %1641 = vmatpush1.bf16.msra.mxu1 %v5176_v53 }
 0x2a4   :  { %1601 = vmatprep.subr.bf16.mxu0 %v5181_v54  ;;  %1642 = vmatprep.subr.bf16.mxu1 %v5184_v55 }
 0x2a7   :  { %1602 = vmatpush1.bf16.msra.mxu0 %v5179_v56  ;;  %1643 = vmatpush1.bf16.msra.mxu1 %v5182_v57 }
 0x2a8   :  { %1603 = vmatprep.subr.bf16.mxu0 %v5187_v58  ;;  %1644 = vmatprep.subr.bf16.mxu1 %v5190_v59 }
 0x2ab   :  { %1604 = vmatpush1.bf16.msra.mxu0 %v5185_v60  ;;  %1645 = vmatpush1.bf16.msra.mxu1 %v5188_v61 }
 0x2ac   :  { %1605 = vmatprep.subr.bf16.mxu0 %v5193_v62  ;;  %1646 = vmatprep.subr.bf16.mxu1 %v5196_v63 }
 0x2af   :  { %1606 = vmatpush1.bf16.msra.mxu0 %v5191_v0  ;;  %1647 = vmatpush1.bf16.msra.mxu1 %v5194_v1 }
 0x2b0   :  { %1607 = vmatprep.subr.bf16.mxu0 %v5199_v2  ;;  %1648 = vmatprep.subr.bf16.mxu1 %v5202_v3 }
 0x2b3   :  { %1608 = vmatpush1.bf16.msra.mxu0 %v5197_v4  ;;  %1649 = vmatpush1.bf16.msra.mxu1 %v5200_v5 }
 0x2b4   :  { %1609 = vmatprep.subr.bf16.mxu0 %v5205_v6  ;;  %1650 = vmatprep.subr.bf16.mxu1 %v5208_v7 }
 0x2b7   :  { %1610 = vmatpush1.bf16.msra.mxu0 %v5203_v8  ;;  %1651 = vmatpush1.bf16.msra.mxu1 %v5206_v9 }
 0x2b8   :  { %1611 = vmatprep.subr.bf16.mxu0 %v5211_v10  ;;  %1652 = vmatprep.subr.bf16.mxu1 %v5214_v11 }
 0x2bb   :  { %1612 = vmatpush1.bf16.msra.mxu0 %v5209_v12  ;;  %1653 = vmatpush1.bf16.msra.mxu1 %v5212_v13 }
 0x2bc   :  { %1613 = vmatprep.subr.bf16.mxu0 %v5217_v14  ;;  %1654 = vmatprep.subr.bf16.mxu1 %v5220_v15 }
 0x2bf   :  { %1614 = vmatpush1.bf16.msra.mxu0 %v5215_v16  ;;  %1655 = vmatpush1.bf16.msra.mxu1 %v5218_v17 }
 0x2c0   :  { %1615 = vmatprep.subr.bf16.mxu0 %v5223_v18  ;;  %1656 = vmatprep.subr.bf16.mxu1 %v5226_v19 }
 0x2c3   :  { %1616 = vmatpush1.bf16.msra.mxu0 %v5221_v20  ;;  %1657 = vmatpush1.bf16.msra.mxu1 %v5224_v23  ;;  %v5251_v20 = vld [vmem:[#allocation7] ss:$8 sps:$4 sm:$0xff]  }
 0x2c4   :  { %1617 = vmatprep.subr.bf16.mxu0 %v5229_v26  ;;  %1658 = vmatprep.subr.bf16.mxu1 %v5232_v28  ;;  %v5256_v28 = vld [vmem:[#allocation7 + $0x14] ss:$8 sps:$4 sm:$0xff]  }
 0x2c7   :  { %1618 = vmatpush1.bf16.msra.mxu0 %v5227_v29  ;;  %1659 = vmatpush1.bf16.msra.mxu1 %v5230_v30  ;;  %v5254_v30 = vld [vmem:[#allocation7 + $0x10] ss:$8 sps:$4 sm:$0xff]  }
 0x2c8   :  { %1619 = vmatprep.subr.bf16.mxu0 %v5235_v31  ;;  %1660 = vmatprep.subr.bf16.mxu1 %v5238_v32  ;;  %v5259_v31 = vld [vmem:[#allocation7 + $0x24] ss:$8 sps:$4 sm:$0xff]   ;;  %v6400_v32 = vld [vmem:[#allocation8] ss:$8 sps:$4 sm:$0xff]  }
 0x2cb   :  { %1620 = vmatpush1.bf16.msra.mxu0 %v5233_v33  ;;  %1661 = vmatpush1.bf16.msra.mxu1 %v5236_v34  ;;  %v6403_v33 = vld [vmem:[#allocation8 + $0x14] ss:$8 sps:$4 sm:$0xff]   ;;  %v5257_v34 = vld [vmem:[#allocation7 + $0x20] ss:$8 sps:$4 sm:$0xff]  }
 0x2cc   :  { %1621 = vmatprep.subr.bf16.mxu0 %v5241_v35  ;;  %1662 = vmatprep.subr.bf16.mxu1 %v5244_v36  ;;  %v5262_v35 = vld [vmem:[#allocation7 + $0x34] ss:$8 sps:$4 sm:$0xff]   ;;  %v6406_v36 = vld [vmem:[#allocation8 + $0x10] ss:$8 sps:$4 sm:$0xff]  }
 0x2cf   :  { %1622 = vmatpush1.bf16.msra.mxu0 %v5239_v37  ;;  %1663 = vmatpush1.bf16.msra.mxu1 %v5242_v40  ;;  %v6409_v37 = vld [vmem:[#allocation8 + $0x24] ss:$8 sps:$4 sm:$0xff]   ;;  %v5260_v40 = vld [vmem:[#allocation7 + $0x30] ss:$8 sps:$4 sm:$0xff]  }
 0x2d0   :  { %1623 = vmatprep.subr.bf16.mxu0 %v5247_v41  ;;  %1664 = vmatprep.subr.bf16.mxu1 %v5250_v42  ;;  %v5265_v41 = vld [vmem:[#allocation7 + $0x44] ss:$8 sps:$4 sm:$0xff]   ;;  %v6412_v42 = vld [vmem:[#allocation8 + $0x20] ss:$8 sps:$4 sm:$0xff]  }
 0x2d3   :  { %1624 = vmatpush1.bf16.msra.mxu0 %v5245_v25  ;;  %1665 = vmatpush1.bf16.msra.mxu1 %v5248_v43  ;;  %v6415_v25 = vld [vmem:[#allocation8 + $0x34] ss:$8 sps:$4 sm:$0xff]   ;;  %v5263_v43 = vld [vmem:[#allocation7 + $0x40] ss:$8 sps:$4 sm:$0xff]  }
 0x2d4   :  { %1886 = vmatprep.subr.bf16.mxu1 %v6384_v44  ;;  %1839 = vmatprep.subr.bf16.mxu0 %v5253_v27  ;;  %v5268_v27 = vld [vmem:[#allocation7 + $0x54] ss:$8 sps:$4 sm:$0xff]  }
 0x369   :  { %v1125_v52 = vpop.f32.mrb[4].mxu0  ;;  %v1166_v53 = vpop.f32.mrb[4].mxu1 }
 0x36a   :  { %v1126_v54 = vadd.f32 %v1125_v52, %v754_v48  ;;  %v1167_v55 = vadd.f32 %v1166_v53, %v762_v49  ;;  %v1127_v56 = vpop.f32.mrb[5].mxu0  ;;  %v1168_v57 = vpop.f32.mrb[5].mxu1  ;;  %v6421_v48 = vld [vmem:[#allocation8 + $0x44] ss:$8 sps:$4 sm:$0xff]   ;;  %v5266_v49 = vld [vmem:[#allocation7 + $0x50] ss:$8 sps:$4 sm:$0xff]  }
 0x36b   :  { %v1128_v58 = vadd.f32 %v1127_v56, %v758_v50  ;;  %v1169_v59 = vadd.f32 %v1168_v57, %v766_v51  ;;  %v1129_v60 = vpop.f32.mrb[6].mxu0  ;;  %v1170_v61 = vpop.f32.mrb[6].mxu1  ;;  %v5271_v50 = vld [vmem:[#allocation7 + $0x64] ss:$8 sps:$4 sm:$0xff]   ;;  %v6424_v51 = vld [vmem:[#allocation8 + $0x40] ss:$8 sps:$4 sm:$0xff]  }
 0x36c   :  { %v1177_v21 = vmul.f32 0.70710677, %v1126_v54  ;;  %v1179_v62 = vmul.f32 0.70710677, %v1167_v55  ;;  %v1130_v1 = vpop.f32.mrb[7].mxu0  ;;  %v1171_v2 = vpop.f32.mrb[7].mxu1 }
 0x36d   :  { %v1178_v63 = vmul.f32 0.70710677, %v1128_v58  ;;  %v1180_v0 = vmul.f32 0.70710677, %v1169_v59  ;;  %v1173_v7 = vmul.f32 0.5, %v1126_v54  ;;  %v1175_v10 = vmul.f32 0.5, %v1167_v55 }
 0x36e   :  { %5687 = verf.f32 %v1177_v21  ;;  %v1174_v11 = vmul.f32 0.5, %v1128_v58  ;;  %v1176_v14 = vmul.f32 0.5, %v1169_v59  ;;  %v6427_v52 = vld [vmem:[#allocation8 + $0x54] ss:$8 sps:$4 sm:$0xff]   ;;  %v5269_v53 = vld [vmem:[#allocation7 + $0x60] ss:$8 sps:$4 sm:$0xff]  }
 0x36f   :  { %5689 = verf.f32 %v1179_v62  ;;  %v5274_v54 = vld [vmem:[#allocation7 + $0x74] ss:$8 sps:$4 sm:$0xff]   ;;  %v6430_v55 = vld [vmem:[#allocation8 + $0x50] ss:$8 sps:$4 sm:$0xff]   ;;  %v6433_v56 = vld [vmem:[#allocation8 + $0x64] ss:$8 sps:$4 sm:$0xff]  }
 0x370   :  { %5691 = verf.f32 %v1178_v63  ;;  %v5272_v57 = vld [vmem:[#allocation7 + $0x70] ss:$8 sps:$4 sm:$0xff]   ;;  %v5277_v58 = vld [vmem:[#allocation7 + $0x84] ss:$8 sps:$4 sm:$0xff]   ;;  %v6436_v59 = vld [vmem:[#allocation8 + $0x60] ss:$8 sps:$4 sm:$0xff]  }
 0x371   :  { %5693 = verf.f32 %v1180_v0  ;;  %v6439_v60 = vld [vmem:[#allocation8 + $0x74] ss:$8 sps:$4 sm:$0xff]   ;;  %v5275_v61 = vld [vmem:[#allocation7 + $0x80] ss:$8 sps:$4 sm:$0xff]   ;;  %v6442_v62 = vld [vmem:[#allocation8 + $0x70] ss:$8 sps:$4 sm:$0xff]  }
 0x372   :  { %v5280_v21 = vld [vmem:[#allocation7 + $0x94] ss:$8 sps:$4 sm:$0xff]   ;;  %v6445_v63 = vld [vmem:[#allocation8 + $0x84] ss:$8 sps:$4 sm:$0xff]   ;;  %v5278_v0 = vld [vmem:[#allocation7 + $0x90] ss:$8 sps:$4 sm:$0xff]  }
 0x373   :  { %v5283_v1 = vld [vmem:[#allocation7 + $0xa4] ss:$8 sps:$4 sm:$0xff]   ;;  %v6448_v2 = vld [vmem:[#allocation8 + $0x80] ss:$8 sps:$4 sm:$0xff]  }
 0x378   :  { %v5688_v3 = vpop.eup %5687 }
 0x379   :  { %v5690_v4 = vpop.eup %5689  ;;  %v1185_v5 = vadd.f32 1.0, %v5688_v3  ;;  %v6451_v3 = vld [vmem:[#allocation8 + $0x94] ss:$8 sps:$4 sm:$0xff]  }
 0x37a   :  { %v5692_v6 = vpop.eup %5691  ;;  %v1187_v8 = vadd.f32 1.0, %v5690_v4  ;;  %v5281_v4 = vld [vmem:[#allocation7 + $0xa0] ss:$8 sps:$4 sm:$0xff]  }
 0x37b   :  { %v5694_v9 = vpop.eup %5693  ;;  %v1186_v12 = vadd.f32 1.0, %v5692_v6  ;;  %v1189_v13 = vmul.f32 %v1185_v5, %v1173_v7  ;;  %v5286_v5 = vld [vmem:[#allocation7 + $0xb4] ss:$8 sps:$4 sm:$0xff]   ;;  %v6454_v6 = vld [vmem:[#allocation8 + $0x90] ss:$8 sps:$4 sm:$0xff]  }
 0x37c   :  { %v1188_v15 = vadd.f32 1.0, %v5694_v9  ;;  %v1191_v16 = vmul.f32 %v1187_v8, %v1175_v10  ;;  %v6457_v7 = vld [vmem:[#allocation8 + $0xa4] ss:$8 sps:$4 sm:$0xff]   ;;  %v5284_v8 = vld [vmem:[#allocation7 + $0xb0] ss:$8 sps:$4 sm:$0xff]  }
 0x37d   :  { %v1190_v17 = vmul.f32 %v1186_v12, %v1174_v11  ;;  %v1193_v23 = vpack.c.bf16 %v1189_v13, %v1189_v13  ;;  %v5289_v9 = vld [vmem:[#allocation7 + $0xc4] ss:$8 sps:$4 sm:$0xff]   ;;  %v6460_v10 = vld [vmem:[#allocation8 + $0xa0] ss:$8 sps:$4 sm:$0xff]   ;;  %v6463_v11 = vld [vmem:[#allocation8 + $0xb4] ss:$8 sps:$4 sm:$0xff]  }
 0x37e   :  { %v1192_v18 = vmul.f32 %v1188_v15, %v1176_v14  ;;  %v1195_v29 = vpack.c.bf16 %v1191_v16, %v1191_v16  ;;  %v5287_v12 = vld [vmem:[#allocation7 + $0xc0] ss:$8 sps:$4 sm:$0xff]   ;;  %v5292_v13 = vld [vmem:[#allocation7 + $0xd4] ss:$8 sps:$4 sm:$0xff]   ;;  %v6466_v14 = vld [vmem:[#allocation8 + $0xb0] ss:$8 sps:$4 sm:$0xff]  }
 0x37f   :  { %v1194_v19 = vpack.c.bf16 %v1190_v17, %v1190_v17  ;;  %v6469_v15 = vld [vmem:[#allocation8 + $0xc4] ss:$8 sps:$4 sm:$0xff]   ;;  %v5290_v16 = vld [vmem:[#allocation7 + $0xd0] ss:$8 sps:$4 sm:$0xff]   ;;  %v6472_v17 = vld [vmem:[#allocation8 + $0xc0] ss:$8 sps:$4 sm:$0xff]  }
 0x380   :  { %v1196_v26 = vpack.c.bf16 %v1192_v18, %v1192_v18  ;;  %v6475_v18 = vld [vmem:[#allocation8 + $0xd4] ss:$8 sps:$4 sm:$0xff]  }
 0x381   :  { %1625 = vmatprep.mubr.bf16.mxu0 %v1194_v19  ;;  %v6478_v19 = vld [vmem:[#allocation8 + $0xd0] ss:$8 sps:$4 sm:$0xff]  }
 0x382   :  { %1666 = vmatprep.mubr.bf16.mxu1 %v1196_v26  ;;  %1626 = vmatmul.mubr.bf16.vlgmr.msra.gmra.mrb[8].mxu0 %v1193_v23  ;;  %v6484_v23 = vld [vmem:[#allocation8 + $0xe0] ss:$8 sps:$4 sm:$0xff]   ;;  %v6487_v26 = vld [vmem:[#allocation8 + $0xf4] ss:$8 sps:$4 sm:$0xff]  }
 0x383   :  { %1667 = vmatmul.mubr.bf16.vlgmr.msra.gmra.mrb[8].mxu1 %v1195_v29  ;;  %1840 = vmatpush1.bf16.msra.mxu0 %v5251_v20  ;;  %v6481_v20 = vld [vmem:[#allocation8 + $0xe4] ss:$8 sps:$4 sm:$0xff]  }
 0x384   :  { %1841 = vmatprep.subr.bf16.mxu0 %v5256_v28  ;;  %1887 = vmatpush1.bf16.msra.mxu1 %v6400_v32  ;;  %v6490_v28 = vld [vmem:[#allocation8 + $0xf0] ss:$8 sps:$4 sm:$0xff]   ;;  %v5295_v29 = vld [vmem:[#allocation7 + $0xe4] ss:$8 sps:$4 sm:$0xff]  }
 0x385   :  { %1888 = vmatprep.subr.bf16.mxu1 %v6403_v33 }
 0x387   :  { %1842 = vmatpush1.bf16.msra.mxu0 %v5254_v30  ;;  %v5293_v30 = vld [vmem:[#allocation7 + $0xe0] ss:$8 sps:$4 sm:$0xff]  }
 0x388   :  { %1843 = vmatprep.subr.bf16.mxu0 %v5259_v31  ;;  %1889 = vmatpush1.bf16.msra.mxu1 %v6406_v36  ;;  %v5298_v31 = vld [vmem:[#allocation7 + $0xf4] ss:$8 sps:$4 sm:$0xff]  }
 0x389   :  { %1890 = vmatprep.subr.bf16.mxu1 %v6409_v37 }
 0x38b   :  { %1844 = vmatpush1.bf16.msra.mxu0 %v5257_v34  ;;  %v5296_v34 = vld [vmem:[#allocation7 + $0xf0] ss:$8 sps:$4 sm:$0xff]  }
 0x38c   :  { %1845 = vmatprep.subr.bf16.mxu0 %v5262_v35  ;;  %1891 = vmatpush1.bf16.msra.mxu1 %v6412_v42  ;;  %v5763_v35 = vld [vmem:[#allocation5 + $0x4] ss:$8 sps:$4 sm:$0xff]  }
 0x38d   :  { %1892 = vmatprep.subr.bf16.mxu1 %v6415_v25 }
 0x38f   :  { %1846 = vmatpush1.bf16.msra.mxu0 %v5260_v40  ;;  %v1261_v40 = vld [vmem:[%s6778_s7] ss:$4 sm:$0x3] }
 0x390   :  { %1847 = vmatprep.subr.bf16.mxu0 %v5265_v41  ;;  %1893 = vmatpush1.bf16.msra.mxu1 %v6418_v46  ;;  %v1266_v41 = vrot.slane %v1261_v40, %v6362_v22 }
 0x391   :  { %1894 = vmatprep.subr.bf16.mxu1 %v6421_v48 }
 0x393   :  { %1848 = vmatpush1.bf16.msra.mxu0 %v5263_v43  ;;  %v1270_v43 = vrot.slane %v1261_v40, %v6365_v24  ;;  %v5774_v40 = vld [vmem:[#allocation5 + $0x50] ss:$8 sps:$4 sm:$0xff]  }
 0x394   :  { %1849 = vmatprep.subr.bf16.mxu0 %v5268_v27  ;;  %1895 = vmatpush1.bf16.msra.mxu1 %v6424_v51 }
 0x395   :  { %1896 = vmatprep.subr.bf16.mxu1 %v6427_v52 }
 0x397   :  { %1850 = vmatpush1.bf16.msra.mxu0 %v5266_v49 }
 0x398   :  { %1851 = vmatprep.subr.bf16.mxu0 %v5271_v50  ;;  %1897 = vmatpush1.bf16.msra.mxu1 %v6430_v55 }
 0x399   :  { %1898 = vmatprep.subr.bf16.mxu1 %v6433_v56 }
 0x39b   :  { %1852 = vmatpush1.bf16.msra.mxu0 %v5269_v53 }
 0x39c   :  { %1853 = vmatprep.subr.bf16.mxu0 %v5274_v54  ;;  %1899 = vmatpush1.bf16.msra.mxu1 %v6436_v59 }
 0x39d   :  { %1900 = vmatprep.subr.bf16.mxu1 %v6439_v60 }
 0x39f   :  { %1854 = vmatpush1.bf16.msra.mxu0 %v5272_v57 }
 0x3a0   :  { %1855 = vmatprep.subr.bf16.mxu0 %v5277_v58  ;;  %1901 = vmatpush1.bf16.msra.mxu1 %v6442_v62 }
 0x3a1   :  { %1902 = vmatprep.subr.bf16.mxu1 %v6445_v63 }
 0x3a3   :  { %1856 = vmatpush1.bf16.msra.mxu0 %v5275_v61 }
 0x3a4   :  { %1857 = vmatprep.subr.bf16.mxu0 %v5280_v21  ;;  %1903 = vmatpush1.bf16.msra.mxu1 %v6448_v2 }
 0x3a5   :  { %1904 = vmatprep.subr.bf16.mxu1 %v6451_v3 }
 0x3a7   :  { %1858 = vmatpush1.bf16.msra.mxu0 %v5278_v0 }
 0x3a8   :  { %1859 = vmatprep.subr.bf16.mxu0 %v5283_v1  ;;  %1905 = vmatpush1.bf16.msra.mxu1 %v6454_v6 }
 0x3a9   :  { %1906 = vmatprep.subr.bf16.mxu1 %v6457_v7 }
 0x3ab   :  { %1860 = vmatpush1.bf16.msra.mxu0 %v5281_v4 }
 0x3ac   :  { %1861 = vmatprep.subr.bf16.mxu0 %v5286_v5  ;;  %1907 = vmatpush1.bf16.msra.mxu1 %v6460_v10 }
 0x3ad   :  { %1908 = vmatprep.subr.bf16.mxu1 %v6463_v11 }
 0x3af   :  { %1862 = vmatpush1.bf16.msra.mxu0 %v5284_v8 }
 0x3b0   :  { %1863 = vmatprep.subr.bf16.mxu0 %v5289_v9  ;;  %1909 = vmatpush1.bf16.msra.mxu1 %v6466_v14 }
 0x3b1   :  { %1910 = vmatprep.subr.bf16.mxu1 %v6469_v15 }
 0x3b3   :  { %1864 = vmatpush1.bf16.msra.mxu0 %v5287_v12  ;;  %v5764_v12 = vld [vmem:[#allocation5] ss:$8 sps:$4 sm:$0xff]  }
 0x3b4   :  { %1865 = vmatprep.subr.bf16.mxu0 %v5292_v13  ;;  %1911 = vmatpush1.bf16.msra.mxu1 %v6472_v17  ;;  %v5765_v13 = vld [vmem:[#allocation5 + $0x14] ss:$8 sps:$4 sm:$0xff]  }
 0x3b5   :  { %1912 = vmatprep.subr.bf16.mxu1 %v6475_v18 }
 0x3b7   :  { %1866 = vmatpush1.bf16.msra.mxu0 %v5290_v16  ;;  %v5766_v16 = vld [vmem:[#allocation5 + $0x10] ss:$8 sps:$4 sm:$0xff]  }
 0x3b8   :  { %1913 = vmatpush1.bf16.msra.mxu1 %v6478_v19  ;;  %1867 = vmatprep.subr.bf16.mxu0 %v5295_v29  ;;  %v5767_v29 = vld [vmem:[#allocation5 + $0x24] ss:$8 sps:$4 sm:$0xff]  }
 0x3b9   :  { %1914 = vmatprep.subr.bf16.mxu1 %v6481_v20 }
 0x3bb   :  { %1868 = vmatpush1.bf16.msra.mxu0 %v5293_v30  ;;  %v5768_v30 = vld [vmem:[#allocation5 + $0x20] ss:$8 sps:$4 sm:$0xff]  }
 0x3bc   :  { %1915 = vmatpush1.bf16.msra.mxu1 %v6484_v23  ;;  %1869 = vmatprep.subr.bf16.mxu0 %v5298_v31  ;;  %v5769_v31 = vld [vmem:[#allocation5 + $0x34] ss:$8 sps:$4 sm:$0xff]  }
 0x3bd   :  { %1916 = vmatprep.subr.bf16.mxu1 %v6487_v26 }
 0x3bf   :  { %1870 = vmatpush1.bf16.msra.mxu0 %v5296_v34  ;;  %v5770_v34 = vld [vmem:[#allocation5 + $0x30] ss:$8 sps:$4 sm:$0xff]  }
 0x3c0   :  { %1917 = vmatpush1.bf16.msra.mxu1 %v6490_v28  ;;  %1959 = vmatprep.subr.bf16.mxu0 %v5763_v35  ;;  %v5773_v35 = vld [vmem:[#allocation5 + $0x54] ss:$8 sps:$4 sm:$0xff]  }
 0x3c1   :  { %2008 = vmatprep.subr.bf16.mxu1 %v6384_v44 }
 0x455   :  { %v1627_v27 = vpop.f32.mrb[8].mxu0 }
 0x456   :  { %v1628_v44 = vadd.f32 %v1627_v27, %v1266_v41  ;;  %v1668_v49 = vpop.f32.mrb[8].mxu1  ;;  %v1629_v50 = vpop.f32.mrb[9].mxu0  ;;  %v5775_v41 = vld [vmem:[#allocation5 + $0x64] ss:$8 sps:$4 sm:$0xff]   ;;  %v5777_v27 = vld [vmem:[#allocation5 + $0x74] ss:$8 sps:$4 sm:$0xff]  }
 0x457   :  { %v1630_v53 = vadd.f32 %v1629_v50, %v1270_v43  ;;  %v1670_v54 = vpop.f32.mrb[9].mxu1  ;;  %v1631_v57 = vpop.f32.mrb[10].mxu0  ;;  %v5776_v43 = vld [vmem:[#allocation5 + $0x60] ss:$8 sps:$4 sm:$0xff]  }
 0x458   :  { %v1669_v58 = vadd.f32 %v1668_v49, %v1628_v44  ;;  %v1672_v61 = vpop.f32.mrb[10].mxu1  ;;  %v1632_v21 = vpop.f32.mrb[11].mxu0  ;;  %v5778_v44 = vld [vmem:[#allocation5 + $0x70] ss:$8 sps:$4 sm:$0xff]   ;;  %v5779_v49 = vld [vmem:[#allocation5 + $0x84] ss:$8 sps:$4 sm:$0xff]  }
 0x459   :  { %v1671_v0 = vadd.f32 %v1670_v54, %v1630_v53  ;;  %v1673_v1 = vpop.f32.mrb[11].mxu1  ;;  %v5780_v50 = vld [vmem:[#allocation5 + $0x80] ss:$8 sps:$4 sm:$0xff]   ;;  %v5781_v53 = vld [vmem:[#allocation5 + $0x94] ss:$8 sps:$4 sm:$0xff]  }
 0x45a   :  { %v1675_v4 = vadd.f32 %v1669_v58, %v6376_v38  ;;  %v5771_v38 = vld [vmem:[#allocation5 + $0x44] ss:$8 sps:$4 sm:$0xff]   ;;  %v5782_v54 = vld [vmem:[#allocation5 + $0x90] ss:$8 sps:$4 sm:$0xff]   ;;  %v5784_v58 = vld [vmem:[#allocation5 + $0xa0] ss:$8 sps:$4 sm:$0xff]  }
 0x45b   :  { %v1676_v5 = vadd.f32 %v1671_v0, %v6378_v39  ;;  %v5772_v39 = vld [vmem:[#allocation5 + $0x40] ss:$8 sps:$4 sm:$0xff]   ;;  %v5783_v57 = vld [vmem:[#allocation5 + $0xa4] ss:$8 sps:$4 sm:$0xff]   ;;  %v5785_v61 = vld [vmem:[#allocation5 + $0xb4] ss:$8 sps:$4 sm:$0xff]  }
 0x45c   :  { %v1677_v9 = vpack.c.bf16 %v1675_v4, %v1675_v4  ;;  %v5786_v21 = vld [vmem:[#allocation5 + $0xb0] ss:$8 sps:$4 sm:$0xff]   ;;  %v5787_v0 = vld [vmem:[#allocation5 + $0xc4] ss:$8 sps:$4 sm:$0xff]   ;;  %v5788_v1 = vld [vmem:[#allocation5 + $0xc0] ss:$8 sps:$4 sm:$0xff]  }
 0x45d   :  { %v1678_v8 = vpack.c.bf16 %v1676_v5, %v1676_v5  ;;  %v5789_v4 = vld [vmem:[#allocation5 + $0xd4] ss:$8 sps:$4 sm:$0xff]   ;;  %v5790_v5 = vld [vmem:[#allocation5 + $0xd0] ss:$8 sps:$4 sm:$0xff]  }
 0x45f   :  { %1871 = vmatprep.mubr.bf16.mxu0 %v1678_v8  ;;  %v5791_v8 = vld [vmem:[#allocation5 + $0xe4] ss:$8 sps:$4 sm:$0xff]  }
 0x460   :  { %1872 = vmatmul.mubr.bf16.vlgmr.msra.gmra.mrb[12].mxu0 %v1677_v9  ;;  %v5792_v9 = vld [vmem:[#allocation5 + $0xe0] ss:$8 sps:$4 sm:$0xff]  }
 0x461   :  { %1960 = vmatpush1.bf16.msra.mxu0 %v5764_v12  ;;  %v5793_v12 = vld [vmem:[#allocation5 + $0xf4] ss:$8 sps:$4 sm:$0xff]  }
 0x462   :  { %1961 = vmatprep.subr.bf16.mxu0 %v5765_v13  ;;  %v5794_v13 = vld [vmem:[#allocation5 + $0xf0] ss:$8 sps:$4 sm:$0xff]  }
 0x465   :  { %1962 = vmatpush1.bf16.msra.mxu0 %v5766_v16 }
 0x466   :  { %1963 = vmatprep.subr.bf16.mxu0 %v5767_v29 }
 0x469   :  { %1964 = vmatpush1.bf16.msra.mxu0 %v5768_v30 }
 0x46a   :  { %1965 = vmatprep.subr.bf16.mxu0 %v5769_v31 }
 0x46d   :  { %1966 = vmatpush1.bf16.msra.mxu0 %v5770_v34 }
 0x46e   :  { %1967 = vmatprep.subr.bf16.mxu0 %v5771_v38 }
 0x471   :  { %1968 = vmatpush1.bf16.msra.mxu0 %v5772_v39 }
 0x472   :  { %1969 = vmatprep.subr.bf16.mxu0 %v5773_v35 }
 0x475   :  { %1970 = vmatpush1.bf16.msra.mxu0 %v5774_v40  ;;  %v5325_v40 = vld [vmem:[#allocation10 + $0x284] ss:$16 sps:$4 sm:$0xff]  }
 0x476   :  { %1971 = vmatprep.subr.bf16.mxu0 %v5775_v41  ;;  %v5323_v41 = vld [vmem:[#allocation10 + $0x280] ss:$16 sps:$4 sm:$0xff]  }
 0x479   :  { %1972 = vmatpush1.bf16.msra.mxu0 %v5776_v43  ;;  %v5331_v43 = vld [vmem:[#allocation10 + $0x2a4] ss:$16 sps:$4 sm:$0xff]  }
 0x47a   :  { %1973 = vmatprep.subr.bf16.mxu0 %v5777_v27  ;;  %v5329_v27 = vld [vmem:[#allocation10 + $0x2a0] ss:$16 sps:$4 sm:$0xff]  }
 0x47d   :  { %1974 = vmatpush1.bf16.msra.mxu0 %v5778_v44  ;;  %v5337_v44 = vld [vmem:[#allocation10 + $0x2c4] ss:$16 sps:$4 sm:$0xff]  }
 0x47e   :  { %1975 = vmatprep.subr.bf16.mxu0 %v5779_v49  ;;  %v5335_v49 = vld [vmem:[#allocation10 + $0x2c0] ss:$16 sps:$4 sm:$0xff]  }
 0x481   :  { %1976 = vmatpush1.bf16.msra.mxu0 %v5780_v50  ;;  %v5343_v50 = vld [vmem:[#allocation10 + $0x2e4] ss:$16 sps:$4 sm:$0xff]  }
 0x482   :  { %1977 = vmatprep.subr.bf16.mxu0 %v5781_v53  ;;  %v5341_v53 = vld [vmem:[#allocation10 + $0x2e0] ss:$16 sps:$4 sm:$0xff]  }
 0x485   :  { %1978 = vmatpush1.bf16.msra.mxu0 %v5782_v54  ;;  %v5349_v54 = vld [vmem:[#allocation10 + $0x304] ss:$16 sps:$4 sm:$0xff]  }
 0x486   :  { %1979 = vmatprep.subr.bf16.mxu0 %v5783_v57  ;;  %v5347_v57 = vld [vmem:[#allocation10 + $0x300] ss:$16 sps:$4 sm:$0xff]  }
 0x489   :  { %1980 = vmatpush1.bf16.msra.mxu0 %v5784_v58  ;;  %v5355_v58 = vld [vmem:[#allocation10 + $0x324] ss:$16 sps:$4 sm:$0xff]  }
 0x48a   :  { %1981 = vmatprep.subr.bf16.mxu0 %v5785_v61  ;;  %v5353_v61 = vld [vmem:[#allocation10 + $0x320] ss:$16 sps:$4 sm:$0xff]  }
 0x48d   :  { %1982 = vmatpush1.bf16.msra.mxu0 %v5786_v21 }
 0x48e   :  { %1983 = vmatprep.subr.bf16.mxu0 %v5787_v0 }
 0x491   :  { %1984 = vmatpush1.bf16.msra.mxu0 %v5788_v1 }
 0x492   :  { %1985 = vmatprep.subr.bf16.mxu0 %v5789_v4 }
 0x495   :  { %1986 = vmatpush1.bf16.msra.mxu0 %v5790_v5 }
 0x496   :  { %1987 = vmatprep.subr.bf16.mxu0 %v5791_v8 }
 0x499   :  { %1988 = vmatpush1.bf16.msra.mxu0 %v5792_v9 }
 0x49a   :  { %1989 = vmatprep.subr.bf16.mxu0 %v5793_v12  ;;  %v5302_v12 = vld [vmem:[#allocation10 + $0x208] ss:$16 sps:$4 sm:$0xff]  }
 0x49d   :  { %1990 = vmatpush1.bf16.msra.mxu0 %v5794_v13 }
 0x533   :  { %v1873_v16 = vpop.f32.mrb[12].mxu0 }
 0x534   :  { %v1882_v29 = vmul.f32 %v1873_v16, %v1873_v16  ;;  %v1875_v30 = vpop.f32.mrb[13].mxu0 }
 0x535   :  { %v1883_v31 = vmul.f32 %v1875_v30, %v1875_v30  ;;  %v1877_v34 = vpop.f32.mrb[14].mxu0 }
 0x536   :  { %v1878_v38 = vpop.f32.mrb[15].mxu0  ;;  %v1884_v35 = vpack.c.bf16 %v1882_v29, %v1882_v29  ;;  %v5308_v29 = vld [vmem:[#allocation10 + $0x228] ss:$16 sps:$4 sm:$0xff]   ;;  %v5322_v34 = vld [vmem:[#allocation10 + $0x26c] ss:$16 sps:$4 sm:$0xff]  }
 0x537   :  { %v1885_v39 = vpack.c.bf16 %v1883_v31, %v1883_v31  ;;  %v5314_v31 = vld [vmem:[#allocation10 + $0x248] ss:$16 sps:$4 sm:$0xff]  }
 0x538   :  { %v5320_v38 = vld [vmem:[#allocation10 + $0x268] ss:$16 sps:$4 sm:$0xff]  }
 0x539   :  { %1918 = vmatprep.mubr.bf16.mxu1 %v1885_v39  ;;  %v5328_v39 = vld [vmem:[#allocation10 + $0x28c] ss:$16 sps:$4 sm:$0xff]  }
 0x53a   :  { %1919 = vmatmul.mubr.bf16.vlgmr.msra.gmra.mrb[12].mxu1 %v1884_v35  ;;  %v5326_v35 = vld [vmem:[#allocation10 + $0x288] ss:$16 sps:$4 sm:$0xff]  }
 0x53b   :  { %2009 = vmatpush1.bf16.msra.mxu1 %v6400_v32 }
 0x53c   :  { %2010 = vmatprep.subr.bf16.mxu1 %v6403_v33 }
 0x53f   :  { %2011 = vmatpush1.bf16.msra.mxu1 %v6406_v36 }
 0x540   :  { %2012 = vmatprep.subr.bf16.mxu1 %v6409_v37 }
 0x543   :  { %2013 = vmatpush1.bf16.msra.mxu1 %v6412_v42 }
 0x544   :  { %2014 = vmatprep.subr.bf16.mxu1 %v6415_v25 }
 0x547   :  { %2015 = vmatpush1.bf16.msra.mxu1 %v6418_v46  ;;  %v1880_v46 = vld [vmem:[#allocation14] ss:$4 sm:$0x3] }
 0x548   :  { %2016 = vmatprep.subr.bf16.mxu1 %v6421_v48  ;;  %v1881_v48 = vld [vmem:[%s6782_s11] ss:$4 sm:$0x3] }
 0x54b   :  { %2017 = vmatpush1.bf16.msra.mxu1 %v6424_v51  ;;  %v1935_v51 = vrot.slane %v1880_v46, %v6362_v22 }
 0x54c   :  { %2018 = vmatprep.subr.bf16.mxu1 %v6427_v52 }
 0x54f   :  { %2019 = vmatpush1.bf16.msra.mxu1 %v6430_v55  ;;  %v1939_v55 = vrot.slane %v1880_v46, %v6365_v24  ;;  %v5352_v46 = vld [vmem:[#allocation10 + $0x30c] ss:$16 sps:$4 sm:$0xff]  }
 0x550   :  { %2020 = vmatprep.subr.bf16.mxu1 %v6433_v56 }
 0x553   :  { %2021 = vmatpush1.bf16.msra.mxu1 %v6436_v59  ;;  %v1948_v59 = vrot.slane %v1881_v48, %v6362_v22 }
 0x554   :  { %2022 = vmatprep.subr.bf16.mxu1 %v6439_v60 }
 0x557   :  { %2023 = vmatpush1.bf16.msra.mxu1 %v6442_v62 }
 0x558   :  { %2024 = vmatprep.subr.bf16.mxu1 %v6445_v63  ;;  %v1952_v63 = vrot.slane %v1881_v48, %v6365_v24  ;;  %v5350_v48 = vld [vmem:[#allocation10 + $0x308] ss:$16 sps:$4 sm:$0xff]  }
 0x55b   :  { %2025 = vmatpush1.bf16.msra.mxu1 %v6448_v2 }
 0x55c   :  { %2026 = vmatprep.subr.bf16.mxu1 %v6451_v3 }
 0x55f   :  { %2027 = vmatpush1.bf16.msra.mxu1 %v6454_v6 }
 0x560   :  { %2028 = vmatprep.subr.bf16.mxu1 %v6457_v7 }
 0x563   :  { %2029 = vmatpush1.bf16.msra.mxu1 %v6460_v10 }
 0x564   :  { %2030 = vmatprep.subr.bf16.mxu1 %v6463_v11 }
 0x567   :  { %2031 = vmatpush1.bf16.msra.mxu1 %v6466_v14  ;;  %v5299_v14 = vld [vmem:[#allocation10 + $0x200] ss:$16 sps:$4 sm:$0xff]  }
 0x568   :  { %2032 = vmatprep.subr.bf16.mxu1 %v6469_v15  ;;  %v5301_v15 = vld [vmem:[#allocation10 + $0x204] ss:$16 sps:$4 sm:$0xff]  }
 0x569   :  { %2489 = vmatprep.subr.bf16.mxu0 %v5301_v15  ;;  %v5382_v15 = vld [vmem:[#allocation10 + $0x3ac] ss:$16 sps:$4 sm:$0xff]  }
 0x56b   :  { %2033 = vmatpush1.bf16.msra.mxu1 %v6472_v17  ;;  %v5304_v17 = vld [vmem:[#allocation10 + $0x20c] ss:$16 sps:$4 sm:$0xff]  }
 0x56c   :  { %2034 = vmatprep.subr.bf16.mxu1 %v6475_v18  ;;  %v5307_v18 = vld [vmem:[#allocation10 + $0x224] ss:$16 sps:$4 sm:$0xff]  }
 0x56f   :  { %2035 = vmatpush1.bf16.msra.mxu1 %v6478_v19  ;;  %v5305_v19 = vld [vmem:[#allocation10 + $0x220] ss:$16 sps:$4 sm:$0xff]  }
 0x570   :  { %2036 = vmatprep.subr.bf16.mxu1 %v6481_v20  ;;  %v5313_v20 = vld [vmem:[#allocation10 + $0x244] ss:$16 sps:$4 sm:$0xff]  }
 0x573   :  { %2037 = vmatpush1.bf16.msra.mxu1 %v6484_v23  ;;  %v5311_v23 = vld [vmem:[#allocation10 + $0x240] ss:$16 sps:$4 sm:$0xff]  }
 0x574   :  { %2038 = vmatprep.subr.bf16.mxu1 %v6487_v26  ;;  %v5319_v26 = vld [vmem:[#allocation10 + $0x264] ss:$16 sps:$4 sm:$0xff]  }
 0x577   :  { %2039 = vmatpush1.bf16.msra.mxu1 %v6490_v28  ;;  %v5317_v28 = vld [vmem:[#allocation10 + $0x260] ss:$16 sps:$4 sm:$0xff]  }
 0x578   :  { %2530 = vmatprep.subr.bf16.mxu1 %v5304_v17  ;;  %v5377_v17 = vld [vmem:[#allocation10 + $0x3a0] ss:$16 sps:$4 sm:$0xff]  }
 0x60d   :  { %v1920_v32 = vpop.f32.mrb[12].mxu1 }
 0x60e   :  { %v1921_v33 = vadd.f32 1e-05, %v1920_v32  ;;  %v1922_v36 = vpop.f32.mrb[13].mxu1  ;;  %v5334_v32 = vld [vmem:[#allocation10 + $0x2ac] ss:$16 sps:$4 sm:$0xff]  }
 0x60f   :  { %v1923_v37 = vadd.f32 1e-05, %v1922_v36  ;;  %v1924_v42 = vpop.f32.mrb[14].mxu1  ;;  %v5340_v36 = vld [vmem:[#allocation10 + $0x2cc] ss:$16 sps:$4 sm:$0xff]  }
 0x610   :  { %5695 = vrsqrt.f32 %v1921_v33  ;;  %v1925_v25 = vpop.f32.mrb[15].mxu1  ;;  %v5332_v33 = vld [vmem:[#allocation10 + $0x2a8] ss:$16 sps:$4 sm:$0xff]   ;;  %v5346_v42 = vld [vmem:[#allocation10 + $0x2ec] ss:$16 sps:$4 sm:$0xff]  }
 0x611   :  { %5697 = vrsqrt.f32 %v1923_v37  ;;  %v5338_v37 = vld [vmem:[#allocation10 + $0x2c8] ss:$16 sps:$4 sm:$0xff]  }
 0x612   :  { %v5344_v25 = vld [vmem:[#allocation10 + $0x2e8] ss:$16 sps:$4 sm:$0xff]  }
 0x61a   :  { %v5696_v52 = vpop.eup %5695 }
 0x61b   :  { %v5698_v56 = vpop.eup %5697  ;;  %v1929_v60 = vmul.f32 %v5696_v52, %v1873_v16  ;;  %v5310_v16 = vld [vmem:[#allocation10 + $0x22c] ss:$16 sps:$4 sm:$0xff]   ;;  %v5356_v52 = vld [vmem:[#allocation10 + $0x328] ss:$16 sps:$4 sm:$0xff]  }
 0x61c   :  { %v1930_v62 = vmul.f32 %v5698_v56, %v1875_v30  ;;  %v5316_v30 = vld [vmem:[#allocation10 + $0x24c] ss:$16 sps:$4 sm:$0xff]  }
 0x61d   :  { %v1942_v2 = vmul.f32 %v1935_v51, %v1929_v60  ;;  %v5358_v51 = vld [vmem:[#allocation10 + $0x32c] ss:$16 sps:$4 sm:$0xff]   ;;  %v5362_v60 = vld [vmem:[#allocation10 + $0x348] ss:$16 sps:$4 sm:$0xff]  }
 0x61e   :  { %v1943_v3 = vmul.f32 %v1939_v55, %v1930_v62  ;;  %v5361_v55 = vld [vmem:[#allocation10 + $0x344] ss:$16 sps:$4 sm:$0xff]   ;;  %v5364_v56 = vld [vmem:[#allocation10 + $0x34c] ss:$16 sps:$4 sm:$0xff]  }
 0x61f   :  { %v1955_v6 = vadd.f32 %v1948_v59, %v1942_v2  ;;  %v5359_v59 = vld [vmem:[#allocation10 + $0x340] ss:$16 sps:$4 sm:$0xff]   ;;  %v5367_v62 = vld [vmem:[#allocation10 + $0x364] ss:$16 sps:$4 sm:$0xff]  }
 0x620   :  { %v1956_v7 = vadd.f32 %v1952_v63, %v1943_v3  ;;  %v5370_v63 = vld [vmem:[#allocation10 + $0x36c] ss:$16 sps:$4 sm:$0xff]   ;;  %v5365_v2 = vld [vmem:[#allocation10 + $0x360] ss:$16 sps:$4 sm:$0xff]   ;;  %v5368_v3 = vld [vmem:[#allocation10 + $0x368] ss:$16 sps:$4 sm:$0xff]  }
 0x621   :  { %v1957_v11 = vpack.c.bf16 %v1955_v6, %v1955_v6  ;;  %v5373_v6 = vld [vmem:[#allocation10 + $0x384] ss:$16 sps:$4 sm:$0xff]  }
 0x622   :  { %v1958_v10 = vpack.c.bf16 %v1956_v7, %v1956_v7  ;;  %v5376_v7 = vld [vmem:[#allocation10 + $0x38c] ss:$16 sps:$4 sm:$0xff]  }
 0x624   :  { %1991 = vmatprep.mubr.bf16.mxu0 %v1958_v10  ;;  %v5371_v10 = vld [vmem:[#allocation10 + $0x380] ss:$16 sps:$4 sm:$0xff]  }
 0x625   :  { %1992 = vmatmul.mubr.bf16.vlgmr.msra.gmra.mrb[16].mxu0 %v1957_v11  ;;  %v5374_v11 = vld [vmem:[#allocation10 + $0x388] ss:$16 sps:$4 sm:$0xff]  }
 0x626   :  { %2490 = vmatpush1.bf16.msra.mxu0 %v5299_v14  ;;  %v5379_v14 = vld [vmem:[#allocation10 + $0x3a4] ss:$16 sps:$4 sm:$0xff]  }
 0x627   :  { %2491 = vmatprep.subr.bf16.mxu0 %v5307_v18  ;;  %v5380_v18 = vld [vmem:[#allocation10 + $0x3a8] ss:$16 sps:$4 sm:$0xff]  }
 0x62a   :  { %2492 = vmatpush1.bf16.msra.mxu0 %v5305_v19  ;;  %v5383_v19 = vld [vmem:[#allocation10 + $0x3c0] ss:$16 sps:$4 sm:$0xff]  }
 0x62b   :  { %2493 = vmatprep.subr.bf16.mxu0 %v5313_v20  ;;  %v5385_v20 = vld [vmem:[#allocation10 + $0x3c4] ss:$16 sps:$4 sm:$0xff]  }
 0x62e   :  { %2494 = vmatpush1.bf16.msra.mxu0 %v5311_v23  ;;  %v5386_v23 = vld [vmem:[#allocation10 + $0x3c8] ss:$16 sps:$4 sm:$0xff]  }
 0x62f   :  { %2495 = vmatprep.subr.bf16.mxu0 %v5319_v26  ;;  %v5388_v26 = vld [vmem:[#allocation10 + $0x3cc] ss:$16 sps:$4 sm:$0xff]  }
 0x632   :  { %2496 = vmatpush1.bf16.msra.mxu0 %v5317_v28  ;;  %v5391_v28 = vld [vmem:[#allocation10 + $0x3e4] ss:$16 sps:$4 sm:$0xff]  }
 0x633   :  { %2497 = vmatprep.subr.bf16.mxu0 %v5325_v40  ;;  %v5394_v40 = vld [vmem:[#allocation10 + $0x3ec] ss:$16 sps:$4 sm:$0xff]  }
 0x636   :  { %2498 = vmatpush1.bf16.msra.mxu0 %v5323_v41  ;;  %v5389_v41 = vld [vmem:[#allocation10 + $0x3e0] ss:$16 sps:$4 sm:$0xff]  }
 0x637   :  { %2499 = vmatprep.subr.bf16.mxu0 %v5331_v43  ;;  %v5392_v43 = vld [vmem:[#allocation10 + $0x3e8] ss:$16 sps:$4 sm:$0xff]  }
 0x63a   :  { %2500 = vmatpush1.bf16.msra.mxu0 %v5329_v27  ;;  %v5397_v27 = vld [vmem:[#allocation11 + $0x204] ss:$8 sps:$4 sm:$0xff]  }
 0x63b   :  { %2501 = vmatprep.subr.bf16.mxu0 %v5337_v44  ;;  %v5400_v44 = vld [vmem:[#allocation11 + $0x304] ss:$8 sps:$4 sm:$0xff]  }
 0x63e   :  { %2502 = vmatpush1.bf16.msra.mxu0 %v5335_v49 }
 0x63f   :  { %2503 = vmatprep.subr.bf16.mxu0 %v5343_v50 }
 0x642   :  { %2504 = vmatpush1.bf16.msra.mxu0 %v5341_v53 }
 0x643   :  { %2505 = vmatprep.subr.bf16.mxu0 %v5349_v54 }
 0x646   :  { %2506 = vmatpush1.bf16.msra.mxu0 %v5347_v57 }
 0x647   :  { %2507 = vmatprep.subr.bf16.mxu0 %v5355_v58 }
 0x64a   :  { %2508 = vmatpush1.bf16.msra.mxu0 %v5353_v61  ;;  %v2001_v61 = vld [vmem:[#allocation13 + $0x1] ss:$4 sm:$0x3] }
 0x64b   :  { %2509 = vmatprep.subr.bf16.mxu0 %v5361_v55  ;;  %v5413_v55 = vld [vmem:[#allocation11 + $0x230] ss:$8 sps:$4 sm:$0xff]  }
 0x64e   :  { %2510 = vmatpush1.bf16.msra.mxu0 %v5359_v59  ;;  %v5421_v59 = vld [vmem:[#allocation11 + $0x244] ss:$8 sps:$4 sm:$0xff]  }
 0x64f   :  { %2511 = vmatprep.subr.bf16.mxu0 %v5367_v62  ;;  %v5419_v62 = vld [vmem:[#allocation11 + $0x240] ss:$8 sps:$4 sm:$0xff]  }
 0x652   :  { %2512 = vmatpush1.bf16.msra.mxu0 %v5365_v2  ;;  %v5427_v2 = vld [vmem:[#allocation11 + $0x254] ss:$8 sps:$4 sm:$0xff]  }
 0x653   :  { %2513 = vmatprep.subr.bf16.mxu0 %v5373_v6  ;;  %v5425_v6 = vld [vmem:[#allocation11 + $0x250] ss:$8 sps:$4 sm:$0xff]  }
 0x656   :  { %2514 = vmatpush1.bf16.msra.mxu0 %v5371_v10  ;;  %v5433_v10 = vld [vmem:[#allocation11 + $0x264] ss:$8 sps:$4 sm:$0xff]  }
 0x657   :  { %2515 = vmatprep.subr.bf16.mxu0 %v5379_v14  ;;  %v5431_v14 = vld [vmem:[#allocation11 + $0x260] ss:$8 sps:$4 sm:$0xff]  }
 0x65a   :  { %2516 = vmatpush1.bf16.msra.mxu0 %v5377_v17  ;;  %v5439_v17 = vld [vmem:[#allocation11 + $0x274] ss:$8 sps:$4 sm:$0xff]  }
 0x65b   :  { %2517 = vmatprep.subr.bf16.mxu0 %v5385_v20  ;;  %v5440_v20 = vld [vmem:[#allocation11 + $0x370] ss:$8 sps:$4 sm:$0xff]  }
 0x65e   :  { %2518 = vmatpush1.bf16.msra.mxu0 %v5383_v19  ;;  %v5437_v19 = vld [vmem:[#allocation11 + $0x270] ss:$8 sps:$4 sm:$0xff]  }
 0x65f   :  { %2519 = vmatprep.subr.bf16.mxu0 %v5391_v28  ;;  %v5443_v28 = vld [vmem:[#allocation11 + $0x280] ss:$8 sps:$4 sm:$0xff]  }
 0x662   :  { %2520 = vmatpush1.bf16.msra.mxu0 %v5389_v41  ;;  %v5451_v41 = vld [vmem:[#allocation11 + $0x294] ss:$8 sps:$4 sm:$0xff]  }
 0x663   :  { %2993 = vmatprep.subr.bf16.mxu0 %v5397_v27  ;;  %v5449_v27 = vld [vmem:[#allocation11 + $0x290] ss:$8 sps:$4 sm:$0xff]  }
 0x6f8   :  { %v6539_v21 = vpop.f32.mrb[16].mxu0 }
 0x6f9   :  { %v2004_v0 = vmul.f32 %v6539_v21, %v6539_v21  ;;  %v6543_v1 = vpop.f32.mrb[17].mxu0 }
 0x6fa   :  { %v2005_v4 = vmul.f32 %v6543_v1, %v6543_v1  ;;  %v1997_v5 = vpop.f32.mrb[18].mxu0 }
 0x6fb   :  { %v1998_v8 = vpop.f32.mrb[19].mxu0  ;;  %v2006_v13 = vpack.c.bf16 %v2004_v0, %v2004_v0  ;;  %v4686_v0 = vld [vmem:[%s6780_s9 + $0x1] ss:$4 sm:$0x3] }
 0x6fc   :  { %v2007_v9 = vpack.c.bf16 %v2005_v4, %v2005_v4  ;;  %v2057_v4 = vrot.slane %v2001_v61, %v6362_v22  ;;  %v2061_v8 = vrot.slane %v2001_v61, %v6365_v24  ;;  %v5461_v61 = vld [vmem:[#allocation11 + $0x2b0] ss:$8 sps:$4 sm:$0xff]  }
 0x6fe   :  { %2040 = vmatprep.mubr.bf16.mxu1 %v2007_v9 }
 0x6ff   :  { %2041 = vmatmul.mubr.bf16.vlgmr.msra.gmra.mrb[16].mxu1 %v2006_v13  ;;  %v2070_v13 = vrot.slane %v4686_v0, %v6362_v22 }
 0x700   :  { %2531 = vmatpush1.bf16.msra.mxu1 %v5302_v12 }
 0x701   :  { %2532 = vmatprep.subr.bf16.mxu1 %v5310_v16 }
 0x704   :  { %2533 = vmatpush1.bf16.msra.mxu1 %v5308_v29  ;;  %v2074_v29 = vrot.slane %v4686_v0, %v6365_v24  ;;  %v5464_v0 = vld [vmem:[#allocation11 + $0x3b0] ss:$8 sps:$4 sm:$0xff]  }
 0x705   :  { %2534 = vmatprep.subr.bf16.mxu1 %v5316_v30 }
 0x708   :  { %2535 = vmatpush1.bf16.msra.mxu1 %v5314_v31 }
 0x709   :  { %2536 = vmatprep.subr.bf16.mxu1 %v5322_v34 }
 0x70c   :  { %2537 = vmatpush1.bf16.msra.mxu1 %v5320_v38 }
 0x70d   :  { %2538 = vmatprep.subr.bf16.mxu1 %v5328_v39 }
 0x710   :  { %2539 = vmatpush1.bf16.msra.mxu1 %v5326_v35  ;;  %v5395_v35 = vld [vmem:[#allocation11 + $0x200] ss:$8 sps:$4 sm:$0xff]  }
 0x711   :  { %2540 = vmatprep.subr.bf16.mxu1 %v5334_v32  ;;  %v5398_v32 = vld [vmem:[#allocation11 + $0x300] ss:$8 sps:$4 sm:$0xff]  }
 0x714   :  { %2541 = vmatpush1.bf16.msra.mxu1 %v5332_v33  ;;  %v5403_v33 = vld [vmem:[#allocation11 + $0x214] ss:$8 sps:$4 sm:$0xff]  }
 0x715   :  { %2542 = vmatprep.subr.bf16.mxu1 %v5340_v36  ;;  %v5406_v36 = vld [vmem:[#allocation11 + $0x314] ss:$8 sps:$4 sm:$0xff]  }
 0x718   :  { %2543 = vmatpush1.bf16.msra.mxu1 %v5338_v37  ;;  %v5404_v37 = vld [vmem:[#allocation11 + $0x310] ss:$8 sps:$4 sm:$0xff]  }
 0x719   :  { %2544 = vmatprep.subr.bf16.mxu1 %v5346_v42  ;;  %v5409_v42 = vld [vmem:[#allocation11 + $0x224] ss:$8 sps:$4 sm:$0xff]  }
 0x71c   :  { %2545 = vmatpush1.bf16.msra.mxu1 %v5344_v25  ;;  %v5412_v25 = vld [vmem:[#allocation11 + $0x324] ss:$8 sps:$4 sm:$0xff]  }
 0x71d   :  { %2546 = vmatprep.subr.bf16.mxu1 %v5352_v46  ;;  %v5407_v46 = vld [vmem:[#allocation11 + $0x220] ss:$8 sps:$4 sm:$0xff]  }
 0x720   :  { %2547 = vmatpush1.bf16.msra.mxu1 %v5350_v48  ;;  %v5410_v48 = vld [vmem:[#allocation11 + $0x320] ss:$8 sps:$4 sm:$0xff]  }
 0x721   :  { %2548 = vmatprep.subr.bf16.mxu1 %v5358_v51  ;;  %v5415_v51 = vld [vmem:[#allocation11 + $0x234] ss:$8 sps:$4 sm:$0xff]  }
 0x724   :  { %2549 = vmatpush1.bf16.msra.mxu1 %v5356_v52  ;;  %v5418_v52 = vld [vmem:[#allocation11 + $0x334] ss:$8 sps:$4 sm:$0xff]  }
 0x725   :  { %2550 = vmatprep.subr.bf16.mxu1 %v5364_v56  ;;  %v5416_v56 = vld [vmem:[#allocation11 + $0x330] ss:$8 sps:$4 sm:$0xff]  }
 0x728   :  { %2551 = vmatpush1.bf16.msra.mxu1 %v5362_v60  ;;  %v5424_v60 = vld [vmem:[#allocation11 + $0x344] ss:$8 sps:$4 sm:$0xff]  }
 0x729   :  { %2552 = vmatprep.subr.bf16.mxu1 %v5370_v63  ;;  %v5422_v63 = vld [vmem:[#allocation11 + $0x340] ss:$8 sps:$4 sm:$0xff]  }
 0x72c   :  { %2553 = vmatpush1.bf16.msra.mxu1 %v5368_v3  ;;  %v5430_v3 = vld [vmem:[#allocation11 + $0x354] ss:$8 sps:$4 sm:$0xff]  }
 0x72d   :  { %2554 = vmatprep.subr.bf16.mxu1 %v5376_v7  ;;  %v5428_v7 = vld [vmem:[#allocation11 + $0x350] ss:$8 sps:$4 sm:$0xff]  }
 0x730   :  { %2555 = vmatpush1.bf16.msra.mxu1 %v5374_v11  ;;  %v5436_v11 = vld [vmem:[#allocation11 + $0x364] ss:$8 sps:$4 sm:$0xff]  }
 0x731   :  { %2556 = vmatprep.subr.bf16.mxu1 %v5382_v15  ;;  %v5434_v15 = vld [vmem:[#allocation11 + $0x360] ss:$8 sps:$4 sm:$0xff]  }
 0x734   :  { %2557 = vmatpush1.bf16.msra.mxu1 %v5380_v18  ;;  %v5442_v18 = vld [vmem:[#allocation11 + $0x374] ss:$8 sps:$4 sm:$0xff]  }
 0x735   :  { %2558 = vmatprep.subr.bf16.mxu1 %v5388_v26  ;;  %v5448_v26 = vld [vmem:[#allocation11 + $0x384] ss:$8 sps:$4 sm:$0xff]  }
 0x738   :  { %2559 = vmatpush1.bf16.msra.mxu1 %v5386_v23  ;;  %v5445_v23 = vld [vmem:[#allocation11 + $0x284] ss:$8 sps:$4 sm:$0xff]  }
 0x739   :  { %2560 = vmatprep.subr.bf16.mxu1 %v5394_v40  ;;  %v5446_v40 = vld [vmem:[#allocation11 + $0x380] ss:$8 sps:$4 sm:$0xff]  }
 0x73c   :  { %2561 = vmatpush1.bf16.msra.mxu1 %v5392_v43  ;;  %v5454_v43 = vld [vmem:[#allocation11 + $0x394] ss:$8 sps:$4 sm:$0xff]  }
 0x73d   :  { %3034 = vmatprep.subr.bf16.mxu1 %v5400_v44  ;;  %v5452_v44 = vld [vmem:[#allocation11 + $0x390] ss:$8 sps:$4 sm:$0xff]  }
 0x7d2   :  { %v2042_v49 = vpop.f32.mrb[16].mxu1 }
 0x7d3   :  { %v2043_v50 = vadd.f32 1e-05, %v2042_v49  ;;  %v2044_v53 = vpop.f32.mrb[17].mxu1  ;;  %v5457_v49 = vld [vmem:[#allocation11 + $0x2a4] ss:$8 sps:$4 sm:$0xff]  }
 0x7d4   :  { %v2045_v54 = vadd.f32 1e-05, %v2044_v53  ;;  %v2046_v57 = vpop.f32.mrb[18].mxu1  ;;  %v5455_v53 = vld [vmem:[#allocation11 + $0x2a0] ss:$8 sps:$4 sm:$0xff]  }
 0x7d5   :  { %5699 = vrsqrt.f32 %v2043_v50  ;;  %v2047_v58 = vpop.f32.mrb[19].mxu1  ;;  %v5460_v50 = vld [vmem:[#allocation11 + $0x3a4] ss:$8 sps:$4 sm:$0xff]   ;;  %v5463_v57 = vld [vmem:[#allocation11 + $0x2b4] ss:$8 sps:$4 sm:$0xff]  }
 0x7d6   :  { %5701 = vrsqrt.f32 %v2045_v54  ;;  %v5458_v54 = vld [vmem:[#allocation11 + $0x3a0] ss:$8 sps:$4 sm:$0xff]   ;;  %v5466_v58 = vld [vmem:[#allocation11 + $0x3b4] ss:$8 sps:$4 sm:$0xff]  }
 0x7df   :  { %v5700_v5 = vpop.eup %5699 }
 0x7e0   :  { %v5702_v9 = vpop.eup %5701  ;;  %v2051_v12 = vmul.f32 %v5700_v5, %v6539_v21  ;;  %v5472_v5 = vld [vmem:[#allocation11 + $0x3c4] ss:$8 sps:$4 sm:$0xff]  }
 0x7e1   :  { %v2052_v16 = vmul.f32 %v5702_v9, %v6543_v1  ;;  %v5401_v1 = vld [vmem:[#allocation11 + $0x210] ss:$8 sps:$4 sm:$0xff]   ;;  %v5470_v9 = vld [vmem:[#allocation11 + $0x3c0] ss:$8 sps:$4 sm:$0xff]  }
 0x7e2   :  { %v2064_v30 = vmul.f32 %v2057_v4, %v2051_v12  ;;  %v5469_v4 = vld [vmem:[#allocation11 + $0x2c4] ss:$8 sps:$4 sm:$0xff]   ;;  %v5475_v12 = vld [vmem:[#allocation11 + $0x2d4] ss:$8 sps:$4 sm:$0xff]  }
 0x7e3   :  { %v2065_v31 = vmul.f32 %v2061_v8, %v2052_v16  ;;  %v5467_v8 = vld [vmem:[#allocation11 + $0x2c0] ss:$8 sps:$4 sm:$0xff]   ;;  %v5473_v16 = vld [vmem:[#allocation11 + $0x2d0] ss:$8 sps:$4 sm:$0xff]  }
 0x7e4   :  { %v6556_v34 = vadd.f32 %v2070_v13, %v2064_v30  ;;  %v5478_v13 = vld [vmem:[#allocation11 + $0x3d4] ss:$8 sps:$4 sm:$0xff]   ;;  %v5481_v30 = vld [vmem:[#allocation11 + $0x2e4] ss:$8 sps:$4 sm:$0xff]  }
 0x7e5   :  { %v6558_v38 = vadd.f32 %v2074_v29, %v2065_v31  ;;  %v5476_v29 = vld [vmem:[#allocation11 + $0x3d0] ss:$8 sps:$4 sm:$0xff]   ;;  %v5484_v31 = vld [vmem:[#allocation11 + $0x3e4] ss:$8 sps:$4 sm:$0xff]  }
 0x7e6   :  { %v2079_v21 = vpack.c.bf16 %v6556_v34, %v6556_v34 }
 0x7e7   :  { %v2080_v39 = vpack.c.bf16 %v6558_v38, %v6558_v38 }
 0x7e9   :  { %2521 = vmatprep.mubr.bf16.mxu0 %v2080_v39  ;;  %2562 = vmatprep.mubr.bf16.mxu1 %v2080_v39  ;;  %v5479_v39 = vld [vmem:[#allocation11 + $0x2e0] ss:$8 sps:$4 sm:$0xff]  }
 0x7ea   :  { %2522 = vmatmul.mubr.bf16.vlgmr.msra.gmra.mrb[20].mxu0 %v2079_v21  ;;  %2563 = vmatmul.mubr.bf16.vlgmr.msra.gmra.mrb[20].mxu1 %v2079_v21  ;;  %v5490_v21 = vld [vmem:[#allocation11 + $0x3f4] ss:$8 sps:$4 sm:$0xff]  }
 0x7eb   :  { %2994 = vmatpush1.bf16.msra.mxu0 %v5395_v35  ;;  %3035 = vmatpush1.bf16.msra.mxu1 %v5398_v32  ;;  %v5482_v35 = vld [vmem:[#allocation11 + $0x3e0] ss:$8 sps:$4 sm:$0xff]   ;;  %v5487_v32 = vld [vmem:[#allocation11 + $0x2f4] ss:$8 sps:$4 sm:$0xff]  }
 0x7ec   :  { %2995 = vmatprep.subr.bf16.mxu0 %v5403_v33  ;;  %3036 = vmatprep.subr.bf16.mxu1 %v5406_v36  ;;  %v5485_v33 = vld [vmem:[#allocation11 + $0x2f0] ss:$8 sps:$4 sm:$0xff]  }
 0x7ed   :  { %v5488_v36 = vld [vmem:[#allocation11 + $0x3f0] ss:$8 sps:$4 sm:$0xff]  }
 0x7ef   :  { %2996 = vmatpush1.bf16.msra.mxu0 %v5401_v1  ;;  %3037 = vmatpush1.bf16.msra.mxu1 %v5404_v37  ;;  %v5795_v1 = vld [vmem:[#allocation7 + $0x4] ss:$8 sps:$4 sm:$0xff]  }
 0x7f0   :  { %2997 = vmatprep.subr.bf16.mxu0 %v5409_v42  ;;  %3038 = vmatprep.subr.bf16.mxu1 %v5412_v25  ;;  %v6564_v37 = vld [vmem:[#allocation8 + $0x4] ss:$8 sps:$4 sm:$0xff]   ;;  %v4687_v42 = vld [vmem:[%s6776_s5 + $0x1] ss:$4 sm:$0xf] }
 0x7f1   :  { %v2152_v25 = vrot.slane %v4687_v42, %v6362_v22 }
 0x7f3   :  { %2998 = vmatpush1.bf16.msra.mxu0 %v5407_v46  ;;  %3039 = vmatpush1.bf16.msra.mxu1 %v5410_v48  ;;  %v2160_v46 = vrot.slane %v4687_v42, %v6388_v45  ;;  %v2156_v48 = vrot.slane %v4687_v42, %v6365_v24 }
 0x7f4   :  { %2999 = vmatprep.subr.bf16.mxu0 %v5415_v51  ;;  %3040 = vmatprep.subr.bf16.mxu1 %v5418_v52  ;;  %v2164_v51 = vrot.slane %v4687_v42, %v6394_v47  ;;  %v5813_v42 = vld [vmem:[#allocation7 + $0x40] ss:$8 sps:$4 sm:$0xff]  }
 0x7f7   :  { %3000 = vmatpush1.bf16.msra.mxu0 %v5413_v55  ;;  %3041 = vmatpush1.bf16.msra.mxu1 %v5416_v56 }
 0x7f8   :  { %3001 = vmatprep.subr.bf16.mxu0 %v5421_v59  ;;  %3042 = vmatprep.subr.bf16.mxu1 %v5424_v60 }
 0x7fb   :  { %3002 = vmatpush1.bf16.msra.mxu0 %v5419_v62  ;;  %3043 = vmatpush1.bf16.msra.mxu1 %v5422_v63 }
 0x7fc   :  { %3003 = vmatprep.subr.bf16.mxu0 %v5427_v2  ;;  %3044 = vmatprep.subr.bf16.mxu1 %v5430_v3 }
 0x7ff   :  { %3004 = vmatpush1.bf16.msra.mxu0 %v5425_v6  ;;  %3045 = vmatpush1.bf16.msra.mxu1 %v5428_v7 }
 0x800   :  { %3005 = vmatprep.subr.bf16.mxu0 %v5433_v10  ;;  %3046 = vmatprep.subr.bf16.mxu1 %v5436_v11 }
 0x803   :  { %3006 = vmatpush1.bf16.msra.mxu0 %v5431_v14  ;;  %3047 = vmatpush1.bf16.msra.mxu1 %v5434_v15 }
 0x804   :  { %3007 = vmatprep.subr.bf16.mxu0 %v5439_v17  ;;  %3048 = vmatprep.subr.bf16.mxu1 %v5442_v18 }
 0x807   :  { %3008 = vmatpush1.bf16.msra.mxu0 %v5437_v19  ;;  %3049 = vmatpush1.bf16.msra.mxu1 %v5440_v20 }
 0x808   :  { %3009 = vmatprep.subr.bf16.mxu0 %v5445_v23  ;;  %3050 = vmatprep.subr.bf16.mxu1 %v5448_v26 }
 0x80b   :  { %3010 = vmatpush1.bf16.msra.mxu0 %v5443_v28  ;;  %3051 = vmatpush1.bf16.msra.mxu1 %v5446_v40 }
 0x80c   :  { %3011 = vmatprep.subr.bf16.mxu0 %v5451_v41  ;;  %3052 = vmatprep.subr.bf16.mxu1 %v5454_v43 }
 0x80f   :  { %3012 = vmatpush1.bf16.msra.mxu0 %v5449_v27  ;;  %3053 = vmatpush1.bf16.msra.mxu1 %v5452_v44 }
 0x810   :  { %3013 = vmatprep.subr.bf16.mxu0 %v5457_v49  ;;  %3054 = vmatprep.subr.bf16.mxu1 %v5460_v50 }
 0x813   :  { %3014 = vmatpush1.bf16.msra.mxu0 %v5455_v53  ;;  %3055 = vmatpush1.bf16.msra.mxu1 %v5458_v54 }
 0x814   :  { %3015 = vmatprep.subr.bf16.mxu0 %v5463_v57  ;;  %3056 = vmatprep.subr.bf16.mxu1 %v5466_v58 }
 0x817   :  { %3016 = vmatpush1.bf16.msra.mxu0 %v5461_v61  ;;  %3057 = vmatpush1.bf16.msra.mxu1 %v5464_v0 }
 0x818   :  { %3017 = vmatprep.subr.bf16.mxu0 %v5469_v4  ;;  %3058 = vmatprep.subr.bf16.mxu1 %v5472_v5  ;;  %v5797_v5 = vld [vmem:[#allocation7] ss:$8 sps:$4 sm:$0xff]  }
 0x81b   :  { %3018 = vmatpush1.bf16.msra.mxu0 %v5467_v8  ;;  %3059 = vmatpush1.bf16.msra.mxu1 %v5470_v9  ;;  %v5798_v8 = vld [vmem:[#allocation7 + $0x14] ss:$8 sps:$4 sm:$0xff]   ;;  %v6574_v9 = vld [vmem:[#allocation8] ss:$8 sps:$4 sm:$0xff]  }
 0x81c   :  { %3019 = vmatprep.subr.bf16.mxu0 %v5475_v12  ;;  %3060 = vmatprep.subr.bf16.mxu1 %v5478_v13  ;;  %v6577_v12 = vld [vmem:[#allocation8 + $0x14] ss:$8 sps:$4 sm:$0xff]   ;;  %v5801_v13 = vld [vmem:[#allocation7 + $0x10] ss:$8 sps:$4 sm:$0xff]  }
 0x81f   :  { %3020 = vmatpush1.bf16.msra.mxu0 %v5473_v16  ;;  %3061 = vmatpush1.bf16.msra.mxu1 %v5476_v29  ;;  %v5802_v16 = vld [vmem:[#allocation7 + $0x24] ss:$8 sps:$4 sm:$0xff]   ;;  %v6580_v29 = vld [vmem:[#allocation8 + $0x10] ss:$8 sps:$4 sm:$0xff]  }
 0x820   :  { %3021 = vmatprep.subr.bf16.mxu0 %v5481_v30  ;;  %3062 = vmatprep.subr.bf16.mxu1 %v5484_v31  ;;  %v6583_v30 = vld [vmem:[#allocation8 + $0x24] ss:$8 sps:$4 sm:$0xff]   ;;  %v5805_v31 = vld [vmem:[#allocation7 + $0x20] ss:$8 sps:$4 sm:$0xff]  }
 0x823   :  { %3022 = vmatpush1.bf16.msra.mxu0 %v5479_v39  ;;  %3063 = vmatpush1.bf16.msra.mxu1 %v5482_v35  ;;  %v5806_v39 = vld [vmem:[#allocation7 + $0x34] ss:$8 sps:$4 sm:$0xff]   ;;  %v6586_v35 = vld [vmem:[#allocation8 + $0x20] ss:$8 sps:$4 sm:$0xff]  }
 0x824   :  { %3023 = vmatprep.subr.bf16.mxu0 %v5487_v32  ;;  %3064 = vmatprep.subr.bf16.mxu1 %v5490_v21  ;;  %v6589_v32 = vld [vmem:[#allocation8 + $0x34] ss:$8 sps:$4 sm:$0xff]   ;;  %v5809_v21 = vld [vmem:[#allocation7 + $0x30] ss:$8 sps:$4 sm:$0xff]  }
 0x827   :  { %3024 = vmatpush1.bf16.msra.mxu0 %v5485_v33  ;;  %3065 = vmatpush1.bf16.msra.mxu1 %v5488_v36  ;;  %v5810_v33 = vld [vmem:[#allocation7 + $0x44] ss:$8 sps:$4 sm:$0xff]   ;;  %v6592_v36 = vld [vmem:[#allocation8 + $0x30] ss:$8 sps:$4 sm:$0xff]  }
 0x828   :  { %3079 = vmatprep.subr.bf16.mxu0 %v5795_v1  ;;  %3128 = vmatprep.subr.bf16.mxu1 %v6564_v37  ;;  %v6595_v1 = vld [vmem:[#allocation8 + $0x44] ss:$8 sps:$4 sm:$0xff]  }
 0x8bd   :  { %v2523_v52 = vpop.f32.mrb[20].mxu0  ;;  %v2564_v55 = vpop.f32.mrb[20].mxu1 }
 0x8be   :  { %v2524_v56 = vadd.f32 %v2523_v52, %v2152_v25  ;;  %v2565_v59 = vadd.f32 %v2564_v55, %v2160_v46  ;;  %v2525_v60 = vpop.f32.mrb[21].mxu0  ;;  %v2566_v62 = vpop.f32.mrb[21].mxu1  ;;  %v5814_v25 = vld [vmem:[#allocation7 + $0x54] ss:$8 sps:$4 sm:$0xff]   ;;  %v6598_v46 = vld [vmem:[#allocation8 + $0x40] ss:$8 sps:$4 sm:$0xff]  }
 0x8bf   :  { %v2526_v63 = vadd.f32 %v2525_v60, %v2156_v48  ;;  %v2567_v2 = vadd.f32 %v2566_v62, %v2164_v51  ;;  %v2527_v3 = vpop.f32.mrb[22].mxu0  ;;  %v2568_v6 = vpop.f32.mrb[22].mxu1  ;;  %v6601_v48 = vld [vmem:[#allocation8 + $0x54] ss:$8 sps:$4 sm:$0xff]   ;;  %v5817_v51 = vld [vmem:[#allocation7 + $0x50] ss:$8 sps:$4 sm:$0xff]  }
 0x8c0   :  { %v2575_v7 = vmul.f32 0.70710677, %v2524_v56  ;;  %v2577_v10 = vmul.f32 0.70710677, %v2565_v59  ;;  %v2528_v15 = vpop.f32.mrb[23].mxu0  ;;  %v2569_v17 = vpop.f32.mrb[23].mxu1 }
 0x8c1   :  { %v2576_v11 = vmul.f32 0.70710677, %v2526_v63  ;;  %v2578_v14 = vmul.f32 0.70710677, %v2567_v2  ;;  %v2571_v26 = vmul.f32 0.5, %v2524_v56  ;;  %v2573_v41 = vmul.f32 0.5, %v2565_v59 }
 0x8c2   :  { %5703 = verf.f32 %v2575_v7  ;;  %v2572_v43 = vmul.f32 0.5, %v2526_v63  ;;  %v2574_v49 = vmul.f32 0.5, %v2567_v2  ;;  %v5818_v52 = vld [vmem:[#allocation7 + $0x64] ss:$8 sps:$4 sm:$0xff]   ;;  %v6604_v55 = vld [vmem:[#allocation8 + $0x50] ss:$8 sps:$4 sm:$0xff]  }
 0x8c3   :  { %5705 = verf.f32 %v2577_v10  ;;  %v6607_v56 = vld [vmem:[#allocation8 + $0x64] ss:$8 sps:$4 sm:$0xff]   ;;  %v5821_v59 = vld [vmem:[#allocation7 + $0x60] ss:$8 sps:$4 sm:$0xff]   ;;  %v5822_v60 = vld [vmem:[#allocation7 + $0x74] ss:$8 sps:$4 sm:$0xff]  }
 0x8c4   :  { %5707 = verf.f32 %v2576_v11  ;;  %v6610_v62 = vld [vmem:[#allocation8 + $0x60] ss:$8 sps:$4 sm:$0xff]   ;;  %v6613_v63 = vld [vmem:[#allocation8 + $0x74] ss:$8 sps:$4 sm:$0xff]   ;;  %v5825_v2 = vld [vmem:[#allocation7 + $0x70] ss:$8 sps:$4 sm:$0xff]  }
 0x8c5   :  { %5709 = verf.f32 %v2578_v14  ;;  %v5826_v3 = vld [vmem:[#allocation7 + $0x84] ss:$8 sps:$4 sm:$0xff]   ;;  %v6616_v6 = vld [vmem:[#allocation8 + $0x70] ss:$8 sps:$4 sm:$0xff]   ;;  %v5829_v10 = vld [vmem:[#allocation7 + $0x80] ss:$8 sps:$4 sm:$0xff]  }
 0x8c6   :  { %v6619_v7 = vld [vmem:[#allocation8 + $0x84] ss:$8 sps:$4 sm:$0xff]   ;;  %v5830_v11 = vld [vmem:[#allocation7 + $0x94] ss:$8 sps:$4 sm:$0xff]   ;;  %v6622_v14 = vld [vmem:[#allocation8 + $0x80] ss:$8 sps:$4 sm:$0xff]  }
 0x8c7   :  { %v6625_v15 = vld [vmem:[#allocation8 + $0x94] ss:$8 sps:$4 sm:$0xff]   ;;  %v5833_v17 = vld [vmem:[#allocation7 + $0x90] ss:$8 sps:$4 sm:$0xff]  }
 0x8cc   :  { %v5704_v18 = vpop.eup %5703 }
 0x8cd   :  { %v5706_v19 = vpop.eup %5705  ;;  %v2583_v20 = vadd.f32 1.0, %v5704_v18  ;;  %v5834_v18 = vld [vmem:[#allocation7 + $0xa4] ss:$8 sps:$4 sm:$0xff]  }
 0x8ce   :  { %v5708_v23 = vpop.eup %5707  ;;  %v2585_v28 = vadd.f32 1.0, %v5706_v19  ;;  %v6628_v19 = vld [vmem:[#allocation8 + $0x90] ss:$8 sps:$4 sm:$0xff]  }
 0x8cf   :  { %v5710_v40 = vpop.eup %5709  ;;  %v2584_v27 = vadd.f32 1.0, %v5708_v23  ;;  %v2587_v44 = vmul.f32 %v2583_v20, %v2571_v26  ;;  %v6631_v20 = vld [vmem:[#allocation8 + $0xa4] ss:$8 sps:$4 sm:$0xff]   ;;  %v5837_v23 = vld [vmem:[#allocation7 + $0xa0] ss:$8 sps:$4 sm:$0xff]  }
 0x8d0   :  { %v2586_v50 = vadd.f32 1.0, %v5710_v40  ;;  %v2589_v53 = vmul.f32 %v2585_v28, %v2573_v41  ;;  %v5838_v26 = vld [vmem:[#allocation7 + $0xb4] ss:$8 sps:$4 sm:$0xff]   ;;  %v6634_v28 = vld [vmem:[#allocation8 + $0xa0] ss:$8 sps:$4 sm:$0xff]  }
 0x8d1   :  { %v2588_v54 = vmul.f32 %v2584_v27, %v2572_v43  ;;  %v2591_v61 = vpack.c.bf16 %v2587_v44, %v2587_v44  ;;  %v6637_v40 = vld [vmem:[#allocation8 + $0xb4] ss:$8 sps:$4 sm:$0xff]   ;;  %v5841_v41 = vld [vmem:[#allocation7 + $0xb0] ss:$8 sps:$4 sm:$0xff]   ;;  %v5842_v43 = vld [vmem:[#allocation7 + $0xc4] ss:$8 sps:$4 sm:$0xff]  }
 0x8d2   :  { %v2590_v57 = vmul.f32 %v2586_v50, %v2574_v49  ;;  %v2593_v4 = vpack.c.bf16 %v2589_v53, %v2589_v53  ;;  %v6640_v27 = vld [vmem:[#allocation8 + $0xb0] ss:$8 sps:$4 sm:$0xff]   ;;  %v6643_v44 = vld [vmem:[#allocation8 + $0xc4] ss:$8 sps:$4 sm:$0xff]   ;;  %v5845_v49 = vld [vmem:[#allocation7 + $0xc0] ss:$8 sps:$4 sm:$0xff]  }
 0x8d3   :  { %v2592_v58 = vpack.c.bf16 %v2588_v54, %v2588_v54  ;;  %v5846_v50 = vld [vmem:[#allocation7 + $0xd4] ss:$8 sps:$4 sm:$0xff]   ;;  %v6646_v53 = vld [vmem:[#allocation8 + $0xc0] ss:$8 sps:$4 sm:$0xff]  }
 0x8d4   :  { %v2594_v0 = vpack.c.bf16 %v2590_v57, %v2590_v57  ;;  %v6649_v54 = vld [vmem:[#allocation8 + $0xd4] ss:$8 sps:$4 sm:$0xff]   ;;  %v5849_v57 = vld [vmem:[#allocation7 + $0xd0] ss:$8 sps:$4 sm:$0xff]  }
 0x8d5   :  { %3025 = vmatprep.mubr.bf16.mxu0 %v2592_v58  ;;  %v5850_v58 = vld [vmem:[#allocation7 + $0xe4] ss:$8 sps:$4 sm:$0xff]  }
 0x8d6   :  { %3066 = vmatprep.mubr.bf16.mxu1 %v2594_v0  ;;  %3026 = vmatmul.mubr.bf16.vlgmr.msra.gmra.mrb[24].mxu0 %v2591_v61  ;;  %v6652_v61 = vld [vmem:[#allocation8 + $0xd0] ss:$8 sps:$4 sm:$0xff]   ;;  %v6655_v0 = vld [vmem:[#allocation8 + $0xe4] ss:$8 sps:$4 sm:$0xff]  }
 0x8d7   :  { %3067 = vmatmul.mubr.bf16.vlgmr.msra.gmra.mrb[24].mxu1 %v2593_v4  ;;  %3080 = vmatpush1.bf16.msra.mxu0 %v5797_v5  ;;  %v5853_v4 = vld [vmem:[#allocation7 + $0xe0] ss:$8 sps:$4 sm:$0xff]   ;;  %v5854_v5 = vld [vmem:[#allocation7 + $0xf4] ss:$8 sps:$4 sm:$0xff]  }
 0x8d8   :  { %3081 = vmatprep.subr.bf16.mxu0 %v5798_v8  ;;  %3129 = vmatpush1.bf16.msra.mxu1 %v6574_v9  ;;  %v6658_v8 = vld [vmem:[#allocation8 + $0xe0] ss:$8 sps:$4 sm:$0xff]  }
 0x8d9   :  { %3130 = vmatprep.subr.bf16.mxu1 %v6577_v12 }
 0x8db   :  { %3082 = vmatpush1.bf16.msra.mxu0 %v5801_v13  ;;  %v6661_v13 = vld [vmem:[#allocation8 + $0xf4] ss:$8 sps:$4 sm:$0xff]  }
 0x8dc   :  { %3083 = vmatprep.subr.bf16.mxu0 %v5802_v16  ;;  %3131 = vmatpush1.bf16.msra.mxu1 %v6580_v29  ;;  %v5857_v16 = vld [vmem:[#allocation7 + $0xf0] ss:$8 sps:$4 sm:$0xff]  }
 0x8dd   :  { %3132 = vmatprep.subr.bf16.mxu1 %v6583_v30 }
 0x8df   :  { %3084 = vmatpush1.bf16.msra.mxu0 %v5805_v31  ;;  %v6664_v31 = vld [vmem:[#allocation8 + $0xf0] ss:$8 sps:$4 sm:$0xff]  }
 0x8e0   :  { %3085 = vmatprep.subr.bf16.mxu0 %v5806_v39  ;;  %3133 = vmatpush1.bf16.msra.mxu1 %v6586_v35  ;;  %v5859_v39 = vld [vmem:[#allocation5 + $0x4] ss:$8 sps:$4 sm:$0xff]  }
 0x8e1   :  { %3134 = vmatprep.subr.bf16.mxu1 %v6589_v32 }
 0x8e3   :  { %3086 = vmatpush1.bf16.msra.mxu0 %v5809_v21  ;;  %v4752_v21 = vld [vmem:[%s6778_s7 + $0x1] ss:$4 sm:$0x3] }
 0x8e4   :  { %3087 = vmatprep.subr.bf16.mxu0 %v5810_v33  ;;  %3135 = vmatpush1.bf16.msra.mxu1 %v6592_v36  ;;  %v2666_v33 = vrot.slane %v4752_v21, %v6362_v22 }
 0x8e5   :  { %3136 = vmatprep.subr.bf16.mxu1 %v6595_v1 }
 0x8e7   :  { %3088 = vmatpush1.bf16.msra.mxu0 %v5813_v42  ;;  %v2670_v42 = vrot.slane %v4752_v21, %v6365_v24  ;;  %v5870_v21 = vld [vmem:[#allocation5 + $0x50] ss:$8 sps:$4 sm:$0xff]  }
 0x8e8   :  { %3089 = vmatprep.subr.bf16.mxu0 %v5814_v25  ;;  %3137 = vmatpush1.bf16.msra.mxu1 %v6598_v46 }
 0x8e9   :  { %3138 = vmatprep.subr.bf16.mxu1 %v6601_v48 }
 0x8eb   :  { %3090 = vmatpush1.bf16.msra.mxu0 %v5817_v51 }
 0x8ec   :  { %3091 = vmatprep.subr.bf16.mxu0 %v5818_v52  ;;  %3139 = vmatpush1.bf16.msra.mxu1 %v6604_v55 }
 0x8ed   :  { %3140 = vmatprep.subr.bf16.mxu1 %v6607_v56 }
 0x8ef   :  { %3092 = vmatpush1.bf16.msra.mxu0 %v5821_v59 }
 0x8f0   :  { %3093 = vmatprep.subr.bf16.mxu0 %v5822_v60  ;;  %3141 = vmatpush1.bf16.msra.mxu1 %v6610_v62 }
 0x8f1   :  { %3142 = vmatprep.subr.bf16.mxu1 %v6613_v63 }
 0x8f3   :  { %3094 = vmatpush1.bf16.msra.mxu0 %v5825_v2 }
 0x8f4   :  { %3095 = vmatprep.subr.bf16.mxu0 %v5826_v3  ;;  %3143 = vmatpush1.bf16.msra.mxu1 %v6616_v6 }
 0x8f5   :  { %3144 = vmatprep.subr.bf16.mxu1 %v6619_v7 }
 0x8f7   :  { %3096 = vmatpush1.bf16.msra.mxu0 %v5829_v10 }
 0x8f8   :  { %3097 = vmatprep.subr.bf16.mxu0 %v5830_v11  ;;  %3145 = vmatpush1.bf16.msra.mxu1 %v6622_v14 }
 0x8f9   :  { %3146 = vmatprep.subr.bf16.mxu1 %v6625_v15 }
 0x8fb   :  { %3098 = vmatpush1.bf16.msra.mxu0 %v5833_v17 }
 0x8fc   :  { %3099 = vmatprep.subr.bf16.mxu0 %v5834_v18  ;;  %3147 = vmatpush1.bf16.msra.mxu1 %v6628_v19 }
 0x8fd   :  { %3148 = vmatprep.subr.bf16.mxu1 %v6631_v20 }
 0x8ff   :  { %3100 = vmatpush1.bf16.msra.mxu0 %v5837_v23 }
 0x900   :  { %3101 = vmatprep.subr.bf16.mxu0 %v5838_v26  ;;  %3149 = vmatpush1.bf16.msra.mxu1 %v6634_v28 }
 0x901   :  { %3150 = vmatprep.subr.bf16.mxu1 %v6637_v40 }
 0x903   :  { %3102 = vmatpush1.bf16.msra.mxu0 %v5841_v41 }
 0x904   :  { %3103 = vmatprep.subr.bf16.mxu0 %v5842_v43  ;;  %3151 = vmatpush1.bf16.msra.mxu1 %v6640_v27 }
 0x905   :  { %3152 = vmatprep.subr.bf16.mxu1 %v6643_v44 }
 0x907   :  { %3104 = vmatpush1.bf16.msra.mxu0 %v5845_v49  ;;  %v5860_v49 = vld [vmem:[#allocation5] ss:$8 sps:$4 sm:$0xff]  }
 0x908   :  { %3105 = vmatprep.subr.bf16.mxu0 %v5846_v50  ;;  %3153 = vmatpush1.bf16.msra.mxu1 %v6646_v53  ;;  %v5861_v50 = vld [vmem:[#allocation5 + $0x14] ss:$8 sps:$4 sm:$0xff]  }
 0x909   :  { %3154 = vmatprep.subr.bf16.mxu1 %v6649_v54 }
 0x90b   :  { %3106 = vmatpush1.bf16.msra.mxu0 %v5849_v57  ;;  %v5862_v57 = vld [vmem:[#allocation5 + $0x10] ss:$8 sps:$4 sm:$0xff]  }
 0x90c   :  { %3107 = vmatprep.subr.bf16.mxu0 %v5850_v58  ;;  %3155 = vmatpush1.bf16.msra.mxu1 %v6652_v61  ;;  %v5863_v58 = vld [vmem:[#allocation5 + $0x24] ss:$8 sps:$4 sm:$0xff]  }
 0x90d   :  { %3156 = vmatprep.subr.bf16.mxu1 %v6655_v0 }
 0x90f   :  { %3108 = vmatpush1.bf16.msra.mxu0 %v5853_v4  ;;  %v5864_v4 = vld [vmem:[#allocation5 + $0x20] ss:$8 sps:$4 sm:$0xff]  }
 0x910   :  { %3109 = vmatprep.subr.bf16.mxu0 %v5854_v5  ;;  %3157 = vmatpush1.bf16.msra.mxu1 %v6658_v8  ;;  %v5865_v5 = vld [vmem:[#allocation5 + $0x34] ss:$8 sps:$4 sm:$0xff]  }
 0x911   :  { %3158 = vmatprep.subr.bf16.mxu1 %v6661_v13 }
 0x913   :  { %3110 = vmatpush1.bf16.msra.mxu0 %v5857_v16  ;;  %v5866_v16 = vld [vmem:[#allocation5 + $0x30] ss:$8 sps:$4 sm:$0xff]  }
 0x914   :  { %3159 = vmatpush1.bf16.msra.mxu1 %v6664_v31  ;;  %3201 = vmatprep.subr.bf16.mxu0 %v5859_v39  ;;  %v5869_v39 = vld [vmem:[#allocation5 + $0x54] ss:$8 sps:$4 sm:$0xff]  }
 0x915   :  { %3250 = vmatprep.subr.bf16.mxu1 %v6564_v37 }
 0x9a9   :  { %v3027_v25 = vpop.f32.mrb[24].mxu0 }
 0x9aa   :  { %v3028_v51 = vadd.f32 %v3027_v25, %v2666_v33  ;;  %v3068_v52 = vpop.f32.mrb[24].mxu1  ;;  %v3029_v59 = vpop.f32.mrb[25].mxu0  ;;  %v5871_v33 = vld [vmem:[#allocation5 + $0x64] ss:$8 sps:$4 sm:$0xff]   ;;  %v5873_v25 = vld [vmem:[#allocation5 + $0x74] ss:$8 sps:$4 sm:$0xff]  }
 0x9ab   :  { %v3030_v60 = vadd.f32 %v3029_v59, %v2670_v42  ;;  %v3070_v2 = vpop.f32.mrb[25].mxu1  ;;  %v3031_v3 = vpop.f32.mrb[26].mxu0  ;;  %v5872_v42 = vld [vmem:[#allocation5 + $0x60] ss:$8 sps:$4 sm:$0xff]  }
 0x9ac   :  { %v3069_v10 = vadd.f32 %v3068_v52, %v3028_v51  ;;  %v3072_v11 = vpop.f32.mrb[26].mxu1  ;;  %v3032_v17 = vpop.f32.mrb[27].mxu0  ;;  %v5874_v51 = vld [vmem:[#allocation5 + $0x70] ss:$8 sps:$4 sm:$0xff]   ;;  %v5875_v52 = vld [vmem:[#allocation5 + $0x84] ss:$8 sps:$4 sm:$0xff]  }
 0x9ad   :  { %v3071_v18 = vadd.f32 %v3070_v2, %v3030_v60  ;;  %v3073_v37 = vpop.f32.mrb[27].mxu1  ;;  %v5876_v59 = vld [vmem:[#allocation5 + $0x80] ss:$8 sps:$4 sm:$0xff]   ;;  %v5877_v60 = vld [vmem:[#allocation5 + $0x94] ss:$8 sps:$4 sm:$0xff]  }
 0x9ae   :  { %v3075_v23 = vadd.f32 %v3069_v10, %v6556_v34  ;;  %v5867_v34 = vld [vmem:[#allocation5 + $0x44] ss:$8 sps:$4 sm:$0xff]   ;;  %v5878_v2 = vld [vmem:[#allocation5 + $0x90] ss:$8 sps:$4 sm:$0xff]   ;;  %v5880_v10 = vld [vmem:[#allocation5 + $0xa0] ss:$8 sps:$4 sm:$0xff]  }
 0x9af   :  { %v3076_v26 = vadd.f32 %v3071_v18, %v6558_v38  ;;  %v5868_v38 = vld [vmem:[#allocation5 + $0x40] ss:$8 sps:$4 sm:$0xff]   ;;  %v5879_v3 = vld [vmem:[#allocation5 + $0xa4] ss:$8 sps:$4 sm:$0xff]   ;;  %v5881_v11 = vld [vmem:[#allocation5 + $0xb4] ss:$8 sps:$4 sm:$0xff]  }
 0x9b0   :  { %v3077_v43 = vpack.c.bf16 %v3075_v23, %v3075_v23  ;;  %v5882_v17 = vld [vmem:[#allocation5 + $0xb0] ss:$8 sps:$4 sm:$0xff]   ;;  %v5883_v18 = vld [vmem:[#allocation5 + $0xc4] ss:$8 sps:$4 sm:$0xff]   ;;  %v5884_v37 = vld [vmem:[#allocation5 + $0xc0] ss:$8 sps:$4 sm:$0xff]  }
 0x9b1   :  { %v3078_v41 = vpack.c.bf16 %v3076_v26, %v3076_v26  ;;  %v5885_v23 = vld [vmem:[#allocation5 + $0xd4] ss:$8 sps:$4 sm:$0xff]   ;;  %v5886_v26 = vld [vmem:[#allocation5 + $0xd0] ss:$8 sps:$4 sm:$0xff]  }
 0x9b3   :  { %3111 = vmatprep.mubr.bf16.mxu0 %v3078_v41  ;;  %v5887_v41 = vld [vmem:[#allocation5 + $0xe4] ss:$8 sps:$4 sm:$0xff]  }
 0x9b4   :  { %3112 = vmatmul.mubr.bf16.vlgmr.msra.gmra.mrb[28].mxu0 %v3077_v43  ;;  %v5888_v43 = vld [vmem:[#allocation5 + $0xe0] ss:$8 sps:$4 sm:$0xff]  }
 0x9b5   :  { %3202 = vmatpush1.bf16.msra.mxu0 %v5860_v49  ;;  %v5889_v49 = vld [vmem:[#allocation5 + $0xf4] ss:$8 sps:$4 sm:$0xff]  }
 0x9b6   :  { %3203 = vmatprep.subr.bf16.mxu0 %v5861_v50  ;;  %v5890_v50 = vld [vmem:[#allocation5 + $0xf0] ss:$8 sps:$4 sm:$0xff]  }
 0x9b9   :  { %3204 = vmatpush1.bf16.msra.mxu0 %v5862_v57 }
 0x9ba   :  { %3205 = vmatprep.subr.bf16.mxu0 %v5863_v58 }
 0x9bd   :  { %3206 = vmatpush1.bf16.msra.mxu0 %v5864_v4 }
 0x9be   :  { %3207 = vmatprep.subr.bf16.mxu0 %v5865_v5 }
 0x9c1   :  { %3208 = vmatpush1.bf16.msra.mxu0 %v5866_v16 }
 0x9c2   :  { %3209 = vmatprep.subr.bf16.mxu0 %v5867_v34 }
 0x9c5   :  { %3210 = vmatpush1.bf16.msra.mxu0 %v5868_v38 }
 0x9c6   :  { %3211 = vmatprep.subr.bf16.mxu0 %v5869_v39 }
 0x9c9   :  { %3212 = vmatpush1.bf16.msra.mxu0 %v5870_v21  ;;  %v5517_v21 = vld [vmem:[#allocation10 + $0x484] ss:$16 sps:$4 sm:$0xff]  }
 0x9ca   :  { %3213 = vmatprep.subr.bf16.mxu0 %v5871_v33  ;;  %v5515_v33 = vld [vmem:[#allocation10 + $0x480] ss:$16 sps:$4 sm:$0xff]  }
 0x9cd   :  { %3214 = vmatpush1.bf16.msra.mxu0 %v5872_v42  ;;  %v5523_v42 = vld [vmem:[#allocation10 + $0x4a4] ss:$16 sps:$4 sm:$0xff]  }
 0x9ce   :  { %3215 = vmatprep.subr.bf16.mxu0 %v5873_v25  ;;  %v5521_v25 = vld [vmem:[#allocation10 + $0x4a0] ss:$16 sps:$4 sm:$0xff]  }
 0x9d1   :  { %3216 = vmatpush1.bf16.msra.mxu0 %v5874_v51  ;;  %v5529_v51 = vld [vmem:[#allocation10 + $0x4c4] ss:$16 sps:$4 sm:$0xff]  }
 0x9d2   :  { %3217 = vmatprep.subr.bf16.mxu0 %v5875_v52  ;;  %v5527_v52 = vld [vmem:[#allocation10 + $0x4c0] ss:$16 sps:$4 sm:$0xff]  }
 0x9d5   :  { %3218 = vmatpush1.bf16.msra.mxu0 %v5876_v59  ;;  %v5535_v59 = vld [vmem:[#allocation10 + $0x4e4] ss:$16 sps:$4 sm:$0xff]  }
 0x9d6   :  { %3219 = vmatprep.subr.bf16.mxu0 %v5877_v60  ;;  %v5533_v60 = vld [vmem:[#allocation10 + $0x4e0] ss:$16 sps:$4 sm:$0xff]  }
 0x9d9   :  { %3220 = vmatpush1.bf16.msra.mxu0 %v5878_v2  ;;  %v5541_v2 = vld [vmem:[#allocation10 + $0x504] ss:$16 sps:$4 sm:$0xff]  }
 0x9da   :  { %3221 = vmatprep.subr.bf16.mxu0 %v5879_v3  ;;  %v5539_v3 = vld [vmem:[#allocation10 + $0x500] ss:$16 sps:$4 sm:$0xff]  }
 0x9dd   :  { %3222 = vmatpush1.bf16.msra.mxu0 %v5880_v10  ;;  %v5547_v10 = vld [vmem:[#allocation10 + $0x524] ss:$16 sps:$4 sm:$0xff]  }
 0x9de   :  { %3223 = vmatprep.subr.bf16.mxu0 %v5881_v11  ;;  %v5545_v11 = vld [vmem:[#allocation10 + $0x520] ss:$16 sps:$4 sm:$0xff]  }
 0x9e1   :  { %3224 = vmatpush1.bf16.msra.mxu0 %v5882_v17 }
 0x9e2   :  { %3225 = vmatprep.subr.bf16.mxu0 %v5883_v18 }
 0x9e5   :  { %3226 = vmatpush1.bf16.msra.mxu0 %v5884_v37 }
 0x9e6   :  { %3227 = vmatprep.subr.bf16.mxu0 %v5885_v23 }
 0x9e9   :  { %3228 = vmatpush1.bf16.msra.mxu0 %v5886_v26 }
 0x9ea   :  { %3229 = vmatprep.subr.bf16.mxu0 %v5887_v41 }
 0x9ed   :  { %3230 = vmatpush1.bf16.msra.mxu0 %v5888_v43 }
 0x9ee   :  { %3231 = vmatprep.subr.bf16.mxu0 %v5889_v49  ;;  %v5494_v49 = vld [vmem:[#allocation10 + $0x408] ss:$16 sps:$4 sm:$0xff]  }
 0x9f1   :  { %3232 = vmatpush1.bf16.msra.mxu0 %v5890_v50 }
 0xa87   :  { %v3113_v57 = vpop.f32.mrb[28].mxu0 }
 0xa88   :  { %v3124_v58 = vmul.f32 %v3113_v57, %v3113_v57  ;;  %v3115_v4 = vpop.f32.mrb[29].mxu0 }
 0xa89   :  { %v3125_v5 = vmul.f32 %v3115_v4, %v3115_v4  ;;  %v3117_v16 = vpop.f32.mrb[30].mxu0 }
 0xa8a   :  { %v3118_v34 = vpop.f32.mrb[31].mxu0  ;;  %v3126_v39 = vpack.c.bf16 %v3124_v58, %v3124_v58  ;;  %v5500_v58 = vld [vmem:[#allocation10 + $0x428] ss:$16 sps:$4 sm:$0xff]   ;;  %v5514_v16 = vld [vmem:[#allocation10 + $0x46c] ss:$16 sps:$4 sm:$0xff]  }
 0xa8b   :  { %v3127_v38 = vpack.c.bf16 %v3125_v5, %v3125_v5  ;;  %v5506_v5 = vld [vmem:[#allocation10 + $0x448] ss:$16 sps:$4 sm:$0xff]  }
 0xa8c   :  { %v5512_v34 = vld [vmem:[#allocation10 + $0x468] ss:$16 sps:$4 sm:$0xff]  }
 0xa8d   :  { %3160 = vmatprep.mubr.bf16.mxu1 %v3127_v38  ;;  %v5520_v38 = vld [vmem:[#allocation10 + $0x48c] ss:$16 sps:$4 sm:$0xff]  }
 0xa8e   :  { %3161 = vmatmul.mubr.bf16.vlgmr.msra.gmra.mrb[28].mxu1 %v3126_v39  ;;  %v5518_v39 = vld [vmem:[#allocation10 + $0x488] ss:$16 sps:$4 sm:$0xff]  }
 0xa8f   :  { %3251 = vmatpush1.bf16.msra.mxu1 %v6574_v9 }
 0xa90   :  { %3252 = vmatprep.subr.bf16.mxu1 %v6577_v12 }
 0xa93   :  { %3253 = vmatpush1.bf16.msra.mxu1 %v6580_v29 }
 0xa94   :  { %3254 = vmatprep.subr.bf16.mxu1 %v6583_v30 }
 0xa97   :  { %3255 = vmatpush1.bf16.msra.mxu1 %v6586_v35 }
 0xa98   :  { %3256 = vmatprep.subr.bf16.mxu1 %v6589_v32 }
 0xa9b   :  { %3257 = vmatpush1.bf16.msra.mxu1 %v6592_v36  ;;  %v3121_v36 = vld [vmem:[#allocation14 + $0x1] ss:$4 sm:$0x3] }
 0xa9c   :  { %3258 = vmatprep.subr.bf16.mxu1 %v6595_v1  ;;  %v4817_v1 = vld [vmem:[%s6782_s11 + $0x1] ss:$4 sm:$0x3] }
 0xa9f   :  { %3259 = vmatpush1.bf16.msra.mxu1 %v6598_v46  ;;  %v3177_v46 = vrot.slane %v3121_v36, %v6362_v22 }
 0xaa0   :  { %3260 = vmatprep.subr.bf16.mxu1 %v6601_v48 }
 0xaa3   :  { %3261 = vmatpush1.bf16.msra.mxu1 %v6604_v55  ;;  %v3181_v55 = vrot.slane %v3121_v36, %v6365_v24  ;;  %v5544_v36 = vld [vmem:[#allocation10 + $0x50c] ss:$16 sps:$4 sm:$0xff]  }
 0xaa4   :  { %3262 = vmatprep.subr.bf16.mxu1 %v6607_v56 }
 0xaa7   :  { %3263 = vmatpush1.bf16.msra.mxu1 %v6610_v62  ;;  %v3190_v62 = vrot.slane %v4817_v1, %v6362_v22 }
 0xaa8   :  { %3264 = vmatprep.subr.bf16.mxu1 %v6613_v63 }
 0xaab   :  { %3265 = vmatpush1.bf16.msra.mxu1 %v6616_v6 }
 0xaac   :  { %3266 = vmatprep.subr.bf16.mxu1 %v6619_v7  ;;  %v3194_v7 = vrot.slane %v4817_v1, %v6365_v24  ;;  %v5542_v1 = vld [vmem:[#allocation10 + $0x508] ss:$16 sps:$4 sm:$0xff]  }
 0xaaf   :  { %3267 = vmatpush1.bf16.msra.mxu1 %v6622_v14 }
 0xab0   :  { %3268 = vmatprep.subr.bf16.mxu1 %v6625_v15 }
 0xab3   :  { %3269 = vmatpush1.bf16.msra.mxu1 %v6628_v19 }
 0xab4   :  { %3270 = vmatprep.subr.bf16.mxu1 %v6631_v20 }
 0xab7   :  { %3271 = vmatpush1.bf16.msra.mxu1 %v6634_v28 }
 0xab8   :  { %3272 = vmatprep.subr.bf16.mxu1 %v6637_v40 }
 0xabb   :  { %3273 = vmatpush1.bf16.msra.mxu1 %v6640_v27  ;;  %v5491_v27 = vld [vmem:[#allocation10 + $0x400] ss:$16 sps:$4 sm:$0xff]  }
 0xabc   :  { %3274 = vmatprep.subr.bf16.mxu1 %v6643_v44  ;;  %v5493_v44 = vld [vmem:[#allocation10 + $0x404] ss:$16 sps:$4 sm:$0xff]  }
 0xabd   :  { %3731 = vmatprep.subr.bf16.mxu0 %v5493_v44  ;;  %v5574_v44 = vld [vmem:[#allocation10 + $0x5ac] ss:$16 sps:$4 sm:$0xff]  }
 0xabf   :  { %3275 = vmatpush1.bf16.msra.mxu1 %v6646_v53  ;;  %v5496_v53 = vld [vmem:[#allocation10 + $0x40c] ss:$16 sps:$4 sm:$0xff]  }
 0xac0   :  { %3276 = vmatprep.subr.bf16.mxu1 %v6649_v54  ;;  %v5499_v54 = vld [vmem:[#allocation10 + $0x424] ss:$16 sps:$4 sm:$0xff]  }
 0xac3   :  { %3277 = vmatpush1.bf16.msra.mxu1 %v6652_v61  ;;  %v5497_v61 = vld [vmem:[#allocation10 + $0x420] ss:$16 sps:$4 sm:$0xff]  }
 0xac4   :  { %3278 = vmatprep.subr.bf16.mxu1 %v6655_v0  ;;  %v5505_v0 = vld [vmem:[#allocation10 + $0x444] ss:$16 sps:$4 sm:$0xff]  }
 0xac7   :  { %3279 = vmatpush1.bf16.msra.mxu1 %v6658_v8  ;;  %v5503_v8 = vld [vmem:[#allocation10 + $0x440] ss:$16 sps:$4 sm:$0xff]  }
 0xac8   :  { %3280 = vmatprep.subr.bf16.mxu1 %v6661_v13  ;;  %v5511_v13 = vld [vmem:[#allocation10 + $0x464] ss:$16 sps:$4 sm:$0xff]  }
 0xacb   :  { %3281 = vmatpush1.bf16.msra.mxu1 %v6664_v31  ;;  %v5509_v31 = vld [vmem:[#allocation10 + $0x460] ss:$16 sps:$4 sm:$0xff]  }
 0xacc   :  { %3772 = vmatprep.subr.bf16.mxu1 %v5496_v53  ;;  %v5569_v53 = vld [vmem:[#allocation10 + $0x5a0] ss:$16 sps:$4 sm:$0xff]  }
 0xb61   :  { %v3162_v9 = vpop.f32.mrb[28].mxu1 }
 0xb62   :  { %v3163_v12 = vadd.f32 1e-05, %v3162_v9  ;;  %v3164_v29 = vpop.f32.mrb[29].mxu1  ;;  %v5526_v9 = vld [vmem:[#allocation10 + $0x4ac] ss:$16 sps:$4 sm:$0xff]  }
 0xb63   :  { %v3165_v30 = vadd.f32 1e-05, %v3164_v29  ;;  %v3166_v35 = vpop.f32.mrb[30].mxu1  ;;  %v5532_v29 = vld [vmem:[#allocation10 + $0x4cc] ss:$16 sps:$4 sm:$0xff]  }
 0xb64   :  { %5711 = vrsqrt.f32 %v3163_v12  ;;  %v3167_v32 = vpop.f32.mrb[31].mxu1  ;;  %v5524_v12 = vld [vmem:[#allocation10 + $0x4a8] ss:$16 sps:$4 sm:$0xff]   ;;  %v5538_v35 = vld [vmem:[#allocation10 + $0x4ec] ss:$16 sps:$4 sm:$0xff]  }
 0xb65   :  { %5713 = vrsqrt.f32 %v3165_v30  ;;  %v5530_v30 = vld [vmem:[#allocation10 + $0x4c8] ss:$16 sps:$4 sm:$0xff]  }
 0xb66   :  { %v5536_v32 = vld [vmem:[#allocation10 + $0x4e8] ss:$16 sps:$4 sm:$0xff]  }
 0xb6e   :  { %v5712_v48 = vpop.eup %5711 }
 0xb6f   :  { %v5714_v56 = vpop.eup %5713  ;;  %v3171_v63 = vmul.f32 %v5712_v48, %v3113_v57  ;;  %v5502_v57 = vld [vmem:[#allocation10 + $0x42c] ss:$16 sps:$4 sm:$0xff]   ;;  %v5548_v48 = vld [vmem:[#allocation10 + $0x528] ss:$16 sps:$4 sm:$0xff]  }
 0xb70   :  { %v3172_v6 = vmul.f32 %v5714_v56, %v3115_v4  ;;  %v5508_v4 = vld [vmem:[#allocation10 + $0x44c] ss:$16 sps:$4 sm:$0xff]  }
 0xb71   :  { %v3184_v14 = vmul.f32 %v3177_v46, %v3171_v63  ;;  %v5550_v46 = vld [vmem:[#allocation10 + $0x52c] ss:$16 sps:$4 sm:$0xff]   ;;  %v5554_v63 = vld [vmem:[#allocation10 + $0x548] ss:$16 sps:$4 sm:$0xff]  }
 0xb72   :  { %v3185_v15 = vmul.f32 %v3181_v55, %v3172_v6  ;;  %v5553_v55 = vld [vmem:[#allocation10 + $0x544] ss:$16 sps:$4 sm:$0xff]   ;;  %v5556_v56 = vld [vmem:[#allocation10 + $0x54c] ss:$16 sps:$4 sm:$0xff]  }
 0xb73   :  { %v3197_v19 = vadd.f32 %v3190_v62, %v3184_v14  ;;  %v5551_v62 = vld [vmem:[#allocation10 + $0x540] ss:$16 sps:$4 sm:$0xff]   ;;  %v5559_v6 = vld [vmem:[#allocation10 + $0x564] ss:$16 sps:$4 sm:$0xff]  }
 0xb74   :  { %v3198_v20 = vadd.f32 %v3194_v7, %v3185_v15  ;;  %v5562_v7 = vld [vmem:[#allocation10 + $0x56c] ss:$16 sps:$4 sm:$0xff]   ;;  %v5557_v14 = vld [vmem:[#allocation10 + $0x560] ss:$16 sps:$4 sm:$0xff]   ;;  %v5560_v15 = vld [vmem:[#allocation10 + $0x568] ss:$16 sps:$4 sm:$0xff]  }
 0xb75   :  { %v3199_v40 = vpack.c.bf16 %v3197_v19, %v3197_v19  ;;  %v5565_v19 = vld [vmem:[#allocation10 + $0x584] ss:$16 sps:$4 sm:$0xff]  }
 0xb76   :  { %v3200_v28 = vpack.c.bf16 %v3198_v20, %v3198_v20  ;;  %v5568_v20 = vld [vmem:[#allocation10 + $0x58c] ss:$16 sps:$4 sm:$0xff]  }
 0xb78   :  { %3233 = vmatprep.mubr.bf16.mxu0 %v3200_v28  ;;  %v5563_v28 = vld [vmem:[#allocation10 + $0x580] ss:$16 sps:$4 sm:$0xff]  }
 0xb79   :  { %3234 = vmatmul.mubr.bf16.vlgmr.msra.gmra.mrb[32].mxu0 %v3199_v40  ;;  %v5566_v40 = vld [vmem:[#allocation10 + $0x588] ss:$16 sps:$4 sm:$0xff]  }
 0xb7a   :  { %3732 = vmatpush1.bf16.msra.mxu0 %v5491_v27  ;;  %v5571_v27 = vld [vmem:[#allocation10 + $0x5a4] ss:$16 sps:$4 sm:$0xff]  }
 0xb7b   :  { %3733 = vmatprep.subr.bf16.mxu0 %v5499_v54  ;;  %v5572_v54 = vld [vmem:[#allocation10 + $0x5a8] ss:$16 sps:$4 sm:$0xff]  }
 0xb7e   :  { %3734 = vmatpush1.bf16.msra.mxu0 %v5497_v61  ;;  %v5575_v61 = vld [vmem:[#allocation10 + $0x5c0] ss:$16 sps:$4 sm:$0xff]  }
 0xb7f   :  { %3735 = vmatprep.subr.bf16.mxu0 %v5505_v0  ;;  %v5577_v0 = vld [vmem:[#allocation10 + $0x5c4] ss:$16 sps:$4 sm:$0xff]  }
 0xb82   :  { %3736 = vmatpush1.bf16.msra.mxu0 %v5503_v8  ;;  %v5578_v8 = vld [vmem:[#allocation10 + $0x5c8] ss:$16 sps:$4 sm:$0xff]  }
 0xb83   :  { %3737 = vmatprep.subr.bf16.mxu0 %v5511_v13  ;;  %v5580_v13 = vld [vmem:[#allocation10 + $0x5cc] ss:$16 sps:$4 sm:$0xff]  }
 0xb86   :  { %3738 = vmatpush1.bf16.msra.mxu0 %v5509_v31  ;;  %v5583_v31 = vld [vmem:[#allocation10 + $0x5e4] ss:$16 sps:$4 sm:$0xff]  }
 0xb87   :  { %3739 = vmatprep.subr.bf16.mxu0 %v5517_v21  ;;  %v5586_v21 = vld [vmem:[#allocation10 + $0x5ec] ss:$16 sps:$4 sm:$0xff]  }
 0xb8a   :  { %3740 = vmatpush1.bf16.msra.mxu0 %v5515_v33  ;;  %v5581_v33 = vld [vmem:[#allocation10 + $0x5e0] ss:$16 sps:$4 sm:$0xff]  }
 0xb8b   :  { %3741 = vmatprep.subr.bf16.mxu0 %v5523_v42  ;;  %v5584_v42 = vld [vmem:[#allocation10 + $0x5e8] ss:$16 sps:$4 sm:$0xff]  }
 0xb8e   :  { %3742 = vmatpush1.bf16.msra.mxu0 %v5521_v25  ;;  %v5589_v25 = vld [vmem:[#allocation11 + $0x404] ss:$8 sps:$4 sm:$0xff]  }
 0xb8f   :  { %3743 = vmatprep.subr.bf16.mxu0 %v5529_v51  ;;  %v5592_v51 = vld [vmem:[#allocation11 + $0x504] ss:$8 sps:$4 sm:$0xff]  }
 0xb92   :  { %3744 = vmatpush1.bf16.msra.mxu0 %v5527_v52 }
 0xb93   :  { %3745 = vmatprep.subr.bf16.mxu0 %v5535_v59 }
 0xb96   :  { %3746 = vmatpush1.bf16.msra.mxu0 %v5533_v60 }
 0xb97   :  { %3747 = vmatprep.subr.bf16.mxu0 %v5541_v2 }
 0xb9a   :  { %3748 = vmatpush1.bf16.msra.mxu0 %v5539_v3 }
 0xb9b   :  { %3749 = vmatprep.subr.bf16.mxu0 %v5547_v10 }
 0xb9e   :  { %3750 = vmatpush1.bf16.msra.mxu0 %v5545_v11  ;;  %v3243_v11 = vld [vmem:[#allocation13 + $0x2] ss:$4 sm:$0x3] }
 0xb9f   :  { %3751 = vmatprep.subr.bf16.mxu0 %v5553_v55  ;;  %v5605_v55 = vld [vmem:[#allocation11 + $0x430] ss:$8 sps:$4 sm:$0xff]  }
 0xba2   :  { %3752 = vmatpush1.bf16.msra.mxu0 %v5551_v62  ;;  %v5613_v62 = vld [vmem:[#allocation11 + $0x444] ss:$8 sps:$4 sm:$0xff]  }
 0xba3   :  { %3753 = vmatprep.subr.bf16.mxu0 %v5559_v6  ;;  %v5611_v6 = vld [vmem:[#allocation11 + $0x440] ss:$8 sps:$4 sm:$0xff]  }
 0xba6   :  { %3754 = vmatpush1.bf16.msra.mxu0 %v5557_v14  ;;  %v5619_v14 = vld [vmem:[#allocation11 + $0x454] ss:$8 sps:$4 sm:$0xff]  }
 0xba7   :  { %3755 = vmatprep.subr.bf16.mxu0 %v5565_v19  ;;  %v5617_v19 = vld [vmem:[#allocation11 + $0x450] ss:$8 sps:$4 sm:$0xff]  }
 0xbaa   :  { %3756 = vmatpush1.bf16.msra.mxu0 %v5563_v28  ;;  %v5625_v28 = vld [vmem:[#allocation11 + $0x464] ss:$8 sps:$4 sm:$0xff]  }
 0xbab   :  { %3757 = vmatprep.subr.bf16.mxu0 %v5571_v27  ;;  %v5623_v27 = vld [vmem:[#allocation11 + $0x460] ss:$8 sps:$4 sm:$0xff]  }
 0xbae   :  { %3758 = vmatpush1.bf16.msra.mxu0 %v5569_v53  ;;  %v5631_v53 = vld [vmem:[#allocation11 + $0x474] ss:$8 sps:$4 sm:$0xff]  }
 0xbaf   :  { %3759 = vmatprep.subr.bf16.mxu0 %v5577_v0  ;;  %v5632_v0 = vld [vmem:[#allocation11 + $0x570] ss:$8 sps:$4 sm:$0xff]  }
 0xbb2   :  { %3760 = vmatpush1.bf16.msra.mxu0 %v5575_v61  ;;  %v5629_v61 = vld [vmem:[#allocation11 + $0x470] ss:$8 sps:$4 sm:$0xff]  }
 0xbb3   :  { %3761 = vmatprep.subr.bf16.mxu0 %v5583_v31  ;;  %v5635_v31 = vld [vmem:[#allocation11 + $0x480] ss:$8 sps:$4 sm:$0xff]  }
 0xbb6   :  { %3762 = vmatpush1.bf16.msra.mxu0 %v5581_v33  ;;  %v5643_v33 = vld [vmem:[#allocation11 + $0x494] ss:$8 sps:$4 sm:$0xff]  }
 0xbb7   :  { %4235 = vmatprep.subr.bf16.mxu0 %v5589_v25  ;;  %v5641_v25 = vld [vmem:[#allocation11 + $0x490] ss:$8 sps:$4 sm:$0xff]  }
 0xc4c   :  { %v6713_v17 = vpop.f32.mrb[32].mxu0 }
 0xc4d   :  { %v3246_v18 = vmul.f32 %v6713_v17, %v6713_v17  ;;  %v6717_v37 = vpop.f32.mrb[33].mxu0 }
 0xc4e   :  { %v3247_v23 = vmul.f32 %v6717_v37, %v6717_v37  ;;  %v3239_v26 = vpop.f32.mrb[34].mxu0 }
 0xc4f   :  { %v3240_v41 = vpop.f32.mrb[35].mxu0  ;;  %v3248_v50 = vpack.c.bf16 %v3246_v18, %v3246_v18  ;;  %v4818_v18 = vld [vmem:[%s6780_s9 + $0x2] ss:$4 sm:$0x3] }
 0xc50   :  { %v3249_v43 = vpack.c.bf16 %v3247_v23, %v3247_v23  ;;  %v3299_v23 = vrot.slane %v3243_v11, %v6362_v22  ;;  %v3303_v41 = vrot.slane %v3243_v11, %v6365_v24  ;;  %v5653_v11 = vld [vmem:[#allocation11 + $0x4b0] ss:$8 sps:$4 sm:$0xff]  }
 0xc52   :  { %3282 = vmatprep.mubr.bf16.mxu1 %v3249_v43 }
 0xc53   :  { %3283 = vmatmul.mubr.bf16.vlgmr.msra.gmra.mrb[32].mxu1 %v3248_v50  ;;  %v3312_v50 = vrot.slane %v4818_v18, %v6362_v22 }
 0xc54   :  { %3773 = vmatpush1.bf16.msra.mxu1 %v5494_v49 }
 0xc55   :  { %3774 = vmatprep.subr.bf16.mxu1 %v5502_v57 }
 0xc58   :  { %3775 = vmatpush1.bf16.msra.mxu1 %v5500_v58  ;;  %v3316_v58 = vrot.slane %v4818_v18, %v6365_v24  ;;  %v5656_v18 = vld [vmem:[#allocation11 + $0x5b0] ss:$8 sps:$4 sm:$0xff]  }
 0xc59   :  { %3776 = vmatprep.subr.bf16.mxu1 %v5508_v4 }
 0xc5c   :  { %3777 = vmatpush1.bf16.msra.mxu1 %v5506_v5 }
 0xc5d   :  { %3778 = vmatprep.subr.bf16.mxu1 %v5514_v16 }
 0xc60   :  { %3779 = vmatpush1.bf16.msra.mxu1 %v5512_v34 }
 0xc61   :  { %3780 = vmatprep.subr.bf16.mxu1 %v5520_v38 }
 0xc64   :  { %3781 = vmatpush1.bf16.msra.mxu1 %v5518_v39  ;;  %v5587_v39 = vld [vmem:[#allocation11 + $0x400] ss:$8 sps:$4 sm:$0xff]  }
 0xc65   :  { %3782 = vmatprep.subr.bf16.mxu1 %v5526_v9  ;;  %v5590_v9 = vld [vmem:[#allocation11 + $0x500] ss:$8 sps:$4 sm:$0xff]  }
 0xc68   :  { %3783 = vmatpush1.bf16.msra.mxu1 %v5524_v12  ;;  %v5595_v12 = vld [vmem:[#allocation11 + $0x414] ss:$8 sps:$4 sm:$0xff]  }
 0xc69   :  { %3784 = vmatprep.subr.bf16.mxu1 %v5532_v29  ;;  %v5598_v29 = vld [vmem:[#allocation11 + $0x514] ss:$8 sps:$4 sm:$0xff]  }
 0xc6c   :  { %3785 = vmatpush1.bf16.msra.mxu1 %v5530_v30  ;;  %v5596_v30 = vld [vmem:[#allocation11 + $0x510] ss:$8 sps:$4 sm:$0xff]  }
 0xc6d   :  { %3786 = vmatprep.subr.bf16.mxu1 %v5538_v35  ;;  %v5601_v35 = vld [vmem:[#allocation11 + $0x424] ss:$8 sps:$4 sm:$0xff]  }
 0xc70   :  { %3787 = vmatpush1.bf16.msra.mxu1 %v5536_v32  ;;  %v5604_v32 = vld [vmem:[#allocation11 + $0x524] ss:$8 sps:$4 sm:$0xff]  }
 0xc71   :  { %3788 = vmatprep.subr.bf16.mxu1 %v5544_v36  ;;  %v5599_v36 = vld [vmem:[#allocation11 + $0x420] ss:$8 sps:$4 sm:$0xff]  }
 0xc74   :  { %3789 = vmatpush1.bf16.msra.mxu1 %v5542_v1  ;;  %v5602_v1 = vld [vmem:[#allocation11 + $0x520] ss:$8 sps:$4 sm:$0xff]  }
 0xc75   :  { %3790 = vmatprep.subr.bf16.mxu1 %v5550_v46  ;;  %v5607_v46 = vld [vmem:[#allocation11 + $0x434] ss:$8 sps:$4 sm:$0xff]  }
 0xc78   :  { %3791 = vmatpush1.bf16.msra.mxu1 %v5548_v48  ;;  %v5610_v48 = vld [vmem:[#allocation11 + $0x534] ss:$8 sps:$4 sm:$0xff]  }
 0xc79   :  { %3792 = vmatprep.subr.bf16.mxu1 %v5556_v56  ;;  %v5608_v56 = vld [vmem:[#allocation11 + $0x530] ss:$8 sps:$4 sm:$0xff]  }
 0xc7c   :  { %3793 = vmatpush1.bf16.msra.mxu1 %v5554_v63  ;;  %v5616_v63 = vld [vmem:[#allocation11 + $0x544] ss:$8 sps:$4 sm:$0xff]  }
 0xc7d   :  { %3794 = vmatprep.subr.bf16.mxu1 %v5562_v7  ;;  %v5614_v7 = vld [vmem:[#allocation11 + $0x540] ss:$8 sps:$4 sm:$0xff]  }
 0xc80   :  { %3795 = vmatpush1.bf16.msra.mxu1 %v5560_v15  ;;  %v5622_v15 = vld [vmem:[#allocation11 + $0x554] ss:$8 sps:$4 sm:$0xff]  }
 0xc81   :  { %3796 = vmatprep.subr.bf16.mxu1 %v5568_v20  ;;  %v5620_v20 = vld [vmem:[#allocation11 + $0x550] ss:$8 sps:$4 sm:$0xff]  }
 0xc84   :  { %3797 = vmatpush1.bf16.msra.mxu1 %v5566_v40  ;;  %v5628_v40 = vld [vmem:[#allocation11 + $0x564] ss:$8 sps:$4 sm:$0xff]  }
 0xc85   :  { %3798 = vmatprep.subr.bf16.mxu1 %v5574_v44  ;;  %v5626_v44 = vld [vmem:[#allocation11 + $0x560] ss:$8 sps:$4 sm:$0xff]  }
 0xc88   :  { %3799 = vmatpush1.bf16.msra.mxu1 %v5572_v54  ;;  %v5634_v54 = vld [vmem:[#allocation11 + $0x574] ss:$8 sps:$4 sm:$0xff]  }
 0xc89   :  { %3800 = vmatprep.subr.bf16.mxu1 %v5580_v13  ;;  %v5640_v13 = vld [vmem:[#allocation11 + $0x584] ss:$8 sps:$4 sm:$0xff]  }
 0xc8c   :  { %3801 = vmatpush1.bf16.msra.mxu1 %v5578_v8  ;;  %v5637_v8 = vld [vmem:[#allocation11 + $0x484] ss:$8 sps:$4 sm:$0xff]  }
 0xc8d   :  { %3802 = vmatprep.subr.bf16.mxu1 %v5586_v21  ;;  %v5638_v21 = vld [vmem:[#allocation11 + $0x580] ss:$8 sps:$4 sm:$0xff]  }
 0xc90   :  { %3803 = vmatpush1.bf16.msra.mxu1 %v5584_v42  ;;  %v5646_v42 = vld [vmem:[#allocation11 + $0x594] ss:$8 sps:$4 sm:$0xff]  }
 0xc91   :  { %4276 = vmatprep.subr.bf16.mxu1 %v5592_v51  ;;  %v5644_v51 = vld [vmem:[#allocation11 + $0x590] ss:$8 sps:$4 sm:$0xff]  }
 0xd26   :  { %v3284_v52 = vpop.f32.mrb[32].mxu1 }
 0xd27   :  { %v3285_v59 = vadd.f32 1e-05, %v3284_v52  ;;  %v3286_v60 = vpop.f32.mrb[33].mxu1  ;;  %v5649_v52 = vld [vmem:[#allocation11 + $0x4a4] ss:$8 sps:$4 sm:$0xff]  }
 0xd28   :  { %v3287_v2 = vadd.f32 1e-05, %v3286_v60  ;;  %v3288_v3 = vpop.f32.mrb[34].mxu1  ;;  %v5647_v60 = vld [vmem:[#allocation11 + $0x4a0] ss:$8 sps:$4 sm:$0xff]  }
 0xd29   :  { %5715 = vrsqrt.f32 %v3285_v59  ;;  %v3289_v10 = vpop.f32.mrb[35].mxu1  ;;  %v5652_v59 = vld [vmem:[#allocation11 + $0x5a4] ss:$8 sps:$4 sm:$0xff]   ;;  %v5655_v3 = vld [vmem:[#allocation11 + $0x4b4] ss:$8 sps:$4 sm:$0xff]  }
 0xd2a   :  { %5717 = vrsqrt.f32 %v3287_v2  ;;  %v5650_v2 = vld [vmem:[#allocation11 + $0x5a0] ss:$8 sps:$4 sm:$0xff]   ;;  %v5658_v10 = vld [vmem:[#allocation11 + $0x5b4] ss:$8 sps:$4 sm:$0xff]  }
 0xd33   :  { %v5716_v26 = vpop.eup %5715 }
 0xd34   :  { %v5718_v43 = vpop.eup %5717  ;;  %v3293_v49 = vmul.f32 %v5716_v26, %v6713_v17  ;;  %v5664_v26 = vld [vmem:[#allocation11 + $0x5c4] ss:$8 sps:$4 sm:$0xff]  }
 0xd35   :  { %v3294_v57 = vmul.f32 %v5718_v43, %v6717_v37  ;;  %v5593_v37 = vld [vmem:[#allocation11 + $0x410] ss:$8 sps:$4 sm:$0xff]   ;;  %v5662_v43 = vld [vmem:[#allocation11 + $0x5c0] ss:$8 sps:$4 sm:$0xff]  }
 0xd36   :  { %v3306_v4 = vmul.f32 %v3299_v23, %v3293_v49  ;;  %v5661_v23 = vld [vmem:[#allocation11 + $0x4c4] ss:$8 sps:$4 sm:$0xff]   ;;  %v5667_v49 = vld [vmem:[#allocation11 + $0x4d4] ss:$8 sps:$4 sm:$0xff]  }
 0xd37   :  { %v3307_v5 = vmul.f32 %v3303_v41, %v3294_v57  ;;  %v5659_v41 = vld [vmem:[#allocation11 + $0x4c0] ss:$8 sps:$4 sm:$0xff]   ;;  %v5665_v57 = vld [vmem:[#allocation11 + $0x4d0] ss:$8 sps:$4 sm:$0xff]  }
 0xd38   :  { %v6730_v16 = vadd.f32 %v3312_v50, %v3306_v4  ;;  %v5670_v50 = vld [vmem:[#allocation11 + $0x5d4] ss:$8 sps:$4 sm:$0xff]   ;;  %v5673_v4 = vld [vmem:[#allocation11 + $0x4e4] ss:$8 sps:$4 sm:$0xff]  }
 0xd39   :  { %v6732_v34 = vadd.f32 %v3316_v58, %v3307_v5  ;;  %v5668_v58 = vld [vmem:[#allocation11 + $0x5d0] ss:$8 sps:$4 sm:$0xff]   ;;  %v5676_v5 = vld [vmem:[#allocation11 + $0x5e4] ss:$8 sps:$4 sm:$0xff]  }
 0xd3a   :  { %v3321_v17 = vpack.c.bf16 %v6730_v16, %v6730_v16 }
 0xd3b   :  { %v3322_v38 = vpack.c.bf16 %v6732_v34, %v6732_v34 }
 0xd3d   :  { %3763 = vmatprep.mubr.bf16.mxu0 %v3322_v38  ;;  %3804 = vmatprep.mubr.bf16.mxu1 %v3322_v38  ;;  %v5671_v38 = vld [vmem:[#allocation11 + $0x4e0] ss:$8 sps:$4 sm:$0xff]  }
 0xd3e   :  { %3764 = vmatmul.mubr.bf16.vlgmr.msra.gmra.mrb[36].mxu0 %v3321_v17  ;;  %3805 = vmatmul.mubr.bf16.vlgmr.msra.gmra.mrb[36].mxu1 %v3321_v17  ;;  %v5682_v17 = vld [vmem:[#allocation11 + $0x5f4] ss:$8 sps:$4 sm:$0xff]  }
 0xd3f   :  { %4236 = vmatpush1.bf16.msra.mxu0 %v5587_v39  ;;  %4277 = vmatpush1.bf16.msra.mxu1 %v5590_v9  ;;  %v5674_v39 = vld [vmem:[#allocation11 + $0x5e0] ss:$8 sps:$4 sm:$0xff]   ;;  %v5679_v9 = vld [vmem:[#allocation11 + $0x4f4] ss:$8 sps:$4 sm:$0xff]  }
 0xd40   :  { %4237 = vmatprep.subr.bf16.mxu0 %v5595_v12  ;;  %4278 = vmatprep.subr.bf16.mxu1 %v5598_v29  ;;  %v5677_v12 = vld [vmem:[#allocation11 + $0x4f0] ss:$8 sps:$4 sm:$0xff]  }
 0xd41   :  { %v5680_v29 = vld [vmem:[#allocation11 + $0x5f0] ss:$8 sps:$4 sm:$0xff]  }
 0xd43   :  { %4238 = vmatpush1.bf16.msra.mxu0 %v5593_v37  ;;  %4279 = vmatpush1.bf16.msra.mxu1 %v5596_v30  ;;  %v5891_v37 = vld [vmem:[#allocation7 + $0x4] ss:$8 sps:$4 sm:$0xff]  }
 0xd44   :  { %4239 = vmatprep.subr.bf16.mxu0 %v5601_v35  ;;  %4280 = vmatprep.subr.bf16.mxu1 %v5604_v32  ;;  %v5892_v30 = vld [vmem:[#allocation8 + $0x4] ss:$8 sps:$4 sm:$0xff]   ;;  %v4819_v35 = vld [vmem:[%s6776_s5 + $0x2] ss:$4 sm:$0xf] }
 0xd45   :  { %v3394_v32 = vrot.slane %v4819_v35, %v6362_v22 }
 0xd47   :  { %4240 = vmatpush1.bf16.msra.mxu0 %v5599_v36  ;;  %4281 = vmatpush1.bf16.msra.mxu1 %v5602_v1  ;;  %v3402_v36 = vrot.slane %v4819_v35, %v6388_v45  ;;  %v3398_v1 = vrot.slane %v4819_v35, %v6365_v24 }
 0xd48   :  { %4241 = vmatprep.subr.bf16.mxu0 %v5607_v46  ;;  %4282 = vmatprep.subr.bf16.mxu1 %v5610_v48  ;;  %v3406_v46 = vrot.slane %v4819_v35, %v6394_v47  ;;  %v5912_v35 = vld [vmem:[#allocation8 + $0x54] ss:$8 sps:$4 sm:$0xff]  }
 0xd4b   :  { %4242 = vmatpush1.bf16.msra.mxu0 %v5605_v55  ;;  %4283 = vmatpush1.bf16.msra.mxu1 %v5608_v56 }
 0xd4c   :  { %4243 = vmatprep.subr.bf16.mxu0 %v5613_v62  ;;  %4284 = vmatprep.subr.bf16.mxu1 %v5616_v63 }
 0xd4f   :  { %4244 = vmatpush1.bf16.msra.mxu0 %v5611_v6  ;;  %4285 = vmatpush1.bf16.msra.mxu1 %v5614_v7 }
 0xd50   :  { %4245 = vmatprep.subr.bf16.mxu0 %v5619_v14  ;;  %4286 = vmatprep.subr.bf16.mxu1 %v5622_v15 }
 0xd53   :  { %4246 = vmatpush1.bf16.msra.mxu0 %v5617_v19  ;;  %4287 = vmatpush1.bf16.msra.mxu1 %v5620_v20 }
 0xd54   :  { %4247 = vmatprep.subr.bf16.mxu0 %v5625_v28  ;;  %4288 = vmatprep.subr.bf16.mxu1 %v5628_v40 }
 0xd57   :  { %4248 = vmatpush1.bf16.msra.mxu0 %v5623_v27  ;;  %4289 = vmatpush1.bf16.msra.mxu1 %v5626_v44 }
 0xd58   :  { %4249 = vmatprep.subr.bf16.mxu0 %v5631_v53  ;;  %4290 = vmatprep.subr.bf16.mxu1 %v5634_v54 }
 0xd5b   :  { %4250 = vmatpush1.bf16.msra.mxu0 %v5629_v61  ;;  %4291 = vmatpush1.bf16.msra.mxu1 %v5632_v0 }
 0xd5c   :  { %4251 = vmatprep.subr.bf16.mxu0 %v5637_v8  ;;  %4292 = vmatprep.subr.bf16.mxu1 %v5640_v13 }
 0xd5f   :  { %4252 = vmatpush1.bf16.msra.mxu0 %v5635_v31  ;;  %4293 = vmatpush1.bf16.msra.mxu1 %v5638_v21 }
 0xd60   :  { %4253 = vmatprep.subr.bf16.mxu0 %v5643_v33  ;;  %4294 = vmatprep.subr.bf16.mxu1 %v5646_v42 }
 0xd63   :  { %4254 = vmatpush1.bf16.msra.mxu0 %v5641_v25  ;;  %4295 = vmatpush1.bf16.msra.mxu1 %v5644_v51 }
 0xd64   :  { %4255 = vmatprep.subr.bf16.mxu0 %v5649_v52  ;;  %4296 = vmatprep.subr.bf16.mxu1 %v5652_v59 }
 0xd67   :  { %4256 = vmatpush1.bf16.msra.mxu0 %v5647_v60  ;;  %4297 = vmatpush1.bf16.msra.mxu1 %v5650_v2 }
 0xd68   :  { %4257 = vmatprep.subr.bf16.mxu0 %v5655_v3  ;;  %4298 = vmatprep.subr.bf16.mxu1 %v5658_v10 }
 0xd6b   :  { %4258 = vmatpush1.bf16.msra.mxu0 %v5653_v11  ;;  %4299 = vmatpush1.bf16.msra.mxu1 %v5656_v18  ;;  %v5893_v18 = vld [vmem:[#allocation7] ss:$8 sps:$4 sm:$0xff]  }
 0xd6c   :  { %4259 = vmatprep.subr.bf16.mxu0 %v5661_v23  ;;  %4300 = vmatprep.subr.bf16.mxu1 %v5664_v26  ;;  %v5894_v23 = vld [vmem:[#allocation7 + $0x14] ss:$8 sps:$4 sm:$0xff]   ;;  %v5895_v26 = vld [vmem:[#allocation8] ss:$8 sps:$4 sm:$0xff]  }
 0xd6f   :  { %4260 = vmatpush1.bf16.msra.mxu0 %v5659_v41  ;;  %4301 = vmatpush1.bf16.msra.mxu1 %v5662_v43  ;;  %v5896_v41 = vld [vmem:[#allocation8 + $0x14] ss:$8 sps:$4 sm:$0xff]   ;;  %v5897_v43 = vld [vmem:[#allocation7 + $0x10] ss:$8 sps:$4 sm:$0xff]  }
 0xd70   :  { %4261 = vmatprep.subr.bf16.mxu0 %v5667_v49  ;;  %4302 = vmatprep.subr.bf16.mxu1 %v5670_v50  ;;  %v5898_v49 = vld [vmem:[#allocation7 + $0x24] ss:$8 sps:$4 sm:$0xff]   ;;  %v5899_v50 = vld [vmem:[#allocation8 + $0x10] ss:$8 sps:$4 sm:$0xff]  }
 0xd73   :  { %4262 = vmatpush1.bf16.msra.mxu0 %v5665_v57  ;;  %4303 = vmatpush1.bf16.msra.mxu1 %v5668_v58  ;;  %v5900_v57 = vld [vmem:[#allocation8 + $0x24] ss:$8 sps:$4 sm:$0xff]   ;;  %v5901_v58 = vld [vmem:[#allocation7 + $0x20] ss:$8 sps:$4 sm:$0xff]  }
 0xd74   :  { %4263 = vmatprep.subr.bf16.mxu0 %v5673_v4  ;;  %4304 = vmatprep.subr.bf16.mxu1 %v5676_v5  ;;  %v5902_v4 = vld [vmem:[#allocation7 + $0x34] ss:$8 sps:$4 sm:$0xff]   ;;  %v5903_v5 = vld [vmem:[#allocation8 + $0x20] ss:$8 sps:$4 sm:$0xff]  }
 0xd77   :  { %4264 = vmatpush1.bf16.msra.mxu0 %v5671_v38  ;;  %4305 = vmatpush1.bf16.msra.mxu1 %v5674_v39  ;;  %v5904_v38 = vld [vmem:[#allocation8 + $0x34] ss:$8 sps:$4 sm:$0xff]   ;;  %v5905_v39 = vld [vmem:[#allocation7 + $0x30] ss:$8 sps:$4 sm:$0xff]  }
 0xd78   :  { %4265 = vmatprep.subr.bf16.mxu0 %v5679_v9  ;;  %4306 = vmatprep.subr.bf16.mxu1 %v5682_v17  ;;  %v5906_v9 = vld [vmem:[#allocation7 + $0x44] ss:$8 sps:$4 sm:$0xff]   ;;  %v5907_v17 = vld [vmem:[#allocation8 + $0x30] ss:$8 sps:$4 sm:$0xff]  }
 0xd7b   :  { %4266 = vmatpush1.bf16.msra.mxu0 %v5677_v12  ;;  %4307 = vmatpush1.bf16.msra.mxu1 %v5680_v29  ;;  %v5908_v12 = vld [vmem:[#allocation8 + $0x44] ss:$8 sps:$4 sm:$0xff]   ;;  %v5909_v29 = vld [vmem:[#allocation7 + $0x40] ss:$8 sps:$4 sm:$0xff]  }
 0xd7c   :  { %4321 = vmatprep.subr.bf16.mxu0 %v5891_v37  ;;  %4370 = vmatprep.subr.bf16.mxu1 %v5892_v30  ;;  %v5910_v37 = vld [vmem:[#allocation7 + $0x54] ss:$8 sps:$4 sm:$0xff]   ;;  %v5911_v30 = vld [vmem:[#allocation8 + $0x40] ss:$8 sps:$4 sm:$0xff]  }
 0xe11   :  { %v3765_v48 = vpop.f32.mrb[36].mxu0  ;;  %v3806_v55 = vpop.f32.mrb[36].mxu1 }
 0xe12   :  { %v3766_v56 = vadd.f32 %v3765_v48, %v3394_v32  ;;  %v3807_v62 = vadd.f32 %v3806_v55, %v3402_v36  ;;  %v3767_v63 = vpop.f32.mrb[37].mxu0  ;;  %v3808_v6 = vpop.f32.mrb[37].mxu1  ;;  %v5913_v32 = vld [vmem:[#allocation7 + $0x50] ss:$8 sps:$4 sm:$0xff]   ;;  %v5914_v36 = vld [vmem:[#allocation7 + $0x64] ss:$8 sps:$4 sm:$0xff]  }
 0xe13   :  { %v3768_v7 = vadd.f32 %v3767_v63, %v3398_v1  ;;  %v3809_v14 = vadd.f32 %v3808_v6, %v3406_v46  ;;  %v3769_v15 = vpop.f32.mrb[38].mxu0  ;;  %v3810_v19 = vpop.f32.mrb[38].mxu1  ;;  %v5915_v1 = vld [vmem:[#allocation8 + $0x50] ss:$8 sps:$4 sm:$0xff]   ;;  %v5916_v46 = vld [vmem:[#allocation8 + $0x64] ss:$8 sps:$4 sm:$0xff]  }
 0xe14   :  { %v3817_v20 = vmul.f32 0.70710677, %v3766_v56  ;;  %v3819_v28 = vmul.f32 0.70710677, %v3807_v62  ;;  %v3770_v45 = vpop.f32.mrb[39].mxu0  ;;  %v3811_v44 = vpop.f32.mrb[39].mxu1 }
 0xe15   :  { %v3818_v40 = vmul.f32 0.70710677, %v3768_v7  ;;  %v3820_v27 = vmul.f32 0.70710677, %v3809_v14  ;;  %v3813_v0 = vmul.f32 0.5, %v3766_v56  ;;  %v3815_v31 = vmul.f32 0.5, %v3807_v62 }
 0xe16   :  { %5719 = verf.f32 %v3817_v20  ;;  %v3814_v21 = vmul.f32 0.5, %v3768_v7  ;;  %v3816_v25 = vmul.f32 0.5, %v3809_v14  ;;  %v5917_v48 = vld [vmem:[#allocation7 + $0x60] ss:$8 sps:$4 sm:$0xff]   ;;  %v5918_v55 = vld [vmem:[#allocation7 + $0x74] ss:$8 sps:$4 sm:$0xff]  }
 0xe17   :  { %5721 = verf.f32 %v3819_v28  ;;  %v5919_v56 = vld [vmem:[#allocation8 + $0x60] ss:$8 sps:$4 sm:$0xff]   ;;  %v5920_v62 = vld [vmem:[#allocation8 + $0x74] ss:$8 sps:$4 sm:$0xff]   ;;  %v5921_v63 = vld [vmem:[#allocation7 + $0x70] ss:$8 sps:$4 sm:$0xff]  }
 0xe18   :  { %5723 = verf.f32 %v3818_v40  ;;  %v5922_v6 = vld [vmem:[#allocation7 + $0x84] ss:$8 sps:$4 sm:$0xff]   ;;  %v5923_v7 = vld [vmem:[#allocation8 + $0x70] ss:$8 sps:$4 sm:$0xff]   ;;  %v5925_v15 = vld [vmem:[#allocation7 + $0x80] ss:$8 sps:$4 sm:$0xff]  }
 0xe19   :  { %5725 = verf.f32 %v3820_v27  ;;  %v5924_v14 = vld [vmem:[#allocation8 + $0x84] ss:$8 sps:$4 sm:$0xff]   ;;  %v5926_v19 = vld [vmem:[#allocation7 + $0x94] ss:$8 sps:$4 sm:$0xff]   ;;  %v5927_v20 = vld [vmem:[#allocation8 + $0x80] ss:$8 sps:$4 sm:$0xff]  }
 0xe1a   :  { %v5928_v28 = vld [vmem:[#allocation8 + $0x94] ss:$8 sps:$4 sm:$0xff]   ;;  %v5929_v40 = vld [vmem:[#allocation7 + $0x90] ss:$8 sps:$4 sm:$0xff]   ;;  %v5930_v27 = vld [vmem:[#allocation7 + $0xa4] ss:$8 sps:$4 sm:$0xff]  }
 0xe1b   :  { %v5931_v45 = vld [vmem:[#allocation8 + $0x90] ss:$8 sps:$4 sm:$0xff]   ;;  %v5932_v44 = vld [vmem:[#allocation8 + $0xa4] ss:$8 sps:$4 sm:$0xff]  }
 0xe20   :  { %v5720_v47 = vpop.eup %5719 }
 0xe21   :  { %v5722_v53 = vpop.eup %5721  ;;  %v3825_v54 = vadd.f32 1.0, %v5720_v47  ;;  %v5933_v47 = vld [vmem:[#allocation7 + $0xa0] ss:$8 sps:$4 sm:$0xff]  }
 0xe22   :  { %v5724_v61 = vpop.eup %5723  ;;  %v3827_v8 = vadd.f32 1.0, %v5722_v53  ;;  %v5934_v53 = vld [vmem:[#allocation7 + $0xb4] ss:$8 sps:$4 sm:$0xff]  }
 0xe23   :  { %v5726_v13 = vpop.eup %5725  ;;  %v3826_v33 = vadd.f32 1.0, %v5724_v61  ;;  %v3829_v42 = vmul.f32 %v3825_v54, %v3813_v0  ;;  %v5935_v54 = vld [vmem:[#allocation8 + $0xa0] ss:$8 sps:$4 sm:$0xff]   ;;  %v5936_v61 = vld [vmem:[#allocation8 + $0xb4] ss:$8 sps:$4 sm:$0xff]  }
 0xe24   :  { %v3828_v51 = vadd.f32 1.0, %v5726_v13  ;;  %v3831_v52 = vmul.f32 %v3827_v8, %v3815_v31  ;;  %v5937_v0 = vld [vmem:[#allocation7 + $0xb0] ss:$8 sps:$4 sm:$0xff]   ;;  %v5938_v8 = vld [vmem:[#allocation7 + $0xc4] ss:$8 sps:$4 sm:$0xff]  }
 0xe25   :  { %v3830_v59 = vmul.f32 %v3826_v33, %v3814_v21  ;;  %v3833_v3 = vpack.c.bf16 %v3829_v42, %v3829_v42  ;;  %v5939_v13 = vld [vmem:[#allocation8 + $0xb0] ss:$8 sps:$4 sm:$0xff]   ;;  %v5940_v31 = vld [vmem:[#allocation8 + $0xc4] ss:$8 sps:$4 sm:$0xff]   ;;  %v5941_v21 = vld [vmem:[#allocation7 + $0xc0] ss:$8 sps:$4 sm:$0xff]  }
 0xe26   :  { %v3832_v60 = vmul.f32 %v3828_v51, %v3816_v25  ;;  %v3835_v11 = vpack.c.bf16 %v3831_v52, %v3831_v52  ;;  %v5942_v33 = vld [vmem:[#allocation7 + $0xd4] ss:$8 sps:$4 sm:$0xff]   ;;  %v5943_v42 = vld [vmem:[#allocation8 + $0xc0] ss:$8 sps:$4 sm:$0xff]   ;;  %v5945_v51 = vld [vmem:[#allocation7 + $0xd0] ss:$8 sps:$4 sm:$0xff]  }
 0xe27   :  { %v3834_v2 = vpack.c.bf16 %v3830_v59, %v3830_v59  ;;  %v5944_v25 = vld [vmem:[#allocation8 + $0xd4] ss:$8 sps:$4 sm:$0xff]   ;;  %v5946_v52 = vld [vmem:[#allocation7 + $0xe4] ss:$8 sps:$4 sm:$0xff]   ;;  %v5947_v59 = vld [vmem:[#allocation8 + $0xd0] ss:$8 sps:$4 sm:$0xff]  }
 0xe28   :  { %v3836_v10 = vpack.c.bf16 %v3832_v60, %v3832_v60  ;;  %v5948_v60 = vld [vmem:[#allocation8 + $0xe4] ss:$8 sps:$4 sm:$0xff]  }
 0xe29   :  { %4267 = vmatprep.mubr.bf16.mxu0 %v3834_v2  ;;  %v5949_v2 = vld [vmem:[#allocation7 + $0xe0] ss:$8 sps:$4 sm:$0xff]  }
 0xe2a   :  { %4308 = vmatprep.mubr.bf16.mxu1 %v3836_v10  ;;  %4268 = vmatmul.mubr.bf16.vlgmr.msra.gmra.mrb[40].mxu0 %v3833_v3  ;;  %v5950_v3 = vld [vmem:[#allocation7 + $0xf4] ss:$8 sps:$4 sm:$0xff]   ;;  %v5951_v10 = vld [vmem:[#allocation8 + $0xe0] ss:$8 sps:$4 sm:$0xff]  }
 0xe2b   :  { %4309 = vmatmul.mubr.bf16.vlgmr.msra.gmra.mrb[40].mxu1 %v3835_v11  ;;  %4322 = vmatpush1.bf16.msra.mxu0 %v5893_v18  ;;  %v5952_v11 = vld [vmem:[#allocation8 + $0xf4] ss:$8 sps:$4 sm:$0xff]   ;;  %v5953_v18 = vld [vmem:[#allocation7 + $0xf0] ss:$8 sps:$4 sm:$0xff]  }
 0xe2c   :  { %4323 = vmatprep.subr.bf16.mxu0 %v5894_v23  ;;  %4371 = vmatpush1.bf16.msra.mxu1 %v5895_v26  ;;  %v5954_v23 = vld [vmem:[#allocation8 + $0xf0] ss:$8 sps:$4 sm:$0xff]  }
 0xe2d   :  { %4372 = vmatprep.subr.bf16.mxu1 %v5896_v41  ;;  %v4884_v26 = vld [vmem:[%s6778_s7 + $0x2] ss:$4 sm:$0x3] }
 0xe2e   :  { %v3908_v41 = vrot.slane %v4884_v26, %v6362_v22 }
 0xe2f   :  { %4324 = vmatpush1.bf16.msra.mxu0 %v5897_v43  ;;  %v3912_v43 = vrot.slane %v4884_v26, %v6365_v24 }
 0xe30   :  { %4325 = vmatprep.subr.bf16.mxu0 %v5898_v49  ;;  %4373 = vmatpush1.bf16.msra.mxu1 %v5899_v50 }
 0xe31   :  { %4374 = vmatprep.subr.bf16.mxu1 %v5900_v57 }
 0xe33   :  { %4326 = vmatpush1.bf16.msra.mxu0 %v5901_v58 }
 0xe34   :  { %4327 = vmatprep.subr.bf16.mxu0 %v5902_v4  ;;  %4375 = vmatpush1.bf16.msra.mxu1 %v5903_v5 }
 0xe35   :  { %4376 = vmatprep.subr.bf16.mxu1 %v5904_v38 }
 0xe37   :  { %4328 = vmatpush1.bf16.msra.mxu0 %v5905_v39 }
 0xe38   :  { %4329 = vmatprep.subr.bf16.mxu0 %v5906_v9  ;;  %4377 = vmatpush1.bf16.msra.mxu1 %v5907_v17 }
 0xe39   :  { %4378 = vmatprep.subr.bf16.mxu1 %v5908_v12 }
 0xe3b   :  { %4330 = vmatpush1.bf16.msra.mxu0 %v5909_v29 }
 0xe3c   :  { %4331 = vmatprep.subr.bf16.mxu0 %v5910_v37  ;;  %4379 = vmatpush1.bf16.msra.mxu1 %v5911_v30 }
 0xe3d   :  { %4380 = vmatprep.subr.bf16.mxu1 %v5912_v35 }
 0xe3f   :  { %4332 = vmatpush1.bf16.msra.mxu0 %v5913_v32 }
 0xe40   :  { %4333 = vmatprep.subr.bf16.mxu0 %v5914_v36  ;;  %4381 = vmatpush1.bf16.msra.mxu1 %v5915_v1 }
 0xe41   :  { %4382 = vmatprep.subr.bf16.mxu1 %v5916_v46 }
 0xe43   :  { %4334 = vmatpush1.bf16.msra.mxu0 %v5917_v48 }
 0xe44   :  { %4335 = vmatprep.subr.bf16.mxu0 %v5918_v55  ;;  %4383 = vmatpush1.bf16.msra.mxu1 %v5919_v56 }
 0xe45   :  { %4384 = vmatprep.subr.bf16.mxu1 %v5920_v62 }
 0xe47   :  { %4336 = vmatpush1.bf16.msra.mxu0 %v5921_v63 }
 0xe48   :  { %4337 = vmatprep.subr.bf16.mxu0 %v5922_v6  ;;  %4385 = vmatpush1.bf16.msra.mxu1 %v5923_v7 }
 0xe49   :  { %4386 = vmatprep.subr.bf16.mxu1 %v5924_v14 }
 0xe4b   :  { %4338 = vmatpush1.bf16.msra.mxu0 %v5925_v15 }
 0xe4c   :  { %4339 = vmatprep.subr.bf16.mxu0 %v5926_v19  ;;  %4387 = vmatpush1.bf16.msra.mxu1 %v5927_v20  ;;  %v4363_v19 = vld [vmem:[#allocation14 + $0x2] ss:$4 sm:$0x3]  ;;  %v4949_v20 = vld [vmem:[%s6782_s11 + $0x2] ss:$4 sm:$0x3] }
 0xe4d   :  { %4388 = vmatprep.subr.bf16.mxu1 %v5928_v28  ;;  %v4419_v28 = vrot.slane %v4363_v19, %v6362_v22  ;;  %s6131_s11 = scalar_lea.vmem %s4450_s2, 256 }
 0xe4e   :  { %p6132_p8 = scmp.ne.s32.totalorder %s4450_s2, %s6131_s11  ;;  %p6137_p10 = scmp.lt.s32.totalorder %s6131_s11, %s6131_s11 }
 0xe4f   :  { %4340 = vmatpush1.bf16.msra.mxu0 %v5929_v40 }
 0xe50   :  { %4341 = vmatprep.subr.bf16.mxu0 %v5930_v27  ;;  %4389 = vmatpush1.bf16.msra.mxu1 %v5931_v45  ;;  %v4423_v27 = vrot.slane %v4363_v19, %v6365_v24  ;;  %p6138_p11 = por %p6137_p10, %p6136_p9 }
 0xe51   :  { %4390 = vmatprep.subr.bf16.mxu1 %v5932_v44 }
 0xe52   :  { %p6139_p12 = pnand %p6138_p11, %p6132_p8 }
 0xe53   :  { %4342 = vmatpush1.bf16.msra.mxu0 %v5933_v47  ;;  %v4432_v47 = vrot.slane %v4949_v20, %v6362_v22 }
 0xe54   :  { %4343 = vmatprep.subr.bf16.mxu0 %v5934_v53  ;;  %4391 = vmatpush1.bf16.msra.mxu1 %v5935_v54  ;;  %v4436_v54 = vrot.slane %v4949_v20, %v6365_v24 }
 0xe55   :  { %4392 = vmatprep.subr.bf16.mxu1 %v5936_v61 }
 0xe57   :  { %4344 = vmatpush1.bf16.msra.mxu0 %v5937_v0 }
 0xe58   :  { %4345 = vmatprep.subr.bf16.mxu0 %v5938_v8  ;;  %4393 = vmatpush1.bf16.msra.mxu1 %v5939_v13 }
 0xe59   :  { %4394 = vmatprep.subr.bf16.mxu1 %v5940_v31 }
 0xe5b   :  { %4346 = vmatpush1.bf16.msra.mxu0 %v5941_v21 }
 0xe5c   :  { %4347 = vmatprep.subr.bf16.mxu0 %v5942_v33  ;;  %4395 = vmatpush1.bf16.msra.mxu1 %v5943_v42 }
 0xe5d   :  { %4396 = vmatprep.subr.bf16.mxu1 %v5944_v25 }
 0xe5f   :  { %4348 = vmatpush1.bf16.msra.mxu0 %v5945_v51 }
 0xe60   :  { %4349 = vmatprep.subr.bf16.mxu0 %v5946_v52  ;;  %4397 = vmatpush1.bf16.msra.mxu1 %v5947_v59 }
 0xe61   :  { %4398 = vmatprep.subr.bf16.mxu1 %v5948_v60 }
 0xe63   :  { %4350 = vmatpush1.bf16.msra.mxu0 %v5949_v2 }
 0xe64   :  { %4351 = vmatprep.subr.bf16.mxu0 %v5950_v3  ;;  %4399 = vmatpush1.bf16.msra.mxu1 %v5951_v10 }
 0xe65   :  { %4400 = vmatprep.subr.bf16.mxu1 %v5952_v11 }
 0xe67   :  { %4352 = vmatpush1.bf16.msra.mxu0 %v5953_v18 }
 0xe68   :  { %4401 = vmatpush1.bf16.msra.mxu1 %v5954_v23 }
 0xefd   :  { %v4269_v49 = vpop.f32.mrb[40].mxu0 }
 0xefe   :  { %v4270_v50 = vadd.f32 %v4269_v49, %v3908_v41  ;;  %v4310_v57 = vpop.f32.mrb[40].mxu1  ;;  %v4271_v58 = vpop.f32.mrb[41].mxu0 }
 0xeff   :  { %v4272_v4 = vadd.f32 %v4271_v58, %v3912_v43  ;;  %v4312_v5 = vpop.f32.mrb[41].mxu1  ;;  %v4273_v38 = vpop.f32.mrb[42].mxu0 }
 0xf00   :  { %v4311_v39 = vadd.f32 %v4310_v57, %v4270_v50  ;;  %v4314_v9 = vpop.f32.mrb[42].mxu1  ;;  %v4274_v17 = vpop.f32.mrb[43].mxu0 }
 0xf01   :  { %v4313_v12 = vadd.f32 %v4312_v5, %v4272_v4  ;;  %v4315_v29 = vpop.f32.mrb[43].mxu1 }
 0xf02   :  { %v4317_v37 = vadd.f32 %v4311_v39, %v6730_v16 }
 0xf03   :  { %v4318_v30 = vadd.f32 %v4313_v12, %v6732_v34 }
 0xf04   :  { %v4319_v32 = vpack.c.bf16 %v4317_v37, %v4317_v37 }
 0xf05   :  { %v4320_v35 = vpack.c.bf16 %v4318_v30, %v4318_v30 }
 0xf07   :  { %4353 = vmatprep.mubr.bf16.mxu0 %v4320_v35 }
 0xf08   :  { %4354 = vmatmul.mubr.bf16.vlgmr.msra.gmra.mrb[44].mxu0 %v4319_v32 }
 0xfdb   :  { %v4355_v36 = vpop.f32.mrb[44].mxu0 }
 0xfdc   :  { %v4366_v1 = vmul.f32 %v4355_v36, %v4355_v36  ;;  %v4357_v46 = vpop.f32.mrb[45].mxu0 }
 0xfdd   :  { %v4367_v48 = vmul.f32 %v4357_v46, %v4357_v46  ;;  %v4359_v55 = vpop.f32.mrb[46].mxu0 }
 0xfde   :  { %v4360_v56 = vpop.f32.mrb[47].mxu0  ;;  %v4368_v63 = vpack.c.bf16 %v4366_v1, %v4366_v1 }
 0xfdf   :  { %v4369_v62 = vpack.c.bf16 %v4367_v48, %v4367_v48 }
 0xfe1   :  { %4402 = vmatprep.mubr.bf16.mxu1 %v4369_v62 }
 0xfe2   :  { %4403 = vmatmul.mubr.bf16.vlgmr.msra.gmra.mrb[44].mxu1 %v4368_v63 }
0x10b5   :  { %v4404_v6 = vpop.f32.mrb[44].mxu1 }
0x10b6   :  { %v4405_v7 = vadd.f32 1e-05, %v4404_v6  ;;  %v4406_v14 = vpop.f32.mrb[45].mxu1 }
0x10b7   :  { %v4407_v16 = vadd.f32 1e-05, %v4406_v14  ;;  %v4408_v15 = vpop.f32.mrb[46].mxu1 }
0x10b8   :  { %5727 = vrsqrt.f32 %v4405_v7  ;;  %v4409_v34 = vpop.f32.mrb[47].mxu1 }
0x10b9   :  { %5729 = vrsqrt.f32 %v4407_v16 }
0x10c2   :  { %v5728_v40 = vpop.eup %5727 }
0x10c3   :  { %v5730_v45 = vpop.eup %5729  ;;  %v4413_v44 = vmul.f32 %v5728_v40, %v4355_v36 }
0x10c4   :  { %v4414_v53 = vmul.f32 %v5730_v45, %v4357_v46 }
0x10c5   :  { %v4426_v61 = vmul.f32 %v4419_v28, %v4413_v44 }
0x10c6   :  { %v4427_v0 = vmul.f32 %v4423_v27, %v4414_v53 }
0x10c7   :  { %v4439_v8 = vadd.f32 %v4432_v47, %v4426_v61 }
0x10c8   :  { %v4440_v13 = vadd.f32 %v4436_v54, %v4427_v0 }
0x10c9   :  { %4441 = vst [vmem:[#allocation16] sm:$0xff] %v4439_v8 }
0x10ca   :  { %4442 = vst [vmem:[#allocation16 + $0x8] sm:$0xff] %v4440_v13 }
0x10cb   :  { %6142 = shalt.err (!%p6139_p12)
}
0x10cc   :  { %s6143_s14 = scalar_lea.hbm %s6783_s12, 256 }
0x10cd   :  { %p6144_p13 = scmp.ne.s32.totalorder %s6783_s12, %s6143_s14  ;;  %p6147_p0 = scmp.lt.u32.totalorder %s6143_s14, %s6783_s12 }
0x10cf   :  { %p6149_p1 = pnand %p6147_p0, %p6144_p13 }
0x10d1   :  { %6152 = shalt.err (!%p6149_p1)
}
0x10d2   :  { %4452 = dma.vmem_to_hbm [thread:$0]  %s4450_s2, 256, %s6783_s12, [#allocation4]  }
0x10d3   :  { %6163 = dma.done.wait [#allocation4], 256  }
0x10d4   :  { %6164 = vsyncadd [#allocation4], 4294967040 }
0x10d5   :  { %4456 = vsyncpa [#allocation3], 1 }
0x10d6   :  { %4457 = vsyncpa [#allocation6], 1 }
0x10d7   :  { %4458 = vsyncpa [#allocation9], 1 }
0x10d8   :  { %4459 = vsyncpa [#allocation12], 1 }
0x10d9   :  { %4460 = vsyncpa [#allocation15], 1 }
0x10da   :  { %4461 = vsyncpa [#allocation4], 1 }

</bundles_post_ra>
